<compile_context>
chip_gen: v7x
topology: tpu7x:2x2x1
jax: 0.10.0
libtpu: 0.0.40
codegen_flags: <defaults>
</compile_context>

<pallas_src>
import math
import jax
import jax.numpy as jnp
from jax.experimental import pallas as pl
from jax.experimental.pallas import tpu as pltpu

# ---------------- config (scaled-down synthetic BERT) ----------------
B = 2            # batch
L = 16           # max_length (sequence length)
H = 32           # hidden size         (768 in real BERT)
HH = H // 2      # linear1/linear2 out (384 in real BERT)
NUM_HEADS = 2
HEAD_DIM = H // NUM_HEADS
FFN = 2 * H      # intermediate size
NUM_LAYERS = 2
VOCAB = 64
LN_EPS = 1e-12

BF16 = jnp.bfloat16


# ---------------- in-kernel math helpers ----------------
def _ln(x, g, b):
    mu = jnp.mean(x, axis=-1, keepdims=True)
    var = jnp.mean((x - mu) ** 2, axis=-1, keepdims=True)
    return (x - mu) * jax.lax.rsqrt(var + LN_EPS) * g + b


def _gelu(x):
    # tanh-approx GELU (BERT activation); HF default is erf-based.
    c = math.sqrt(2.0 / math.pi)
    return 0.5 * x * (1.0 + jnp.tanh(c * (x + 0.044715 * x * x * x)))


# ---------------- the single fused Pallas kernel ----------------
def bert_forward_kernel(emb_ref, mask_ref, lo_ref, hi_ref,
                        embg_ref, embb_ref,
                        wqkv_ref, bqkv_ref, wo_ref, bo_ref,
                        ln1g_ref, ln1b_ref, w1_ref, b1_ref, w2_ref, b2_ref,
                        ln2g_ref, ln2b_ref,
                        pw_ref, pb_ref, l1w_ref, l1b_ref, l2w_ref, l2b_ref,
                        seq_ref, cls_ref, ents_ref, ente_ref):
    # ---- embedding LayerNorm (f32 on the VPU) ----
    x = _ln(emb_ref[...], embg_ref[...], embb_ref[...])            # (B*L, H) f32

    # ---- additive attention mask, broadcast ONCE (hoisted out of all loops) ----
    mask_add = (1.0 - mask_ref[...]) * -10000.0                    # (B, L)
    mask_b = jnp.broadcast_to(mask_add[:, None, :], (B, L, L))     # (B, L, L)

    scale = 1.0 / math.sqrt(HEAD_DIM)

    # ---- transformer encoder layers (weights stacked on leading NUM_LAYERS axis,
    #      already bf16 in VMEM; all matmuls bf16-in / f32-acc) ----
    for l in range(NUM_LAYERS):
        wl = wqkv_ref[l]          # (3, H, H) bf16   leading-axis slices are free
        bl = bqkv_ref[l]          # (3, 1, H) f32
        x_b = x.astype(BF16)
        q2 = jnp.dot(x_b, wl[0], preferred_element_type=jnp.float32) + bl[0]
        k2 = jnp.dot(x_b, wl[1], preferred_element_type=jnp.float32) + bl[1]
        v2 = jnp.dot(x_b, wl[2], preferred_element_type=jnp.float32) + bl[2]
        q3 = q2.reshape(B, L, H)
        k3 = k2.reshape(B, L, H)
        v3 = v2.reshape(B, L, H)

        # per-head attention with leading-batch-dim einsums (batched over B)
        ctx_heads = []
        for h in range(NUM_HEADS):
            sl = slice(h * HEAD_DIM, (h + 1) * HEAD_DIM)
            s = jnp.einsum('bqd,bkd->bqk',
                           q3[:, :, sl].astype(BF16), k3[:, :, sl].astype(BF16),
                           preferred_element_type=jnp.float32) * scale + mask_b
            s = s - jnp.max(s, axis=-1, keepdims=True)
            p = jnp.exp(s)
            p = p * pl.reciprocal(jnp.sum(p, axis=-1, keepdims=True), approx=True)
            ctx_heads.append(jnp.einsum('bqk,bkd->bqd',
                                        p.astype(BF16), v3[:, :, sl].astype(BF16),
                                        preferred_element_type=jnp.float32))
        # single output projection: one (B*L, H) @ (H, H) matmul, no per-head K=16 dots
        ctx = jnp.concatenate(ctx_heads, axis=-1).reshape(B * L, H)
        attn = jnp.dot(ctx.astype(BF16), wo_ref[l],
                       preferred_element_type=jnp.float32) + bo_ref[l]

        x1 = _ln(x + attn, ln1g_ref[l], ln1b_ref[l])
        hdn = _gelu(jnp.dot(x1.astype(BF16), w1_ref[l],
                            preferred_element_type=jnp.float32) + b1_ref[l])
        ffn = jnp.dot(hdn.astype(BF16), w2_ref[l],
                      preferred_element_type=jnp.float32) + b2_ref[l]
        x = _ln(x1 + ffn, ln2g_ref[l], ln2b_ref[l])

    # ---- sequence output: single slab store ----
    seq_ref[...] = x

    # ---- pooler: tanh(CLS @ W + b); CLS via direct row pick (no selection matmul) ----
    cls = x.reshape(B, L, H)[:, 0, :]                              # (B, H)
    cls_ref[...] = jnp.tanh(
        jnp.dot(cls.astype(BF16), pw_ref[...],
                preferred_element_type=jnp.float32) + pb_ref[...])

    # ---- both entity spans fused into ONE (2B, B*L) @ (B*L, H) selection matmul ----
    col = jax.lax.broadcasted_iota(jnp.int32, (2 * B, B * L), 1)   # built once
    sel = jnp.logical_and(col >= lo_ref[...], col < hi_ref[...]).astype(jnp.float32)
    cnt = jnp.maximum(jnp.sum(sel, axis=-1, keepdims=True), 1.0)   # empty-span guard
    sums = jnp.dot(sel.astype(BF16), x.astype(BF16),
                   preferred_element_type=jnp.float32)             # (2B, H)
    means = sums * pl.reciprocal(cnt, approx=True)
    ents_ref[...] = jnp.tanh(
        jnp.dot(means[:B].astype(BF16), l1w_ref[...],
                preferred_element_type=jnp.float32) + l1b_ref[...])
    ente_ref[...] = jnp.tanh(
        jnp.dot(means[B:].astype(BF16), l2w_ref[...],
                preferred_element_type=jnp.float32) + l2b_ref[...])


# ---------------- wrapper ----------------
_VMEM = pl.BlockSpec(memory_space=pltpu.MemorySpace.VMEM)


def bert_sentence_encoder_forward(params, word, mask, pos1, pos1_end, pos2, pos2_end):
    # embedding gathers are glue (plain JAX); everything else is one Pallas call
    emb = (jnp.take(params['word_emb'], word, axis=0)
           + params['pos_emb'][None, :, :]
           + params['type_emb'][0][None, None, :])
    emb2d = emb.reshape(B * L, H).astype(jnp.float32)
    mask_f = mask.astype(jnp.float32)

    # global [lo, hi) row ranges for both spans (span1 rows then span2 rows)
    base = jnp.arange(B, dtype=jnp.int32) * L
    lo_g = jnp.concatenate([base + pos1.astype(jnp.int32) + 1,
                            base + pos2.astype(jnp.int32) + 1]).reshape(2 * B, 1)
    hi_g = jnp.concatenate([base + pos1_end.astype(jnp.int32),
                            base + pos2_end.astype(jnp.int32)]).reshape(2 * B, 1)

    bf = lambda a: a.astype(jnp.bfloat16)   # stage matmul weights as bf16 in VMEM

    inputs = (emb2d, mask_f, lo_g, hi_g,
              params['emb_ln_g'], params['emb_ln_b'],
              bf(params['wqkv']), params['bqkv'], bf(params['wo']), params['bo'],
              params['ln1_g'], params['ln1_b'], bf(params['w1']), params['b1'],
              bf(params['w2']), params['b2'], params['ln2_g'], params['ln2_b'],
              bf(params['pooler_w']), params['pooler_b'],
              bf(params['lin1_w']), params['lin1_b'],
              bf(params['lin2_w']), params['lin2_b'])

    seq2d, cls_out, ent_s, ent_e = pl.pallas_call(
        bert_forward_kernel,
        out_shape=(jax.ShapeDtypeStruct((B * L, H), jnp.float32),
                   jax.ShapeDtypeStruct((B, H), jnp.float32),
                   jax.ShapeDtypeStruct((B, HH), jnp.float32),
                   jax.ShapeDtypeStruct((B, HH), jnp.float32)),
        in_specs=[_VMEM] * len(inputs),
        out_specs=(_VMEM, _VMEM, _VMEM, _VMEM),
    )(*inputs)

    sqe_out = seq2d.reshape(B, L, H)
    return sqe_out, ent_s, ent_e, cls_out


# ---------------- parameter init (per-layer weights pre-stacked) ----------------
def init_params(key):
    keys = iter(jax.random.split(key, 64))

    def nrm(shape):
        return jax.random.normal(next(keys), shape, jnp.float32) * 0.02

    return {
        'word_emb': nrm((VOCAB, H)),
        'pos_emb': nrm((L, H)),
        'type_emb': nrm((2, H)),
        'emb_ln_g': jnp.ones((1, H), jnp.float32),
        'emb_ln_b': jnp.zeros((1, H), jnp.float32),
        # per-layer weights stacked along a leading NUM_LAYERS axis;
        # QKV stored as (NUM_LAYERS, 3, H, H) so Q/K/V split is a leading-axis slice
        'wqkv': nrm((NUM_LAYERS, 3, H, H)),
        'bqkv': jnp.zeros((NUM_LAYERS, 3, 1, H), jnp.float32),
        'wo': nrm((NUM_LAYERS, H, H)),
        'bo': jnp.zeros((NUM_LAYERS, 1, H), jnp.float32),
        'ln1_g': jnp.ones((NUM_LAYERS, 1, H), jnp.float32),
        'ln1_b': jnp.zeros((NUM_LAYERS, 1, H), jnp.float32),
        'w1': nrm((NUM_LAYERS, H, FFN)),
        'b1': jnp.zeros((NUM_LAYERS, 1, FFN), jnp.float32),
        'w2': nrm((NUM_LAYERS, FFN, H)),
        'b2': jnp.zeros((NUM_LAYERS, 1, H), jnp.float32),
        'ln2_g': jnp.ones((NUM_LAYERS, 1, H), jnp.float32),
        'ln2_b': jnp.zeros((NUM_LAYERS, 1, H), jnp.float32),
        'pooler_w': nrm((H, H)), 'pooler_b': jnp.zeros((1, H), jnp.float32),
        'lin1_w': nrm((H, HH)), 'lin1_b': jnp.zeros((1, HH), jnp.float32),
        'lin2_w': nrm((H, HH)), 'lin2_b': jnp.zeros((1, HH), jnp.float32),
    }


# ---------------- demo ----------------
if __name__ == "__main__":
    key = jax.random.PRNGKey(0)
    pkey, dkey = jax.random.split(key)
    params = init_params(pkey)

    word = jax.random.randint(dkey, (B, L), 0, VOCAB, dtype=jnp.int32)
    mask = jnp.concatenate(
        [jnp.ones((B, 12), jnp.int32), jnp.zeros((B, L - 12), jnp.int32)], axis=1)
    pos1 = jnp.array([1, 2], dtype=jnp.int32)
    pos1_end = jnp.array([5, 6], dtype=jnp.int32)
    pos2 = jnp.array([6, 7], dtype=jnp.int32)
    pos2_end = jnp.array([10, 11], dtype=jnp.int32)

    fwd = jax.jit(bert_sentence_encoder_forward)
    sqe_out, ent_s, ent_e, cls_out = fwd(
        params, word, mask, pos1, pos1_end, pos2, pos2_end)

    jax.block_until_ready((sqe_out, ent_s, ent_e, cls_out))
    assert sqe_out.shape == (B, L, H)
    assert ent_s.shape == (B, HH) and ent_e.shape == (B, HH)
    assert cls_out.shape == (B, H)
    assert bool(jnp.all(jnp.isfinite(sqe_out)))
    assert bool(jnp.all(jnp.isfinite(ent_s))) and bool(jnp.all(jnp.isfinite(ent_e)))
    assert bool(jnp.all(jnp.isfinite(cls_out)))
    print("KERNEL_OK")
</pallas_src>

<mosaic_0001>
module attributes {stable_mosaic.version = 11 : i64} {
  func.func @bert_forward_kernel(%arg0: memref<32x32xf32, #tpu.memory_space<vmem>>, %arg1: memref<2x16xf32, #tpu.memory_space<vmem>>, %arg2: memref<4x1xi32, #tpu.memory_space<vmem>>, %arg3: memref<4x1xi32, #tpu.memory_space<vmem>>, %arg4: memref<1x32xf32, #tpu.memory_space<vmem>>, %arg5: memref<1x32xf32, #tpu.memory_space<vmem>>, %arg6: memref<2x3x32x32xbf16, #tpu.memory_space<vmem>>, %arg7: memref<2x3x1x32xf32, #tpu.memory_space<vmem>>, %arg8: memref<2x32x32xbf16, #tpu.memory_space<vmem>>, %arg9: memref<2x1x32xf32, #tpu.memory_space<vmem>>, %arg10: memref<2x1x32xf32, #tpu.memory_space<vmem>>, %arg11: memref<2x1x32xf32, #tpu.memory_space<vmem>>, %arg12: memref<2x32x64xbf16, #tpu.memory_space<vmem>>, %arg13: memref<2x1x64xf32, #tpu.memory_space<vmem>>, %arg14: memref<2x64x32xbf16, #tpu.memory_space<vmem>>, %arg15: memref<2x1x32xf32, #tpu.memory_space<vmem>>, %arg16: memref<2x1x32xf32, #tpu.memory_space<vmem>>, %arg17: memref<2x1x32xf32, #tpu.memory_space<vmem>>, %arg18: memref<32x32xbf16, #tpu.memory_space<vmem>>, %arg19: memref<1x32xf32, #tpu.memory_space<vmem>>, %arg20: memref<32x16xbf16, #tpu.memory_space<vmem>>, %arg21: memref<1x16xf32, #tpu.memory_space<vmem>>, %arg22: memref<32x16xbf16, #tpu.memory_space<vmem>>, %arg23: memref<1x16xf32, #tpu.memory_space<vmem>>, %arg24: memref<32x32xf32, #tpu.memory_space<vmem>>, %arg25: memref<2x32xf32, #tpu.memory_space<vmem>>, %arg26: memref<2x16xf32, #tpu.memory_space<vmem>>, %arg27: memref<2x16xf32, #tpu.memory_space<vmem>>) attributes {dimension_semantics = [], scalar_prefetch = 0 : i64, scratch_operands = 0 : i64, tpu.core_type = #tpu.core_type<tc>} {
    %c0 = arith.constant 0 : index
    %c0_0 = arith.constant 0 : index
    %0 = vector.load %arg0[%c0, %c0_0] : memref<32x32xf32, #tpu.memory_space<vmem>>, vector<32x32xf32>
    %c0_1 = arith.constant 0 : index
    %c0_2 = arith.constant 0 : index
    %1 = vector.load %arg4[%c0_1, %c0_2] : memref<1x32xf32, #tpu.memory_space<vmem>>, vector<1x32xf32>
    %c0_3 = arith.constant 0 : index
    %c0_4 = arith.constant 0 : index
    %2 = vector.load %arg5[%c0_3, %c0_4] : memref<1x32xf32, #tpu.memory_space<vmem>>, vector<1x32xf32>
    %cst = arith.constant dense<0.000000e+00> : vector<32xf32>
    %3 = vector.multi_reduction <add>, %0, %cst [1] : vector<32x32xf32> to vector<32xf32>
    %4 = vector.shape_cast %3 : vector<32xf32> to vector<32x1xf32>
    %cst_5 = arith.constant 3.200000e+01 : f32
    %5 = vector.broadcast %cst_5 : f32 to vector<32x1xf32>
    %6 = arith.divf %4, %5 : vector<32x1xf32>
    %7 = vector.broadcast %6 : vector<32x1xf32> to vector<32x32xf32>
    %8 = arith.subf %0, %7 : vector<32x32xf32>
    %9 = arith.mulf %8, %8 : vector<32x32xf32>
    %cst_6 = arith.constant dense<0.000000e+00> : vector<32xf32>
    %10 = vector.multi_reduction <add>, %9, %cst_6 [1] : vector<32x32xf32> to vector<32xf32>
    %11 = vector.shape_cast %10 : vector<32xf32> to vector<32x1xf32>
    %cst_7 = arith.constant 3.200000e+01 : f32
    %12 = vector.broadcast %cst_7 : f32 to vector<32x1xf32>
    %13 = arith.divf %11, %12 : vector<32x1xf32>
    %14 = vector.broadcast %6 : vector<32x1xf32> to vector<32x32xf32>
    %15 = arith.subf %0, %14 : vector<32x32xf32>
    %cst_8 = arith.constant 9.99999996E-13 : f32
    %16 = vector.broadcast %cst_8 : f32 to vector<32x1xf32>
    %17 = arith.addf %13, %16 : vector<32x1xf32>
    %18 = math.rsqrt %17 : vector<32x1xf32>
    %19 = vector.broadcast %18 : vector<32x1xf32> to vector<32x32xf32>
    %20 = arith.mulf %15, %19 : vector<32x32xf32>
    %21 = vector.broadcast %1 : vector<1x32xf32> to vector<32x32xf32>
    %22 = arith.mulf %20, %21 : vector<32x32xf32>
    %23 = vector.broadcast %2 : vector<1x32xf32> to vector<32x32xf32>
    %24 = arith.addf %22, %23 : vector<32x32xf32>
    %c0_9 = arith.constant 0 : index
    %c0_10 = arith.constant 0 : index
    %25 = vector.load %arg1[%c0_9, %c0_10] : memref<2x16xf32, #tpu.memory_space<vmem>>, vector<2x16xf32>
    %cst_11 = arith.constant 1.000000e+00 : f32
    %26 = vector.broadcast %cst_11 : f32 to vector<2x16xf32>
    %27 = arith.subf %26, %25 : vector<2x16xf32>
    %cst_12 = arith.constant -1.000000e+04 : f32
    %28 = vector.broadcast %cst_12 : f32 to vector<2x16xf32>
    %29 = arith.mulf %27, %28 : vector<2x16xf32>
    %30 = vector.shape_cast %29 : vector<2x16xf32> to vector<2x1x16xf32>
    %31 = vector.shape_cast %30 : vector<2x1x16xf32> to vector<2x1x16xf32>
    %32 = vector.broadcast %31 : vector<2x1x16xf32> to vector<2x16x16xf32>
    %c0_13 = arith.constant 0 : index
    %c0_14 = arith.constant 0 : index
    %c0_15 = arith.constant 0 : index
    %c0_16 = arith.constant 0 : index
    %33 = vector.load %arg6[%c0_13, %c0_14, %c0_15, %c0_16] : memref<2x3x32x32xbf16, #tpu.memory_space<vmem>>, vector<1x3x32x32xbf16>
    %34 = vector.shape_cast %33 : vector<1x3x32x32xbf16> to vector<3x32x32xbf16>
    %c0_17 = arith.constant 0 : index
    %c0_18 = arith.constant 0 : index
    %c0_19 = arith.constant 0 : index
    %c0_20 = arith.constant 0 : index
    %35 = vector.load %arg7[%c0_17, %c0_18, %c0_19, %c0_20] : memref<2x3x1x32xf32, #tpu.memory_space<vmem>>, vector<1x3x1x32xf32>
    %36 = vector.shape_cast %35 : vector<1x3x1x32xf32> to vector<3x1x32xf32>
    %37 = arith.truncf %24 : vector<32x32xf32> to vector<32x32xbf16>
    %38 = vector.extract_strided_slice %34 {offsets = [0, 0, 0], sizes = [1, 32, 32], strides = [1, 1, 1]} : vector<3x32x32xbf16> to vector<1x32x32xbf16>
    %39 = vector.shape_cast %38 : vector<1x32x32xbf16> to vector<32x32xbf16>
    %cst_21 = arith.constant dense<0.000000e+00> : vector<32x32xf32>
    %40 = tpu.matmul %37, %39, %cst_21 {dimension_numbers = #tpu.dot_dimension_numbers<[1], [0], [0], [1], [0, 0, 1, 1], [], []>} : vector<32x32xbf16>, vector<32x32xbf16>, vector<32x32xf32> -> vector<32x32xf32>
    %41 = vector.extract_strided_slice %36 {offsets = [0, 0, 0], sizes = [1, 1, 32], strides = [1, 1, 1]} : vector<3x1x32xf32> to vector<1x1x32xf32>
    %42 = vector.shape_cast %41 : vector<1x1x32xf32> to vector<1x32xf32>
    %43 = vector.broadcast %42 : vector<1x32xf32> to vector<32x32xf32>
    %44 = arith.addf %40, %43 : vector<32x32xf32>
    %45 = vector.extract_strided_slice %34 {offsets = [1, 0, 0], sizes = [1, 32, 32], strides = [1, 1, 1]} : vector<3x32x32xbf16> to vector<1x32x32xbf16>
    %46 = vector.shape_cast %45 : vector<1x32x32xbf16> to vector<32x32xbf16>
    %cst_22 = arith.constant dense<0.000000e+00> : vector<32x32xf32>
    %47 = tpu.matmul %37, %46, %cst_22 {dimension_numbers = #tpu.dot_dimension_numbers<[1], [0], [0], [1], [0, 0, 1, 1], [], []>} : vector<32x32xbf16>, vector<32x32xbf16>, vector<32x32xf32> -> vector<32x32xf32>
    %48 = vector.extract_strided_slice %36 {offsets = [1, 0, 0], sizes = [1, 1, 32], strides = [1, 1, 1]} : vector<3x1x32xf32> to vector<1x1x32xf32>
    %49 = vector.shape_cast %48 : vector<1x1x32xf32> to vector<1x32xf32>
    %50 = vector.broadcast %49 : vector<1x32xf32> to vector<32x32xf32>
    %51 = arith.addf %47, %50 : vector<32x32xf32>
    %52 = vector.extract_strided_slice %34 {offsets = [2, 0, 0], sizes = [1, 32, 32], strides = [1, 1, 1]} : vector<3x32x32xbf16> to vector<1x32x32xbf16>
    %53 = vector.shape_cast %52 : vector<1x32x32xbf16> to vector<32x32xbf16>
    %cst_23 = arith.constant dense<0.000000e+00> : vector<32x32xf32>
    %54 = tpu.matmul %37, %53, %cst_23 {dimension_numbers = #tpu.dot_dimension_numbers<[1], [0], [0], [1], [0, 0, 1, 1], [], []>} : vector<32x32xbf16>, vector<32x32xbf16>, vector<32x32xf32> -> vector<32x32xf32>
    %55 = vector.extract_strided_slice %36 {offsets = [2, 0, 0], sizes = [1, 1, 32], strides = [1, 1, 1]} : vector<3x1x32xf32> to vector<1x1x32xf32>
    %56 = vector.shape_cast %55 : vector<1x1x32xf32> to vector<1x32xf32>
    %57 = vector.broadcast %56 : vector<1x32xf32> to vector<32x32xf32>
    %58 = arith.addf %54, %57 : vector<32x32xf32>
    %59 = vector.shape_cast %44 : vector<32x32xf32> to vector<2x16x32xf32>
    %60 = vector.shape_cast %51 : vector<32x32xf32> to vector<2x16x32xf32>
    %61 = vector.shape_cast %58 : vector<32x32xf32> to vector<2x16x32xf32>
    %62 = vector.extract_strided_slice %59 {offsets = [0, 0, 0], sizes = [2, 16, 16], strides = [1, 1, 1]} : vector<2x16x32xf32> to vector<2x16x16xf32>
    %63 = arith.truncf %62 : vector<2x16x16xf32> to vector<2x16x16xbf16>
    %64 = vector.extract_strided_slice %60 {offsets = [0, 0, 0], sizes = [2, 16, 16], strides = [1, 1, 1]} : vector<2x16x32xf32> to vector<2x16x16xf32>
    %65 = arith.truncf %64 : vector<2x16x16xf32> to vector<2x16x16xbf16>
    "tpu.trace_start"() <{level = 10 : i32, message = "bqd,bkd->bqk"}> : () -> ()
    %cst_24 = arith.constant dense<0.000000e+00> : vector<2x16x16xf32>
    %66 = tpu.matmul %63, %65, %cst_24 {dimension_numbers = #tpu.dot_dimension_numbers<[2], [2], [1], [1], [0, 0, 0, 1, 1, 1], [0], [0]>} : vector<2x16x16xbf16>, vector<2x16x16xbf16>, vector<2x16x16xf32> -> vector<2x16x16xf32>
    "tpu.trace_stop"() : () -> ()
    %cst_25 = arith.constant 2.500000e-01 : f32
    %67 = vector.broadcast %cst_25 : f32 to vector<2x16x16xf32>
    %68 = arith.mulf %66, %67 : vector<2x16x16xf32>
    %69 = arith.addf %68, %32 : vector<2x16x16xf32>
    %cst_26 = arith.constant dense<0xFF800000> : vector<2x16xf32>
    %70 = vector.multi_reduction <maximumf>, %69, %cst_26 [2] : vector<2x16x16xf32> to vector<2x16xf32>
    %71 = vector.shape_cast %70 : vector<2x16xf32> to vector<2x16x1xf32>
    %72 = vector.broadcast %71 : vector<2x16x1xf32> to vector<2x16x16xf32>
    %73 = arith.subf %69, %72 : vector<2x16x16xf32>
    %74 = math.exp %73 : vector<2x16x16xf32>
    %cst_27 = arith.constant dense<0.000000e+00> : vector<2x16xf32>
    %75 = vector.multi_reduction <add>, %74, %cst_27 [2] : vector<2x16x16xf32> to vector<2x16xf32>
    %76 = vector.shape_cast %75 : vector<2x16xf32> to vector<2x16x1xf32>
    %77 = tpu.reciprocal %76 {approx = true} : vector<2x16x1xf32> -> vector<2x16x1xf32>
    %78 = vector.broadcast %77 : vector<2x16x1xf32> to vector<2x16x16xf32>
    %79 = arith.mulf %74, %78 : vector<2x16x16xf32>
    %80 = arith.truncf %79 : vector<2x16x16xf32> to vector<2x16x16xbf16>
    %81 = vector.extract_strided_slice %61 {offsets = [0, 0, 0], sizes = [2, 16, 16], strides = [1, 1, 1]} : vector<2x16x32xf32> to vector<2x16x16xf32>
    %82 = arith.truncf %81 : vector<2x16x16xf32> to vector<2x16x16xbf16>
    "tpu.trace_start"() <{level = 10 : i32, message = "bqk,bkd->bqd"}> : () -> ()
    %cst_28 = arith.constant dense<0.000000e+00> : vector<2x16x16xf32>
    %83 = tpu.matmul %80, %82, %cst_28 {dimension_numbers = #tpu.dot_dimension_numbers<[2], [1], [1], [2], [0, 0, 0, 1, 1, 2], [0], [0]>} : vector<2x16x16xbf16>, vector<2x16x16xbf16>, vector<2x16x16xf32> -> vector<2x16x16xf32>
    "tpu.trace_stop"() : () -> ()
    %84 = vector.extract_strided_slice %59 {offsets = [0, 0, 16], sizes = [2, 16, 16], strides = [1, 1, 1]} : vector<2x16x32xf32> to vector<2x16x16xf32>
    %85 = arith.truncf %84 : vector<2x16x16xf32> to vector<2x16x16xbf16>
    %86 = vector.extract_strided_slice %60 {offsets = [0, 0, 16], sizes = [2, 16, 16], strides = [1, 1, 1]} : vector<2x16x32xf32> to vector<2x16x16xf32>
    %87 = arith.truncf %86 : vector<2x16x16xf32> to vector<2x16x16xbf16>
    "tpu.trace_start"() <{level = 10 : i32, message = "bqd,bkd->bqk"}> : () -> ()
    %cst_29 = arith.constant dense<0.000000e+00> : vector<2x16x16xf32>
    %88 = tpu.matmul %85, %87, %cst_29 {dimension_numbers = #tpu.dot_dimension_numbers<[2], [2], [1], [1], [0, 0, 0, 1, 1, 1], [0], [0]>} : vector<2x16x16xbf16>, vector<2x16x16xbf16>, vector<2x16x16xf32> -> vector<2x16x16xf32>
    "tpu.trace_stop"() : () -> ()
    %cst_30 = arith.constant 2.500000e-01 : f32
    %89 = vector.broadcast %cst_30 : f32 to vector<2x16x16xf32>
    %90 = arith.mulf %88, %89 : vector<2x16x16xf32>
    %91 = arith.addf %90, %32 : vector<2x16x16xf32>
    %cst_31 = arith.constant dense<0xFF800000> : vector<2x16xf32>
    %92 = vector.multi_reduction <maximumf>, %91, %cst_31 [2] : vector<2x16x16xf32> to vector<2x16xf32>
    %93 = vector.shape_cast %92 : vector<2x16xf32> to vector<2x16x1xf32>
    %94 = vector.broadcast %93 : vector<2x16x1xf32> to vector<2x16x16xf32>
    %95 = arith.subf %91, %94 : vector<2x16x16xf32>
    %96 = math.exp %95 : vector<2x16x16xf32>
    %cst_32 = arith.constant dense<0.000000e+00> : vector<2x16xf32>
    %97 = vector.multi_reduction <add>, %96, %cst_32 [2] : vector<2x16x16xf32> to vector<2x16xf32>
    %98 = vector.shape_cast %97 : vector<2x16xf32> to vector<2x16x1xf32>
    %99 = tpu.reciprocal %98 {approx = true} : vector<2x16x1xf32> -> vector<2x16x1xf32>
    %100 = vector.broadcast %99 : vector<2x16x1xf32> to vector<2x16x16xf32>
    %101 = arith.mulf %96, %100 : vector<2x16x16xf32>
    %102 = arith.truncf %101 : vector<2x16x16xf32> to vector<2x16x16xbf16>
    %103 = vector.extract_strided_slice %61 {offsets = [0, 0, 16], sizes = [2, 16, 16], strides = [1, 1, 1]} : vector<2x16x32xf32> to vector<2x16x16xf32>
    %104 = arith.truncf %103 : vector<2x16x16xf32> to vector<2x16x16xbf16>
    "tpu.trace_start"() <{level = 10 : i32, message = "bqk,bkd->bqd"}> : () -> ()
    %cst_33 = arith.constant dense<0.000000e+00> : vector<2x16x16xf32>
    %105 = tpu.matmul %102, %104, %cst_33 {dimension_numbers = #tpu.dot_dimension_numbers<[2], [1], [1], [2], [0, 0, 0, 1, 1, 2], [0], [0]>} : vector<2x16x16xbf16>, vector<2x16x16xbf16>, vector<2x16x16xf32> -> vector<2x16x16xf32>
    "tpu.trace_stop"() : () -> ()
    %106 = tpu.concatenate %83, %105 in 2 : vector<2x16x16xf32>, vector<2x16x16xf32> -> vector<2x16x32xf32>
    %107 = vector.shape_cast %106 : vector<2x16x32xf32> to vector<32x32xf32>
    %108 = arith.truncf %107 : vector<32x32xf32> to vector<32x32xbf16>
    %c0_34 = arith.constant 0 : index
    %c0_35 = arith.constant 0 : index
    %c0_36 = arith.constant 0 : index
    %109 = vector.load %arg8[%c0_34, %c0_35, %c0_36] : memref<2x32x32xbf16, #tpu.memory_space<vmem>>, vector<1x32x32xbf16>
    %110 = vector.shape_cast %109 : vector<1x32x32xbf16> to vector<32x32xbf16>
    %cst_37 = arith.constant dense<0.000000e+00> : vector<32x32xf32>
    %111 = tpu.matmul %108, %110, %cst_37 {dimension_numbers = #tpu.dot_dimension_numbers<[1], [0], [0], [1], [0, 0, 1, 1], [], []>} : vector<32x32xbf16>, vector<32x32xbf16>, vector<32x32xf32> -> vector<32x32xf32>
    %c0_38 = arith.constant 0 : index
    %c0_39 = arith.constant 0 : index
    %c0_40 = arith.constant 0 : index
    %112 = vector.load %arg9[%c0_38, %c0_39, %c0_40] : memref<2x1x32xf32, #tpu.memory_space<vmem>>, vector<1x1x32xf32>
    %113 = vector.shape_cast %112 : vector<1x1x32xf32> to vector<1x32xf32>
    %114 = vector.broadcast %113 : vector<1x32xf32> to vector<32x32xf32>
    %115 = arith.addf %111, %114 : vector<32x32xf32>
    %116 = arith.addf %24, %115 : vector<32x32xf32>
    %c0_41 = arith.constant 0 : index
    %c0_42 = arith.constant 0 : index
    %c0_43 = arith.constant 0 : index
    %117 = vector.load %arg10[%c0_41, %c0_42, %c0_43] : memref<2x1x32xf32, #tpu.memory_space<vmem>>, vector<1x1x32xf32>
    %118 = vector.shape_cast %117 : vector<1x1x32xf32> to vector<1x32xf32>
    %c0_44 = arith.constant 0 : index
    %c0_45 = arith.constant 0 : index
    %c0_46 = arith.constant 0 : index
    %119 = vector.load %arg11[%c0_44, %c0_45, %c0_46] : memref<2x1x32xf32, #tpu.memory_space<vmem>>, vector<1x1x32xf32>
    %120 = vector.shape_cast %119 : vector<1x1x32xf32> to vector<1x32xf32>
    %cst_47 = arith.constant dense<0.000000e+00> : vector<32xf32>
    %121 = vector.multi_reduction <add>, %116, %cst_47 [1] : vector<32x32xf32> to vector<32xf32>
    %122 = vector.shape_cast %121 : vector<32xf32> to vector<32x1xf32>
    %cst_48 = arith.constant 3.200000e+01 : f32
    %123 = vector.broadcast %cst_48 : f32 to vector<32x1xf32>
    %124 = arith.divf %122, %123 : vector<32x1xf32>
    %125 = vector.broadcast %124 : vector<32x1xf32> to vector<32x32xf32>
    %126 = arith.subf %116, %125 : vector<32x32xf32>
    %127 = arith.mulf %126, %126 : vector<32x32xf32>
    %cst_49 = arith.constant dense<0.000000e+00> : vector<32xf32>
    %128 = vector.multi_reduction <add>, %127, %cst_49 [1] : vector<32x32xf32> to vector<32xf32>
    %129 = vector.shape_cast %128 : vector<32xf32> to vector<32x1xf32>
    %cst_50 = arith.constant 3.200000e+01 : f32
    %130 = vector.broadcast %cst_50 : f32 to vector<32x1xf32>
    %131 = arith.divf %129, %130 : vector<32x1xf32>
    %132 = vector.broadcast %124 : vector<32x1xf32> to vector<32x32xf32>
    %133 = arith.subf %116, %132 : vector<32x32xf32>
    %cst_51 = arith.constant 9.99999996E-13 : f32
    %134 = vector.broadcast %cst_51 : f32 to vector<32x1xf32>
    %135 = arith.addf %131, %134 : vector<32x1xf32>
    %136 = math.rsqrt %135 : vector<32x1xf32>
    %137 = vector.broadcast %136 : vector<32x1xf32> to vector<32x32xf32>
    %138 = arith.mulf %133, %137 : vector<32x32xf32>
    %139 = vector.broadcast %118 : vector<1x32xf32> to vector<32x32xf32>
    %140 = arith.mulf %138, %139 : vector<32x32xf32>
    %141 = vector.broadcast %120 : vector<1x32xf32> to vector<32x32xf32>
    %142 = arith.addf %140, %141 : vector<32x32xf32>
    %143 = arith.truncf %142 : vector<32x32xf32> to vector<32x32xbf16>
    %c0_52 = arith.constant 0 : index
    %c0_53 = arith.constant 0 : index
    %c0_54 = arith.constant 0 : index
    %144 = vector.load %arg12[%c0_52, %c0_53, %c0_54] : memref<2x32x64xbf16, #tpu.memory_space<vmem>>, vector<1x32x64xbf16>
    %145 = vector.shape_cast %144 : vector<1x32x64xbf16> to vector<32x64xbf16>
    %cst_55 = arith.constant dense<0.000000e+00> : vector<32x64xf32>
    %146 = tpu.matmul %143, %145, %cst_55 {dimension_numbers = #tpu.dot_dimension_numbers<[1], [0], [0], [1], [0, 0, 1, 1], [], []>} : vector<32x32xbf16>, vector<32x64xbf16>, vector<32x64xf32> -> vector<32x64xf32>
    %c0_56 = arith.constant 0 : index
    %c0_57 = arith.constant 0 : index
    %c0_58 = arith.constant 0 : index
    %147 = vector.load %arg13[%c0_56, %c0_57, %c0_58] : memref<2x1x64xf32, #tpu.memory_space<vmem>>, vector<1x1x64xf32>
    %148 = vector.shape_cast %147 : vector<1x1x64xf32> to vector<1x64xf32>
    %149 = vector.broadcast %148 : vector<1x64xf32> to vector<32x64xf32>
    %150 = arith.addf %146, %149 : vector<32x64xf32>
    %cst_59 = arith.constant 5.000000e-01 : f32
    %151 = vector.broadcast %cst_59 : f32 to vector<32x64xf32>
    %152 = arith.mulf %151, %150 : vector<32x64xf32>
    %cst_60 = arith.constant 4.471500e-02 : f32
    %153 = vector.broadcast %cst_60 : f32 to vector<32x64xf32>
    %154 = arith.mulf %153, %150 : vector<32x64xf32>
    %155 = arith.mulf %154, %150 : vector<32x64xf32>
    %156 = arith.mulf %155, %150 : vector<32x64xf32>
    %157 = arith.addf %150, %156 : vector<32x64xf32>
    %cst_61 = arith.constant 0.797884583 : f32
    %158 = vector.broadcast %cst_61 : f32 to vector<32x64xf32>
    %159 = arith.mulf %158, %157 : vector<32x64xf32>
    %160 = math.tanh %159 : vector<32x64xf32>
    %cst_62 = arith.constant 1.000000e+00 : f32
    %161 = vector.broadcast %cst_62 : f32 to vector<32x64xf32>
    %162 = arith.addf %161, %160 : vector<32x64xf32>
    %163 = arith.mulf %152, %162 : vector<32x64xf32>
    %164 = arith.truncf %163 : vector<32x64xf32> to vector<32x64xbf16>
    %c0_63 = arith.constant 0 : index
    %c0_64 = arith.constant 0 : index
    %c0_65 = arith.constant 0 : index
    %165 = vector.load %arg14[%c0_63, %c0_64, %c0_65] : memref<2x64x32xbf16, #tpu.memory_space<vmem>>, vector<1x64x32xbf16>
    %166 = vector.shape_cast %165 : vector<1x64x32xbf16> to vector<64x32xbf16>
    %cst_66 = arith.constant dense<0.000000e+00> : vector<32x32xf32>
    %167 = tpu.matmul %164, %166, %cst_66 {dimension_numbers = #tpu.dot_dimension_numbers<[1], [0], [0], [1], [0, 0, 1, 1], [], []>} : vector<32x64xbf16>, vector<64x32xbf16>, vector<32x32xf32> -> vector<32x32xf32>
    %c0_67 = arith.constant 0 : index
    %c0_68 = arith.constant 0 : index
    %c0_69 = arith.constant 0 : index
    %168 = vector.load %arg15[%c0_67, %c0_68, %c0_69] : memref<2x1x32xf32, #tpu.memory_space<vmem>>, vector<1x1x32xf32>
    %169 = vector.shape_cast %168 : vector<1x1x32xf32> to vector<1x32xf32>
    %170 = vector.broadcast %169 : vector<1x32xf32> to vector<32x32xf32>
    %171 = arith.addf %167, %170 : vector<32x32xf32>
    %172 = arith.addf %142, %171 : vector<32x32xf32>
    %c0_70 = arith.constant 0 : index
    %c0_71 = arith.constant 0 : index
    %c0_72 = arith.constant 0 : index
    %173 = vector.load %arg16[%c0_70, %c0_71, %c0_72] : memref<2x1x32xf32, #tpu.memory_space<vmem>>, vector<1x1x32xf32>
    %174 = vector.shape_cast %173 : vector<1x1x32xf32> to vector<1x32xf32>
    %c0_73 = arith.constant 0 : index
    %c0_74 = arith.constant 0 : index
    %c0_75 = arith.constant 0 : index
    %175 = vector.load %arg17[%c0_73, %c0_74, %c0_75] : memref<2x1x32xf32, #tpu.memory_space<vmem>>, vector<1x1x32xf32>
    %176 = vector.shape_cast %175 : vector<1x1x32xf32> to vector<1x32xf32>
    %cst_76 = arith.constant dense<0.000000e+00> : vector<32xf32>
    %177 = vector.multi_reduction <add>, %172, %cst_76 [1] : vector<32x32xf32> to vector<32xf32>
    %178 = vector.shape_cast %177 : vector<32xf32> to vector<32x1xf32>
    %cst_77 = arith.constant 3.200000e+01 : f32
    %179 = vector.broadcast %cst_77 : f32 to vector<32x1xf32>
    %180 = arith.divf %178, %179 : vector<32x1xf32>
    %181 = vector.broadcast %180 : vector<32x1xf32> to vector<32x32xf32>
    %182 = arith.subf %172, %181 : vector<32x32xf32>
    %183 = arith.mulf %182, %182 : vector<32x32xf32>
    %cst_78 = arith.constant dense<0.000000e+00> : vector<32xf32>
    %184 = vector.multi_reduction <add>, %183, %cst_78 [1] : vector<32x32xf32> to vector<32xf32>
    %185 = vector.shape_cast %184 : vector<32xf32> to vector<32x1xf32>
    %cst_79 = arith.constant 3.200000e+01 : f32
    %186 = vector.broadcast %cst_79 : f32 to vector<32x1xf32>
    %187 = arith.divf %185, %186 : vector<32x1xf32>
    %188 = vector.broadcast %180 : vector<32x1xf32> to vector<32x32xf32>
    %189 = arith.subf %172, %188 : vector<32x32xf32>
    %cst_80 = arith.constant 9.99999996E-13 : f32
    %190 = vector.broadcast %cst_80 : f32 to vector<32x1xf32>
    %191 = arith.addf %187, %190 : vector<32x1xf32>
    %192 = math.rsqrt %191 : vector<32x1xf32>
    %193 = vector.broadcast %192 : vector<32x1xf32> to vector<32x32xf32>
    %194 = arith.mulf %189, %193 : vector<32x32xf32>
    %195 = vector.broadcast %174 : vector<1x32xf32> to vector<32x32xf32>
    %196 = arith.mulf %194, %195 : vector<32x32xf32>
    %197 = vector.broadcast %176 : vector<1x32xf32> to vector<32x32xf32>
    %198 = arith.addf %196, %197 : vector<32x32xf32>
    %c1 = arith.constant 1 : index
    %c0_81 = arith.constant 0 : index
    %c0_82 = arith.constant 0 : index
    %c0_83 = arith.constant 0 : index
    %199 = vector.load %arg6[%c1, %c0_81, %c0_82, %c0_83] : memref<2x3x32x32xbf16, #tpu.memory_space<vmem>>, vector<1x3x32x32xbf16>
    %200 = vector.shape_cast %199 : vector<1x3x32x32xbf16> to vector<3x32x32xbf16>
    %c1_84 = arith.constant 1 : index
    %c0_85 = arith.constant 0 : index
    %c0_86 = arith.constant 0 : index
    %c0_87 = arith.constant 0 : index
    %201 = vector.load %arg7[%c1_84, %c0_85, %c0_86, %c0_87] : memref<2x3x1x32xf32, #tpu.memory_space<vmem>>, vector<1x3x1x32xf32>
    %202 = vector.shape_cast %201 : vector<1x3x1x32xf32> to vector<3x1x32xf32>
    %203 = arith.truncf %198 : vector<32x32xf32> to vector<32x32xbf16>
    %204 = vector.extract_strided_slice %200 {offsets = [0, 0, 0], sizes = [1, 32, 32], strides = [1, 1, 1]} : vector<3x32x32xbf16> to vector<1x32x32xbf16>
    %205 = vector.shape_cast %204 : vector<1x32x32xbf16> to vector<32x32xbf16>
    %cst_88 = arith.constant dense<0.000000e+00> : vector<32x32xf32>
    %206 = tpu.matmul %203, %205, %cst_88 {dimension_numbers = #tpu.dot_dimension_numbers<[1], [0], [0], [1], [0, 0, 1, 1], [], []>} : vector<32x32xbf16>, vector<32x32xbf16>, vector<32x32xf32> -> vector<32x32xf32>
    %207 = vector.extract_strided_slice %202 {offsets = [0, 0, 0], sizes = [1, 1, 32], strides = [1, 1, 1]} : vector<3x1x32xf32> to vector<1x1x32xf32>
    %208 = vector.shape_cast %207 : vector<1x1x32xf32> to vector<1x32xf32>
    %209 = vector.broadcast %208 : vector<1x32xf32> to vector<32x32xf32>
    %210 = arith.addf %206, %209 : vector<32x32xf32>
    %211 = vector.extract_strided_slice %200 {offsets = [1, 0, 0], sizes = [1, 32, 32], strides = [1, 1, 1]} : vector<3x32x32xbf16> to vector<1x32x32xbf16>
    %212 = vector.shape_cast %211 : vector<1x32x32xbf16> to vector<32x32xbf16>
    %cst_89 = arith.constant dense<0.000000e+00> : vector<32x32xf32>
    %213 = tpu.matmul %203, %212, %cst_89 {dimension_numbers = #tpu.dot_dimension_numbers<[1], [0], [0], [1], [0, 0, 1, 1], [], []>} : vector<32x32xbf16>, vector<32x32xbf16>, vector<32x32xf32> -> vector<32x32xf32>
    %214 = vector.extract_strided_slice %202 {offsets = [1, 0, 0], sizes = [1, 1, 32], strides = [1, 1, 1]} : vector<3x1x32xf32> to vector<1x1x32xf32>
    %215 = vector.shape_cast %214 : vector<1x1x32xf32> to vector<1x32xf32>
    %216 = vector.broadcast %215 : vector<1x32xf32> to vector<32x32xf32>
    %217 = arith.addf %213, %216 : vector<32x32xf32>
    %218 = vector.extract_strided_slice %200 {offsets = [2, 0, 0], sizes = [1, 32, 32], strides = [1, 1, 1]} : vector<3x32x32xbf16> to vector<1x32x32xbf16>
    %219 = vector.shape_cast %218 : vector<1x32x32xbf16> to vector<32x32xbf16>
    %cst_90 = arith.constant dense<0.000000e+00> : vector<32x32xf32>
    %220 = tpu.matmul %203, %219, %cst_90 {dimension_numbers = #tpu.dot_dimension_numbers<[1], [0], [0], [1], [0, 0, 1, 1], [], []>} : vector<32x32xbf16>, vector<32x32xbf16>, vector<32x32xf32> -> vector<32x32xf32>
    %221 = vector.extract_strided_slice %202 {offsets = [2, 0, 0], sizes = [1, 1, 32], strides = [1, 1, 1]} : vector<3x1x32xf32> to vector<1x1x32xf32>
    %222 = vector.shape_cast %221 : vector<1x1x32xf32> to vector<1x32xf32>
    %223 = vector.broadcast %222 : vector<1x32xf32> to vector<32x32xf32>
    %224 = arith.addf %220, %223 : vector<32x32xf32>
    %225 = vector.shape_cast %210 : vector<32x32xf32> to vector<2x16x32xf32>
    %226 = vector.shape_cast %217 : vector<32x32xf32> to vector<2x16x32xf32>
    %227 = vector.shape_cast %224 : vector<32x32xf32> to vector<2x16x32xf32>
    %228 = vector.extract_strided_slice %225 {offsets = [0, 0, 0], sizes = [2, 16, 16], strides = [1, 1, 1]} : vector<2x16x32xf32> to vector<2x16x16xf32>
    %229 = arith.truncf %228 : vector<2x16x16xf32> to vector<2x16x16xbf16>
    %230 = vector.extract_strided_slice %226 {offsets = [0, 0, 0], sizes = [2, 16, 16], strides = [1, 1, 1]} : vector<2x16x32xf32> to vector<2x16x16xf32>
    %231 = arith.truncf %230 : vector<2x16x16xf32> to vector<2x16x16xbf16>
    "tpu.trace_start"() <{level = 10 : i32, message = "bqd,bkd->bqk"}> : () -> ()
    %cst_91 = arith.constant dense<0.000000e+00> : vector<2x16x16xf32>
    %232 = tpu.matmul %229, %231, %cst_91 {dimension_numbers = #tpu.dot_dimension_numbers<[2], [2], [1], [1], [0, 0, 0, 1, 1, 1], [0], [0]>} : vector<2x16x16xbf16>, vector<2x16x16xbf16>, vector<2x16x16xf32> -> vector<2x16x16xf32>
    "tpu.trace_stop"() : () -> ()
    %cst_92 = arith.constant 2.500000e-01 : f32
    %233 = vector.broadcast %cst_92 : f32 to vector<2x16x16xf32>
    %234 = arith.mulf %232, %233 : vector<2x16x16xf32>
    %235 = arith.addf %234, %32 : vector<2x16x16xf32>
    %cst_93 = arith.constant dense<0xFF800000> : vector<2x16xf32>
    %236 = vector.multi_reduction <maximumf>, %235, %cst_93 [2] : vector<2x16x16xf32> to vector<2x16xf32>
    %237 = vector.shape_cast %236 : vector<2x16xf32> to vector<2x16x1xf32>
    %238 = vector.broadcast %237 : vector<2x16x1xf32> to vector<2x16x16xf32>
    %239 = arith.subf %235, %238 : vector<2x16x16xf32>
    %240 = math.exp %239 : vector<2x16x16xf32>
    %cst_94 = arith.constant dense<0.000000e+00> : vector<2x16xf32>
    %241 = vector.multi_reduction <add>, %240, %cst_94 [2] : vector<2x16x16xf32> to vector<2x16xf32>
    %242 = vector.shape_cast %241 : vector<2x16xf32> to vector<2x16x1xf32>
    %243 = tpu.reciprocal %242 {approx = true} : vector<2x16x1xf32> -> vector<2x16x1xf32>
    %244 = vector.broadcast %243 : vector<2x16x1xf32> to vector<2x16x16xf32>
    %245 = arith.mulf %240, %244 : vector<2x16x16xf32>
    %246 = arith.truncf %245 : vector<2x16x16xf32> to vector<2x16x16xbf16>
    %247 = vector.extract_strided_slice %227 {offsets = [0, 0, 0], sizes = [2, 16, 16], strides = [1, 1, 1]} : vector<2x16x32xf32> to vector<2x16x16xf32>
    %248 = arith.truncf %247 : vector<2x16x16xf32> to vector<2x16x16xbf16>
    "tpu.trace_start"() <{level = 10 : i32, message = "bqk,bkd->bqd"}> : () -> ()
    %cst_95 = arith.constant dense<0.000000e+00> : vector<2x16x16xf32>
    %249 = tpu.matmul %246, %248, %cst_95 {dimension_numbers = #tpu.dot_dimension_numbers<[2], [1], [1], [2], [0, 0, 0, 1, 1, 2], [0], [0]>} : vector<2x16x16xbf16>, vector<2x16x16xbf16>, vector<2x16x16xf32> -> vector<2x16x16xf32>
    "tpu.trace_stop"() : () -> ()
    %250 = vector.extract_strided_slice %225 {offsets = [0, 0, 16], sizes = [2, 16, 16], strides = [1, 1, 1]} : vector<2x16x32xf32> to vector<2x16x16xf32>
    %251 = arith.truncf %250 : vector<2x16x16xf32> to vector<2x16x16xbf16>
    %252 = vector.extract_strided_slice %226 {offsets = [0, 0, 16], sizes = [2, 16, 16], strides = [1, 1, 1]} : vector<2x16x32xf32> to vector<2x16x16xf32>
    %253 = arith.truncf %252 : vector<2x16x16xf32> to vector<2x16x16xbf16>
    "tpu.trace_start"() <{level = 10 : i32, message = "bqd,bkd->bqk"}> : () -> ()
    %cst_96 = arith.constant dense<0.000000e+00> : vector<2x16x16xf32>
    %254 = tpu.matmul %251, %253, %cst_96 {dimension_numbers = #tpu.dot_dimension_numbers<[2], [2], [1], [1], [0, 0, 0, 1, 1, 1], [0], [0]>} : vector<2x16x16xbf16>, vector<2x16x16xbf16>, vector<2x16x16xf32> -> vector<2x16x16xf32>
    "tpu.trace_stop"() : () -> ()
    %cst_97 = arith.constant 2.500000e-01 : f32
    %255 = vector.broadcast %cst_97 : f32 to vector<2x16x16xf32>
    %256 = arith.mulf %254, %255 : vector<2x16x16xf32>
    %257 = arith.addf %256, %32 : vector<2x16x16xf32>
    %cst_98 = arith.constant dense<0xFF800000> : vector<2x16xf32>
    %258 = vector.multi_reduction <maximumf>, %257, %cst_98 [2] : vector<2x16x16xf32> to vector<2x16xf32>
    %259 = vector.shape_cast %258 : vector<2x16xf32> to vector<2x16x1xf32>
    %260 = vector.broadcast %259 : vector<2x16x1xf32> to vector<2x16x16xf32>
    %261 = arith.subf %257, %260 : vector<2x16x16xf32>
    %262 = math.exp %261 : vector<2x16x16xf32>
    %cst_99 = arith.constant dense<0.000000e+00> : vector<2x16xf32>
    %263 = vector.multi_reduction <add>, %262, %cst_99 [2] : vector<2x16x16xf32> to vector<2x16xf32>
    %264 = vector.shape_cast %263 : vector<2x16xf32> to vector<2x16x1xf32>
    %265 = tpu.reciprocal %264 {approx = true} : vector<2x16x1xf32> -> vector<2x16x1xf32>
    %266 = vector.broadcast %265 : vector<2x16x1xf32> to vector<2x16x16xf32>
    %267 = arith.mulf %262, %266 : vector<2x16x16xf32>
    %268 = arith.truncf %267 : vector<2x16x16xf32> to vector<2x16x16xbf16>
    %269 = vector.extract_strided_slice %227 {offsets = [0, 0, 16], sizes = [2, 16, 16], strides = [1, 1, 1]} : vector<2x16x32xf32> to vector<2x16x16xf32>
    %270 = arith.truncf %269 : vector<2x16x16xf32> to vector<2x16x16xbf16>
    "tpu.trace_start"() <{level = 10 : i32, message = "bqk,bkd->bqd"}> : () -> ()
    %cst_100 = arith.constant dense<0.000000e+00> : vector<2x16x16xf32>
    %271 = tpu.matmul %268, %270, %cst_100 {dimension_numbers = #tpu.dot_dimension_numbers<[2], [1], [1], [2], [0, 0, 0, 1, 1, 2], [0], [0]>} : vector<2x16x16xbf16>, vector<2x16x16xbf16>, vector<2x16x16xf32> -> vector<2x16x16xf32>
    "tpu.trace_stop"() : () -> ()
    %272 = tpu.concatenate %249, %271 in 2 : vector<2x16x16xf32>, vector<2x16x16xf32> -> vector<2x16x32xf32>
    %273 = vector.shape_cast %272 : vector<2x16x32xf32> to vector<32x32xf32>
    %274 = arith.truncf %273 : vector<32x32xf32> to vector<32x32xbf16>
    %c1_101 = arith.constant 1 : index
    %c0_102 = arith.constant 0 : index
    %c0_103 = arith.constant 0 : index
    %275 = vector.load %arg8[%c1_101, %c0_102, %c0_103] : memref<2x32x32xbf16, #tpu.memory_space<vmem>>, vector<1x32x32xbf16>
    %276 = vector.shape_cast %275 : vector<1x32x32xbf16> to vector<32x32xbf16>
    %cst_104 = arith.constant dense<0.000000e+00> : vector<32x32xf32>
    %277 = tpu.matmul %274, %276, %cst_104 {dimension_numbers = #tpu.dot_dimension_numbers<[1], [0], [0], [1], [0, 0, 1, 1], [], []>} : vector<32x32xbf16>, vector<32x32xbf16>, vector<32x32xf32> -> vector<32x32xf32>
    %c1_105 = arith.constant 1 : index
    %c0_106 = arith.constant 0 : index
    %c0_107 = arith.constant 0 : index
    %278 = vector.load %arg9[%c1_105, %c0_106, %c0_107] : memref<2x1x32xf32, #tpu.memory_space<vmem>>, vector<1x1x32xf32>
    %279 = vector.shape_cast %278 : vector<1x1x32xf32> to vector<1x32xf32>
    %280 = vector.broadcast %279 : vector<1x32xf32> to vector<32x32xf32>
    %281 = arith.addf %277, %280 : vector<32x32xf32>
    %282 = arith.addf %198, %281 : vector<32x32xf32>
    %c1_108 = arith.constant 1 : index
    %c0_109 = arith.constant 0 : index
    %c0_110 = arith.constant 0 : index
    %283 = vector.load %arg10[%c1_108, %c0_109, %c0_110] : memref<2x1x32xf32, #tpu.memory_space<vmem>>, vector<1x1x32xf32>
    %284 = vector.shape_cast %283 : vector<1x1x32xf32> to vector<1x32xf32>
    %c1_111 = arith.constant 1 : index
    %c0_112 = arith.constant 0 : index
    %c0_113 = arith.constant 0 : index
    %285 = vector.load %arg11[%c1_111, %c0_112, %c0_113] : memref<2x1x32xf32, #tpu.memory_space<vmem>>, vector<1x1x32xf32>
    %286 = vector.shape_cast %285 : vector<1x1x32xf32> to vector<1x32xf32>
    %cst_114 = arith.constant dense<0.000000e+00> : vector<32xf32>
    %287 = vector.multi_reduction <add>, %282, %cst_114 [1] : vector<32x32xf32> to vector<32xf32>
    %288 = vector.shape_cast %287 : vector<32xf32> to vector<32x1xf32>
    %cst_115 = arith.constant 3.200000e+01 : f32
    %289 = vector.broadcast %cst_115 : f32 to vector<32x1xf32>
    %290 = arith.divf %288, %289 : vector<32x1xf32>
    %291 = vector.broadcast %290 : vector<32x1xf32> to vector<32x32xf32>
    %292 = arith.subf %282, %291 : vector<32x32xf32>
    %293 = arith.mulf %292, %292 : vector<32x32xf32>
    %cst_116 = arith.constant dense<0.000000e+00> : vector<32xf32>
    %294 = vector.multi_reduction <add>, %293, %cst_116 [1] : vector<32x32xf32> to vector<32xf32>
    %295 = vector.shape_cast %294 : vector<32xf32> to vector<32x1xf32>
    %cst_117 = arith.constant 3.200000e+01 : f32
    %296 = vector.broadcast %cst_117 : f32 to vector<32x1xf32>
    %297 = arith.divf %295, %296 : vector<32x1xf32>
    %298 = vector.broadcast %290 : vector<32x1xf32> to vector<32x32xf32>
    %299 = arith.subf %282, %298 : vector<32x32xf32>
    %cst_118 = arith.constant 9.99999996E-13 : f32
    %300 = vector.broadcast %cst_118 : f32 to vector<32x1xf32>
    %301 = arith.addf %297, %300 : vector<32x1xf32>
    %302 = math.rsqrt %301 : vector<32x1xf32>
    %303 = vector.broadcast %302 : vector<32x1xf32> to vector<32x32xf32>
    %304 = arith.mulf %299, %303 : vector<32x32xf32>
    %305 = vector.broadcast %284 : vector<1x32xf32> to vector<32x32xf32>
    %306 = arith.mulf %304, %305 : vector<32x32xf32>
    %307 = vector.broadcast %286 : vector<1x32xf32> to vector<32x32xf32>
    %308 = arith.addf %306, %307 : vector<32x32xf32>
    %309 = arith.truncf %308 : vector<32x32xf32> to vector<32x32xbf16>
    %c1_119 = arith.constant 1 : index
    %c0_120 = arith.constant 0 : index
    %c0_121 = arith.constant 0 : index
    %310 = vector.load %arg12[%c1_119, %c0_120, %c0_121] : memref<2x32x64xbf16, #tpu.memory_space<vmem>>, vector<1x32x64xbf16>
    %311 = vector.shape_cast %310 : vector<1x32x64xbf16> to vector<32x64xbf16>
    %cst_122 = arith.constant dense<0.000000e+00> : vector<32x64xf32>
    %312 = tpu.matmul %309, %311, %cst_122 {dimension_numbers = #tpu.dot_dimension_numbers<[1], [0], [0], [1], [0, 0, 1, 1], [], []>} : vector<32x32xbf16>, vector<32x64xbf16>, vector<32x64xf32> -> vector<32x64xf32>
    %c1_123 = arith.constant 1 : index
    %c0_124 = arith.constant 0 : index
    %c0_125 = arith.constant 0 : index
    %313 = vector.load %arg13[%c1_123, %c0_124, %c0_125] : memref<2x1x64xf32, #tpu.memory_space<vmem>>, vector<1x1x64xf32>
    %314 = vector.shape_cast %313 : vector<1x1x64xf32> to vector<1x64xf32>
    %315 = vector.broadcast %314 : vector<1x64xf32> to vector<32x64xf32>
    %316 = arith.addf %312, %315 : vector<32x64xf32>
    %cst_126 = arith.constant 5.000000e-01 : f32
    %317 = vector.broadcast %cst_126 : f32 to vector<32x64xf32>
    %318 = arith.mulf %317, %316 : vector<32x64xf32>
    %cst_127 = arith.constant 4.471500e-02 : f32
    %319 = vector.broadcast %cst_127 : f32 to vector<32x64xf32>
    %320 = arith.mulf %319, %316 : vector<32x64xf32>
    %321 = arith.mulf %320, %316 : vector<32x64xf32>
    %322 = arith.mulf %321, %316 : vector<32x64xf32>
    %323 = arith.addf %316, %322 : vector<32x64xf32>
    %cst_128 = arith.constant 0.797884583 : f32
    %324 = vector.broadcast %cst_128 : f32 to vector<32x64xf32>
    %325 = arith.mulf %324, %323 : vector<32x64xf32>
    %326 = math.tanh %325 : vector<32x64xf32>
    %cst_129 = arith.constant 1.000000e+00 : f32
    %327 = vector.broadcast %cst_129 : f32 to vector<32x64xf32>
    %328 = arith.addf %327, %326 : vector<32x64xf32>
    %329 = arith.mulf %318, %328 : vector<32x64xf32>
    %330 = arith.truncf %329 : vector<32x64xf32> to vector<32x64xbf16>
    %c1_130 = arith.constant 1 : index
    %c0_131 = arith.constant 0 : index
    %c0_132 = arith.constant 0 : index
    %331 = vector.load %arg14[%c1_130, %c0_131, %c0_132] : memref<2x64x32xbf16, #tpu.memory_space<vmem>>, vector<1x64x32xbf16>
    %332 = vector.shape_cast %331 : vector<1x64x32xbf16> to vector<64x32xbf16>
    %cst_133 = arith.constant dense<0.000000e+00> : vector<32x32xf32>
    %333 = tpu.matmul %330, %332, %cst_133 {dimension_numbers = #tpu.dot_dimension_numbers<[1], [0], [0], [1], [0, 0, 1, 1], [], []>} : vector<32x64xbf16>, vector<64x32xbf16>, vector<32x32xf32> -> vector<32x32xf32>
    %c1_134 = arith.constant 1 : index
    %c0_135 = arith.constant 0 : index
    %c0_136 = arith.constant 0 : index
    %334 = vector.load %arg15[%c1_134, %c0_135, %c0_136] : memref<2x1x32xf32, #tpu.memory_space<vmem>>, vector<1x1x32xf32>
    %335 = vector.shape_cast %334 : vector<1x1x32xf32> to vector<1x32xf32>
    %336 = vector.broadcast %335 : vector<1x32xf32> to vector<32x32xf32>
    %337 = arith.addf %333, %336 : vector<32x32xf32>
    %338 = arith.addf %308, %337 : vector<32x32xf32>
    %c1_137 = arith.constant 1 : index
    %c0_138 = arith.constant 0 : index
    %c0_139 = arith.constant 0 : index
    %339 = vector.load %arg16[%c1_137, %c0_138, %c0_139] : memref<2x1x32xf32, #tpu.memory_space<vmem>>, vector<1x1x32xf32>
    %340 = vector.shape_cast %339 : vector<1x1x32xf32> to vector<1x32xf32>
    %c1_140 = arith.constant 1 : index
    %c0_141 = arith.constant 0 : index
    %c0_142 = arith.constant 0 : index
    %341 = vector.load %arg17[%c1_140, %c0_141, %c0_142] : memref<2x1x32xf32, #tpu.memory_space<vmem>>, vector<1x1x32xf32>
    %342 = vector.shape_cast %341 : vector<1x1x32xf32> to vector<1x32xf32>
    %cst_143 = arith.constant dense<0.000000e+00> : vector<32xf32>
    %343 = vector.multi_reduction <add>, %338, %cst_143 [1] : vector<32x32xf32> to vector<32xf32>
    %344 = vector.shape_cast %343 : vector<32xf32> to vector<32x1xf32>
    %cst_144 = arith.constant 3.200000e+01 : f32
    %345 = vector.broadcast %cst_144 : f32 to vector<32x1xf32>
    %346 = arith.divf %344, %345 : vector<32x1xf32>
    %347 = vector.broadcast %346 : vector<32x1xf32> to vector<32x32xf32>
    %348 = arith.subf %338, %347 : vector<32x32xf32>
    %349 = arith.mulf %348, %348 : vector<32x32xf32>
    %cst_145 = arith.constant dense<0.000000e+00> : vector<32xf32>
    %350 = vector.multi_reduction <add>, %349, %cst_145 [1] : vector<32x32xf32> to vector<32xf32>
    %351 = vector.shape_cast %350 : vector<32xf32> to vector<32x1xf32>
    %cst_146 = arith.constant 3.200000e+01 : f32
    %352 = vector.broadcast %cst_146 : f32 to vector<32x1xf32>
    %353 = arith.divf %351, %352 : vector<32x1xf32>
    %354 = vector.broadcast %346 : vector<32x1xf32> to vector<32x32xf32>
    %355 = arith.subf %338, %354 : vector<32x32xf32>
    %cst_147 = arith.constant 9.99999996E-13 : f32
    %356 = vector.broadcast %cst_147 : f32 to vector<32x1xf32>
    %357 = arith.addf %353, %356 : vector<32x1xf32>
    %358 = math.rsqrt %357 : vector<32x1xf32>
    %359 = vector.broadcast %358 : vector<32x1xf32> to vector<32x32xf32>
    %360 = arith.mulf %355, %359 : vector<32x32xf32>
    %361 = vector.broadcast %340 : vector<1x32xf32> to vector<32x32xf32>
    %362 = arith.mulf %360, %361 : vector<32x32xf32>
    %363 = vector.broadcast %342 : vector<1x32xf32> to vector<32x32xf32>
    %364 = arith.addf %362, %363 : vector<32x32xf32>
    %c0_148 = arith.constant 0 : index
    %c0_149 = arith.constant 0 : index
    %365 = vector.load %arg24[%c0_148, %c0_149] : memref<32x32xf32, #tpu.memory_space<vmem>>, vector<32x32xf32>
    tpu.vector_store %arg24[%c0_148, %c0_149], %364 {strides = array<i32>} : memref<32x32xf32, #tpu.memory_space<vmem>>, vector<32x32xf32>,
    %366 = vector.shape_cast %364 : vector<32x32xf32> to vector<2x16x32xf32>
    %367 = vector.extract_strided_slice %366 {offsets = [0, 0, 0], sizes = [2, 1, 32], strides = [1, 1, 1]} : vector<2x16x32xf32> to vector<2x1x32xf32>
    %368 = vector.shape_cast %367 : vector<2x1x32xf32> to vector<2x32xf32>
    %369 = arith.truncf %368 : vector<2x32xf32> to vector<2x32xbf16>
    %c0_150 = arith.constant 0 : index
    %c0_151 = arith.constant 0 : index
    %370 = vector.load %arg18[%c0_150, %c0_151] : memref<32x32xbf16, #tpu.memory_space<vmem>>, vector<32x32xbf16>
    %cst_152 = arith.constant dense<0.000000e+00> : vector<2x32xf32>
    %371 = tpu.matmul %369, %370, %cst_152 {dimension_numbers = #tpu.dot_dimension_numbers<[1], [0], [0], [1], [0, 0, 1, 1], [], []>} : vector<2x32xbf16>, vector<32x32xbf16>, vector<2x32xf32> -> vector<2x32xf32>
    %c0_153 = arith.constant 0 : index
    %c0_154 = arith.constant 0 : index
    %372 = vector.load %arg19[%c0_153, %c0_154] : memref<1x32xf32, #tpu.memory_space<vmem>>, vector<1x32xf32>
    %373 = vector.broadcast %372 : vector<1x32xf32> to vector<2x32xf32>
    %374 = arith.addf %371, %373 : vector<2x32xf32>
    %375 = math.tanh %374 : vector<2x32xf32>
    %c0_155 = arith.constant 0 : index
    %c0_156 = arith.constant 0 : index
    %376 = vector.load %arg25[%c0_155, %c0_156] : memref<2x32xf32, #tpu.memory_space<vmem>>, vector<2x32xf32>
    tpu.vector_store %arg25[%c0_155, %c0_156], %375 {strides = array<i32>} : memref<2x32xf32, #tpu.memory_space<vmem>>, vector<2x32xf32>,
    %377 = tpu.iota {dimensions = array<i32: 1>} : vector<4x32xi32>
    %c0_157 = arith.constant 0 : index
    %c0_158 = arith.constant 0 : index
    %378 = vector.load %arg2[%c0_157, %c0_158] : memref<4x1xi32, #tpu.memory_space<vmem>>, vector<4x1xi32>
    %379 = vector.broadcast %378 : vector<4x1xi32> to vector<4x32xi32>
    %380 = arith.cmpi sge, %377, %379 : vector<4x32xi32>
    %c0_159 = arith.constant 0 : index
    %c0_160 = arith.constant 0 : index
    %381 = vector.load %arg3[%c0_159, %c0_160] : memref<4x1xi32, #tpu.memory_space<vmem>>, vector<4x1xi32>
    %382 = vector.broadcast %381 : vector<4x1xi32> to vector<4x32xi32>
    %383 = arith.cmpi slt, %377, %382 : vector<4x32xi32>
    %384 = arith.andi %380, %383 : vector<4x32xi1>
    %385 = arith.extui %384 : vector<4x32xi1> to vector<4x32xi32>
    %386 = arith.sitofp %385 : vector<4x32xi32> to vector<4x32xf32>
    %cst_161 = arith.constant dense<0.000000e+00> : vector<4xf32>
    %387 = vector.multi_reduction <add>, %386, %cst_161 [1] : vector<4x32xf32> to vector<4xf32>
    %388 = vector.shape_cast %387 : vector<4xf32> to vector<4x1xf32>
    %cst_162 = arith.constant 1.000000e+00 : f32
    %389 = vector.broadcast %cst_162 : f32 to vector<4x1xf32>
    %390 = arith.maximumf %388, %389 : vector<4x1xf32>
    %391 = arith.truncf %386 : vector<4x32xf32> to vector<4x32xbf16>
    %392 = arith.truncf %364 : vector<32x32xf32> to vector<32x32xbf16>
    %cst_163 = arith.constant dense<0.000000e+00> : vector<4x32xf32>
    %393 = tpu.matmul %391, %392, %cst_163 {dimension_numbers = #tpu.dot_dimension_numbers<[1], [0], [0], [1], [0, 0, 1, 1], [], []>} : vector<4x32xbf16>, vector<32x32xbf16>, vector<4x32xf32> -> vector<4x32xf32>
    %394 = tpu.reciprocal %390 {approx = true} : vector<4x1xf32> -> vector<4x1xf32>
    %395 = vector.broadcast %394 : vector<4x1xf32> to vector<4x32xf32>
    %396 = arith.mulf %393, %395 : vector<4x32xf32>
    %397 = vector.extract_strided_slice %396 {offsets = [0, 0], sizes = [2, 32], strides = [1, 1]} : vector<4x32xf32> to vector<2x32xf32>
    %398 = arith.truncf %397 : vector<2x32xf32> to vector<2x32xbf16>
    %c0_164 = arith.constant 0 : index
    %c0_165 = arith.constant 0 : index
    %399 = vector.load %arg20[%c0_164, %c0_165] : memref<32x16xbf16, #tpu.memory_space<vmem>>, vector<32x16xbf16>
    %cst_166 = arith.constant dense<0.000000e+00> : vector<2x16xf32>
    %400 = tpu.matmul %398, %399, %cst_166 {dimension_numbers = #tpu.dot_dimension_numbers<[1], [0], [0], [1], [0, 0, 1, 1], [], []>} : vector<2x32xbf16>, vector<32x16xbf16>, vector<2x16xf32> -> vector<2x16xf32>
    %c0_167 = arith.constant 0 : index
    %c0_168 = arith.constant 0 : index
    %401 = vector.load %arg21[%c0_167, %c0_168] : memref<1x16xf32, #tpu.memory_space<vmem>>, vector<1x16xf32>
    %402 = vector.broadcast %401 : vector<1x16xf32> to vector<2x16xf32>
    %403 = arith.addf %400, %402 : vector<2x16xf32>
    %404 = math.tanh %403 : vector<2x16xf32>
    %c0_169 = arith.constant 0 : index
    %c0_170 = arith.constant 0 : index
    %405 = vector.load %arg26[%c0_169, %c0_170] : memref<2x16xf32, #tpu.memory_space<vmem>>, vector<2x16xf32>
    tpu.vector_store %arg26[%c0_169, %c0_170], %404 {strides = array<i32>} : memref<2x16xf32, #tpu.memory_space<vmem>>, vector<2x16xf32>,
    %406 = vector.extract_strided_slice %396 {offsets = [2, 0], sizes = [2, 32], strides = [1, 1]} : vector<4x32xf32> to vector<2x32xf32>
    %407 = arith.truncf %406 : vector<2x32xf32> to vector<2x32xbf16>
    %c0_171 = arith.constant 0 : index
    %c0_172 = arith.constant 0 : index
    %408 = vector.load %arg22[%c0_171, %c0_172] : memref<32x16xbf16, #tpu.memory_space<vmem>>, vector<32x16xbf16>
    %cst_173 = arith.constant dense<0.000000e+00> : vector<2x16xf32>
    %409 = tpu.matmul %407, %408, %cst_173 {dimension_numbers = #tpu.dot_dimension_numbers<[1], [0], [0], [1], [0, 0, 1, 1], [], []>} : vector<2x32xbf16>, vector<32x16xbf16>, vector<2x16xf32> -> vector<2x16xf32>
    %c0_174 = arith.constant 0 : index
    %c0_175 = arith.constant 0 : index
    %410 = vector.load %arg23[%c0_174, %c0_175] : memref<1x16xf32, #tpu.memory_space<vmem>>, vector<1x16xf32>
    %411 = vector.broadcast %410 : vector<1x16xf32> to vector<2x16xf32>
    %412 = arith.addf %409, %411 : vector<2x16xf32>
    %413 = math.tanh %412 : vector<2x16xf32>
    %c0_176 = arith.constant 0 : index
    %c0_177 = arith.constant 0 : index
    %414 = vector.load %arg27[%c0_176, %c0_177] : memref<2x16xf32, #tpu.memory_space<vmem>>, vector<2x16xf32>
    tpu.vector_store %arg27[%c0_176, %c0_177], %413 {strides = array<i32>} : memref<2x16xf32, #tpu.memory_space<vmem>>, vector<2x16xf32>,
    return
  }
}

</mosaic_0001>

<bundles_post_ra>
// kernel: bert_sentence_encoder_forward.1
= control target key start
LH: loop header
LB: loop body
LE: loop exit
PB: predicated region body
PF: predicated region fallthrough
CT: control target
= control target key end

     0   :  { %s4481_s0 = inlined_call_operand.vmem [shape: f32[32,32], index: 0, kind: input, shape index: {}]   ;;  %s4482_s1 = inlined_call_operand.vmem [shape: f32[2,16], index: 1, kind: input, shape index: {}]   ;;  %s4483_s2 = inlined_call_operand.vmem [shape: s32[4,1], index: 2, kind: input, shape index: {}]   ;;  %s4484_s3 = inlined_call_operand.vmem [shape: s32[4,1], index: 3, kind: input, shape index: {}]   ;;  %s4485_s4 = inlined_call_operand.vmem [shape: f32[1,32], index: 4, kind: input, shape index: {}]   ;;  %s4486_s5 = inlined_call_operand.vmem [shape: f32[1,32], index: 5, kind: input, shape index: {}]   ;;  %s4487_s6 = inlined_call_operand.vmem [shape: bf16[2,3,32,32], index: 6, kind: input, shape index: {}]   ;;  %s4488_s7 = inlined_call_operand.vmem [shape: f32[2,3,1,32], index: 7, kind: input, shape index: {}]   ;;  %s4489_s8 = inlined_call_operand.vmem [shape: bf16[2,32,32], index: 8, kind: input, shape index: {}]   ;;  %s4490_s9 = inlined_call_operand.vmem [shape: f32[2,1,32], index: 9, kind: input, shape index: {}]   ;;  %s4491_s10 = inlined_call_operand.vmem [shape: f32[2,1,32], index: 10, kind: input, shape index: {}]   ;;  %s4492_s11 = inlined_call_operand.vmem [shape: f32[2,1,32], index: 11, kind: input, shape index: {}]   ;;  %s4493_s12 = inlined_call_operand.vmem [shape: bf16[2,32,64], index: 12, kind: input, shape index: {}]   ;;  %s4494_s13 = inlined_call_operand.vmem [shape: f32[2,1,64], index: 13, kind: input, shape index: {}]   ;;  %s4495_s14 = inlined_call_operand.vmem [shape: bf16[2,64,32], index: 14, kind: input, shape index: {}]   ;;  %s4496_s15 = inlined_call_operand.vmem [shape: f32[2,1,32], index: 15, kind: input, shape index: {}]   ;;  %s4497_s16 = inlined_call_operand.vmem [shape: f32[2,1,32], index: 16, kind: input, shape index: {}]   ;;  %s4498_s17 = inlined_call_operand.vmem [shape: f32[2,1,32], index: 17, kind: input, shape index: {}]   ;;  %s4499_s18 = inlined_call_operand.vmem [shape: bf16[32,32], index: 18, kind: input, shape index: {}]   ;;  %s4500_s19 = inlined_call_operand.vmem [shape: f32[1,32], index: 19, kind: input, shape index: {}]   ;;  %s4501_s20 = inlined_call_operand.vmem [shape: bf16[32,16], index: 20, kind: input, shape index: {}]   ;;  %s4502_s21 = inlined_call_operand.vmem [shape: f32[1,16], index: 21, kind: input, shape index: {}]   ;;  %s4503_s22 = inlined_call_operand.vmem [shape: bf16[32,16], index: 22, kind: input, shape index: {}]   ;;  %s4504_s23 = inlined_call_operand.vmem [shape: f32[1,16], index: 23, kind: input, shape index: {}]   ;;  %s4505_s24 = inlined_call_operand.hbm [shape: f32[32,32], index: 24, kind: output, shape index: {0}]   ;;  %s4506_s25 = inlined_call_operand.hbm [shape: f32[2,32], index: 25, kind: output, shape index: {1}]   ;;  %s4507_s26 = inlined_call_operand.hbm [shape: f32[2,16], index: 26, kind: output, shape index: {2}]   ;;  %s4508_s27 = inlined_call_operand.hbm [shape: f32[2,16], index: 27, kind: output, shape index: {3}]  }
   0x1   :  { %4518 = sst [smem:[#allocation12_spill]] %s4481_s0 }
   0x2   :  { %4519 = sst [smem:[#allocation13_spill]] %s4482_s1 }
   0x3   :  { %4520 = sst [smem:[#allocation14_spill]] %s4483_s2 }
   0x4   :  { %4521 = sst [smem:[#allocation15_spill]] %s4484_s3 }
   0x5   :  { %4522 = sst [smem:[#allocation16_spill]] %s4485_s4 }
   0x6   :  { %4523 = sst [smem:[#allocation17_spill]] %s4486_s5 }
   0x7   :  { %4524 = sst [smem:[#allocation18_spill]] %s4487_s6 }
   0x8   :  { %4525 = sst [smem:[#allocation19_spill]] %s4488_s7 }
   0x9   :  { %4526 = sst [smem:[#allocation20_spill]] %s4489_s8 }
   0xa   :  { %4527 = sst [smem:[#allocation21_spill]] %s4490_s9 }
   0xb   :  { %4528 = sst [smem:[#allocation22_spill]] %s4491_s10 }
   0xc   :  { %4529 = sst [smem:[#allocation23_spill]] %s4492_s11 }
   0xd   :  { %33 = vsyncpa [#allocation3], 0 }
   0xe   :  { %34 = vsyncpa [#allocation5], 0  ;;  %s4530_s8 = sld [smem:[#allocation12_spill]]  ;;  %vm91_vm0 = vcmask 261120  }
  0x14   :  { %v85_v0 = vld [vmem:[%s4530_s8] sm:$0xff]  ;;  %v87_v1 = vld [vmem:[%s4530_s8 + $0x10] sm:$0xff]  ;;  %v86_v2 = vld [vmem:[%s4530_s8 + $0x8] sm:$0xff] }
  0x15   :  { %v92_v3 = vsel %vm91_vm0, %v85_v0, 0.0  ;;  %v98_v4 = vsel %vm91_vm0, %v87_v1, 0.0  ;;  %v88_v5 = vld [vmem:[%s4530_s8 + $0x18] sm:$0xff]  ;;  %v95_v6 = vsel %vm91_vm0, %v86_v2, 0.0 }
  0x16   :  { %93 = vadd.xlane.f32.xlu0 %v92_v3  ;;  %99 = vadd.xlane.f32.xlu1 %v98_v4  ;;  %v101_v7 = vsel %vm91_vm0, %v88_v5, 0.0 }
  0x1a   :  { %96 = vadd.xlane.f32.xlu0 %v95_v6  ;;  %102 = vadd.xlane.f32.xlu1 %v101_v7 }
  0x1b   :  { %35 = vsyncpa [#allocation8], 0  ;;  %s4531_s6 = sld [smem:[#allocation18_spill]]  ;;  %s4532_s0 = sld [smem:[#allocation16_spill]]  ;;  %vm3704_vm1 = vmmov 0   ;;  %vm429_vm2 = vcmask 130048  }
  0x1c   :  { %s4533_s1 = sld [smem:[#allocation17_spill]]  ;;  %s4534_s4 = sld [smem:[#allocation19_spill]]  ;;  %vm1259_vm3 = vcmask 523264   ;;  %vm2693_vm6 = vcmask 257024   ;;  %vm2617_vm8 = vcmask 1041409   ;;  %vm2676_vm9 = vcmask 254976  }
  0x1d   :  { %s4535_s10 = sld [smem:[#allocation13_spill]]  ;;  %s3706_s29 = smov 112  }
  0x1e   :  { %s4536_s2 = sld [smem:[#allocation20_spill]]  ;;  %s4516_s8 = smov 16  }
  0x1f   :  { %s4537_s5 = sld [smem:[#allocation21_spill]]  ;;  %s4538_s7 = sld [smem:[#allocation22_spill]] }
  0x20   :  { %s4539_s28 = sld [smem:[#allocation23_spill]] }
  0x21   :  { %v3447_v28 = vld [vmem:[%s4531_s6] sm:$0xff]   ;;  %v3448_v29 = vld [vmem:[%s4531_s6 + $0x10] sm:$0xff]   ;;  %v3449_v30 = vld [vmem:[%s4531_s6 + $0x8] sm:$0xff]   ;;  %s4541_s30 = sld [smem:[#allocation15_spill]] }
  0x22   :  { %3181 = vmatprep.subr.bf16.mxu0 %v3447_v28  ;;  %3189 = vmatprep.subr.bf16.mxu1 %v3448_v29  ;;  %v3450_v31 = vld [vmem:[%s4531_s6 + $0x18] sm:$0xff]   ;;  %v3451_v32 = vld [vmem:[%s4531_s6 + $0x20] sm:$0xff]  }
  0x23   :  { %3182 = vmatpush3.bf16.msra.mxu0 %v3447_v28  ;;  %3190 = vmatpush3.bf16.msra.mxu1 %v3448_v29  ;;  %v2943_v47 = vld [vmem:[%s4532_s0] ss:$0 sm:$0xff]  ;;  %v2950_v6 = vld [vmem:[%s4534_s4 + $0x1] ss:$0 sm:$0xff]  ;;  %s4542_s0 = sld [smem:[#allocation14_spill]] }
  0x24   :  { %3183 = vmatprep.subr.bf16.mxu0 %v3449_v30  ;;  %3191 = vmatprep.subr.bf16.mxu1 %v3450_v31  ;;  %v2944_v53 = vld [vmem:[%s4533_s1] ss:$0 sm:$0xff]  ;;  %s4540_s1 = smov 16  }
  0x25   :  { %v2945_v4 = vld [vmem:[%s4534_s4] ss:$0 sm:$0xff] }
  0x27   :  { %3184 = vmatpush3.bf16.msra.mxu0 %v3449_v30  ;;  %3192 = vmatpush3.bf16.msra.mxu1 %v3450_v31 }
  0x28   :  { %3197 = vmatprep.subr.bf16.mxu0 %v3451_v32 }
  0xa3   :  { %v94_v8 = vpop.xlane.xlu0 %93  ;;  %v100_v9 = vpop.xlane.xlu1 %99 }
  0xa4   :  { %v105_v10 = vmul.f32 0.03125, %v94_v8  ;;  %v107_v11 = vmul.f32 0.03125, %v100_v9 }
  0xa6   :  { %v109_v12 = vsub.f32 %v85_v0, %v105_v10  ;;  %v111_v13 = vsub.f32 %v87_v1, %v107_v11  ;;  %v3452_v1 = vld [vmem:[%s4531_s6 + $0x28] sm:$0xff]  }
  0xa7   :  { %v97_v14 = vpop.xlane.xlu0 %96  ;;  %v103_v15 = vpop.xlane.xlu1 %102 }
  0xa8   :  { %v106_v16 = vmul.f32 0.03125, %v97_v14  ;;  %v108_v17 = vmul.f32 0.03125, %v103_v15  ;;  %v113_v18 = vmul.f32 %v109_v12, %v109_v12  ;;  %v115_v19 = vmul.f32 %v111_v13, %v111_v13 }
  0xaa   :  { %v110_v20 = vsub.f32 %v86_v2, %v106_v16  ;;  %v112_v21 = vsub.f32 %v88_v5, %v108_v17  ;;  %v117_v22 = vsel %vm91_vm0, %v113_v18, 0.0  ;;  %v123_v23 = vsel %vm91_vm0, %v115_v19, 0.0 }
  0xab   :  { %118 = vadd.xlane.f32.xlu0 %v117_v22  ;;  %v3703_v2 = vmov 0.0  }
  0xac   :  { %v114_v24 = vmul.f32 %v110_v20, %v110_v20  ;;  %v116_v25 = vmul.f32 %v112_v21, %v112_v21  ;;  %3205 = vmatprep.subr.bf16.mxu1 %v3703_v2 }
  0xae   :  { %v120_v26 = vsel %vm91_vm0, %v114_v24, 0.0  ;;  %v126_v27 = vsel %vm91_vm0, %v116_v25, 0.0 }
  0xaf   :  { %124 = vadd.xlane.f32.xlu0 %v123_v23  ;;  %121 = vadd.xlane.f32.xlu1 %v120_v26 }
  0xb3   :  { %127 = vadd.xlane.f32.xlu1 %v126_v27  ;;  %v2955_v27 = vld [vmem:[%s4534_s4 + $0x2] ss:$0 sm:$0xff] }
 0x138   :  { %v119_v33 = vpop.xlane.xlu0 %118 }
 0x139   :  { %v129_v34 = vmul.f32 0.03125, %v119_v33 }
 0x13b   :  { %v133_v35 = vadd.f32 1e-12, %v129_v34 }
 0x13c   :  { %v122_v36 = vpop.xlane.xlu1 %121  ;;  %v125_v37 = vpop.xlane.xlu0 %124 }
 0x13d   :  { %3481 = vrsqrt.f32 %v133_v35  ;;  %v130_v38 = vmul.f32 0.03125, %v122_v36  ;;  %v131_v39 = vmul.f32 0.03125, %v125_v37 }
 0x13f   :  { %v134_v40 = vadd.f32 1e-12, %v130_v38  ;;  %v135_v41 = vadd.f32 1e-12, %v131_v39  ;;  %v3705_v38 = vmov 1966171168  }
 0x140   :  { %v128_v42 = vpop.xlane.xlu1 %127  ;;  %v170_v39 = vunpack.c.l.s4 %v3705_v38 }
 0x141   :  { %3483 = vrsqrt.f32 %v134_v40  ;;  %v132_v43 = vmul.f32 0.03125, %v128_v42  ;;  %v172_v40 = vlaneseq }
 0x142   :  { %3485 = vrsqrt.f32 %v135_v41  ;;  %v165_v41 = vld [vmem:[%s4535_s10] sm:$0x3] }
 0x143   :  { %v136_v44 = vadd.f32 1e-12, %v132_v43  ;;  %v166_v42 = vsub.f32 1.0, %v165_v41  ;;  %v171_v43 = vunpack.c.0.s8 %v170_v39 }
 0x145   :  { %3487 = vrsqrt.f32 %v136_v44  ;;  %v173_v44 = vshrl.u32 %v172_v40, 7 }
 0x147   :  { %v3482_v45 = vpop.eup %3481 }
 0x148   :  { %v141_v46 = vmul.f32 %v3482_v45, %v109_v12  ;;  %v167_v45 = vmul.f32 -10000.0, %v166_v42 }
 0x14a   :  { %v151_v51 = vmul.f32 %v2943_v47, %v141_v46  ;;  %v174_v46 = vsub.s32 %v171_v43, %v173_v44 }
 0x14b   :  { %v3484_v48 = vpop.eup %3483 }
 0x14c   :  { %v3486_v49 = vpop.eup %3485  ;;  %v142_v50 = vmul.f32 %v3484_v48, %v110_v20  ;;  %v3896_v57 = vadd.f32 %v2944_v53, %v151_v51 }
 0x14d   :  { %v143_v52 = vmul.f32 %v3486_v49, %v111_v13 }
 0x14e   :  { %v152_v54 = vmul.f32 %v2943_v47, %v142_v50  ;;  %v193_v50 = vsub.s32 0, %v173_v44 }
 0x14f   :  { %v3488_v55 = vpop.eup %3487  ;;  %v153_v59 = vmul.f32 %v2943_v47, %v143_v52 }
 0x150   :  { %v144_v56 = vmul.f32 %v3488_v55, %v112_v21  ;;  %v3898_v58 = vadd.f32 %v2944_v53, %v152_v54 }
 0x151   :  { %v3904_v62 = vadd.f32 %v2944_v53, %v153_v59 }
 0x152   :  { %v216_v60 = vpack.c.bf16 %v3898_v58, %v3896_v57  ;;  %v154_v61 = vmul.f32 %v2943_v47, %v144_v56  ;;  %v175_v47 = vrot.slane %v167_v45, %v174_v46 }
 0x154   :  { %3185 = vmatprep.mubr.msk.bf16.mxu0 %vm91_vm0, %v216_v60  ;;  %3193 = vmatprep.mubr.msk.bf16.mxu1 %vm91_vm0, %v216_v60  ;;  %v3906_v63 = vadd.f32 %v2944_v53, %v154_v61  ;;  %v176_v48 = vcombine.high %v175_v47, %v175_v47  ;;  %v183_v49 = vrot.slane %v175_v47, %v174_v46 }
 0x156   :  { %v217_v0 = vpack.c.bf16 %v3906_v63, %v3904_v62  ;;  %v190_v51 = vrot.slane %v176_v48, %v174_v46  ;;  %v3966_v53 = vrot.slane %v183_v49, %v193_v50 }
 0x158   :  { %3186 = vmatmul.mubr.msk.bf16.vlgmr.msra.gmra.mrb[0].mxu0 %vm91_vm0, %v217_v0  ;;  %3194 = vmatmul.mubr.msk.bf16.vlgmr.msra.gmra.mrb[0].mxu1 %vm91_vm0, %v217_v0 }
 0x159   :  { %3198 = vmatpush3.bf16.msra.mxu0 %v3451_v32  ;;  %3201 = vmatprep.mubr.msk.bf16.mxu0 %vm91_vm0, %v216_v60 }
 0x15a   :  { %3199 = vmatprep.subr.bf16.mxu0 %v3452_v1  ;;  %3207 = vmatprep.mubr.msk.bf16.mxu1 %vm3704_vm1, %v3703_v2 }
 0x15d   :  { %3200 = vmatpush3.bf16.msra.mxu0 %v3452_v1 }
 0x15e   :  { %3211 = vmatprep.subr.bf16.mxu0 %v3703_v2 }
 0x160   :  { %3202 = vmatmul.mubr.msk.bf16.vlgmr.msra.gmra.mrb[4].mxu0 %vm91_vm0, %v217_v0  ;;  %v3968_v0 = vrot.slane %v190_v51, %v193_v50 }
 0x161   :  { %3213 = vmatprep.mubr.msk.bf16.mxu0 %vm3704_vm1, %v3703_v2 }
 0x22b   :  { %v3187_v3 = vpop.f32.mrb[0].mxu0  ;;  %v3195_v5 = vpop.f32.mrb[0].mxu1 }
 0x22c   :  { %v276_v7 = vpop.f32.mrb[1].mxu0  ;;  %v343_v8 = vpop.f32.mrb[1].mxu1  ;;  %v285_v11 = vadd.f32 %v3187_v3, %v2945_v4  ;;  %v352_v12 = vadd.f32 %v3195_v5, %v2950_v6 }
 0x22d   :  { %v3188_v9 = vpop.f32.mrb[2].mxu0  ;;  %v3196_v10 = vpop.f32.mrb[2].mxu1  ;;  %v277_v17 = vadd.f32 %v2945_v4, %v276_v7  ;;  %v344_v18 = vadd.f32 %v2950_v6, %v343_v8 }
 0x22e   :  { %v288_v13 = vadd.f32 %v3188_v9, %v2945_v4  ;;  %v355_v14 = vadd.f32 %v3196_v10, %v2950_v6  ;;  %v279_v15 = vpop.f32.mrb[3].mxu0  ;;  %v346_v16 = vpop.f32.mrb[3].mxu1 }
 0x22f   :  { %v280_v19 = vadd.f32 %v2945_v4, %v279_v15  ;;  %v347_v20 = vadd.f32 %v2950_v6, %v346_v16 }
 0x230   :  { %v3929_v21 = vpack.c.bf16 %v288_v13, %v285_v11  ;;  %v3931_v22 = vpack.c.bf16 %v355_v14, %v352_v12 }
 0x231   :  { %v3933_v23 = vpack.c.bf16 %v280_v19, %v277_v17  ;;  %v3935_v24 = vpack.c.bf16 %v347_v20, %v344_v18 }
 0x232   :  { %v481_v25 = vsel %vm429_vm2, %v3931_v22, 0 }
 0x233   :  { %v3203_v26 = vpop.f32.mrb[4].mxu0  ;;  %3212 = vmatpush3.bf16.xpose.msra.mxu0 %v481_v25  ;;  %v434_v28 = vsel %vm429_vm2, %v3935_v24, 0 }
 0x234   :  { %v410_v29 = vpop.f32.mrb[5].mxu0  ;;  %3206 = vmatpush3.bf16.xpose.msra.mxu1 %v434_v28  ;;  %3223 = vmatprep.subr.bf16.mxu0 %v3703_v2  ;;  %v419_v31 = vadd.f32 %v3203_v26, %v2955_v27 }
 0x235   :  { %v3204_v30 = vpop.f32.mrb[6].mxu0  ;;  %3217 = vmatprep.subr.bf16.mxu1 %v3703_v2  ;;  %v411_v34 = vadd.f32 %v2955_v27, %v410_v29 }
 0x236   :  { %v422_v32 = vadd.f32 %v3204_v30, %v2955_v27  ;;  %v413_v33 = vpop.f32.mrb[7].mxu0 }
 0x237   :  { %v414_v35 = vadd.f32 %v2955_v27, %v413_v33 }
 0x238   :  { %v3946_v36 = vpack.c.bf16 %v422_v32, %v419_v31 }
 0x239   :  { %v3948_v37 = vpack.c.bf16 %v414_v35, %v411_v34 }
 0x23a   :  { %3214 = vmatmul.mubr.msk.bf16.vlgmr.msra.gmra.mrb[8].mxu0 %vm429_vm2, %v3929_v21 }
 0x23b   :  { %3208 = vmatmul.mubr.msk.bf16.vlgmr.msra.gmra.mrb[4].mxu1 %vm429_vm2, %v3933_v23  ;;  %3224 = vmatpush3.bf16.msra.mxu0 %v3946_v36 }
 0x23c   :  { %3218 = vmatpush3.bf16.msra.mxu1 %v3948_v37  ;;  %3225 = vmatprep.mubr.msk.bf16.mxu0 %vm3704_vm1, %v3703_v2 }
 0x23d   :  { %3235 = vmatprep.subr.bf16.mxu0 %v3703_v2  ;;  %3219 = vmatprep.mubr.msk.bf16.mxu1 %vm3704_vm1, %v3703_v2 }
 0x23e   :  { %3229 = vmatprep.subr.bf16.mxu1 %v3703_v2 }
 0x30d   :  { %v517_v52 = vpop.f32.mrb[8].mxu0 }
 0x30e   :  { %v470_v54 = vpop.f32.mrb[4].mxu1  ;;  %v3215_v55 = vpop.f32.mrb[9].mxu0  ;;  %v526_v56 = vmul.f32 0.25, %v517_v52 }
 0x30f   :  { %v524_v59 = vmul.f32 0.25, %v470_v54  ;;  %v3209_v60 = vpop.f32.mrb[5].mxu1  ;;  %v520_v61 = vpop.f32.mrb[10].mxu0 }
 0x310   :  { %v473_v1 = vpop.f32.mrb[6].mxu1  ;;  %v3216_v3 = vpop.f32.mrb[11].mxu0  ;;  %v527_v4 = vmul.f32 0.25, %v520_v61  ;;  %v530_v10 = vadd.f32 %v526_v56, %v3968_v0 }
 0x311   :  { %v525_v5 = vmul.f32 0.25, %v473_v1  ;;  %v3210_v6 = vpop.f32.mrb[7].mxu1  ;;  %v528_v7 = vadd.f32 %v524_v59, %v3966_v53 }
 0x312   :  { %v531_v12 = vadd.f32 %v527_v4, %v3968_v0  ;;  %v538_v13 = vsel %vm429_vm2, %v530_v10, -inf }
 0x313   :  { %v532_v8 = vsel %vm429_vm2, %v528_v7, -inf  ;;  %v529_v9 = vadd.f32 %v525_v5, %v3966_v53 }
 0x314   :  { %533 = vmax.xlane.f32.xlu0 %v532_v8  ;;  %v541_v14 = vsel %vm429_vm2, %v531_v12, -inf }
 0x315   :  { %v535_v11 = vsel %vm429_vm2, %v529_v9, -inf }
 0x316   :  { %536 = vmax.xlane.f32.xlu1 %v535_v11 }
 0x318   :  { %539 = vmax.xlane.f32.xlu0 %v538_v13 }
 0x31a   :  { %542 = vmax.xlane.f32.xlu1 %v541_v14 }
 0x32b   :  { %725 = vrot.lane.b32.xlu1 %v3931_v22, %s3706_s29 }
 0x3a1   :  { %v534_v15 = vpop.xlane.xlu0 %533 }
 0x3a2   :  { %v544_v16 = vsub.f32 %v528_v7, %v534_v15 }
 0x3a3   :  { %v537_v17 = vpop.xlane.xlu1 %536 }
 0x3a4   :  { %v545_v19 = vsub.f32 %v529_v9, %v537_v17  ;;  %v548_v25 = vmul.f32 1.442695, %v544_v16 }
 0x3a5   :  { %v540_v18 = vpop.xlane.xlu0 %539 }
 0x3a6   :  { %v546_v20 = vsub.f32 %v530_v10, %v540_v18  ;;  %v550_v29 = vmul.f32 1.442695, %v545_v19 }
 0x3a7   :  { %v543_v26 = vpop.xlane.xlu1 %542 }
 0x3a8   :  { %v552_v27 = vmul.f32 1.442695, %v546_v20  ;;  %v547_v28 = vsub.f32 %v531_v12, %v543_v26 }
 0x3aa   :  { %3489 = vpow2.f32 %v552_v27  ;;  %v554_v30 = vmul.f32 1.442695, %v547_v28 }
 0x3ab   :  { %3491 = vpow2.f32 %v548_v25  ;;  %v726_v41 = vpop.permute.xlu1 %725 }
 0x3ac   :  { %3493 = vpow2.f32 %v554_v30 }
 0x3ad   :  { %3495 = vpow2.f32 %v550_v29 }
 0x3b4   :  { %v3490_v31 = vpop.eup %3489 }
 0x3b5   :  { %v3492_v32 = vpop.eup %3491  ;;  %v562_v22 = vsel %vm429_vm2, %v3490_v31, 0.0 }
 0x3b6   :  { %v3494_v33 = vpop.eup %3493  ;;  %563 = vadd.xlane.f32.xlu0 %v562_v22  ;;  %v556_v38 = vsel %vm429_vm2, %v3492_v32, 0.0 }
 0x3b7   :  { %v565_v34 = vsel %vm429_vm2, %v3494_v33, 0.0  ;;  %v3496_v35 = vpop.eup %3495 }
 0x3b8   :  { %566 = vadd.xlane.f32.xlu1 %v565_v34  ;;  %v559_v39 = vsel %vm429_vm2, %v3496_v35, 0.0 }
 0x3ba   :  { %557 = vadd.xlane.f32.xlu0 %v556_v38 }
 0x3bc   :  { %560 = vadd.xlane.f32.xlu1 %v559_v39 }
 0x3cd   :  { %669 = vrot.lane.b32.xlu1 %v3933_v23, %s3706_s29 }
 0x3d0   :  { %672 = vrot.lane.b32.xlu0 %v3935_v24, %s3706_s29  ;;  %v731_v24 = vsel %vm429_vm2, %v726_v41, 0 }
 0x3d1   :  { %722 = vrot.lane.b32.xlu1 %v3929_v21, %s3706_s29 }
 0x443   :  { %v564_v42 = vpop.xlane.xlu0 %563 }
 0x444   :  { %3497 = vrcp.f32 %v564_v42 }
 0x445   :  { %v567_v43 = vpop.xlane.xlu1 %566 }
 0x446   :  { %3499 = vrcp.f32 %v567_v43 }
 0x447   :  { %v558_v44 = vpop.xlane.xlu0 %557 }
 0x448   :  { %3501 = vrcp.f32 %v558_v44 }
 0x449   :  { %v561_v45 = vpop.xlane.xlu1 %560 }
 0x44a   :  { %3503 = vrcp.f32 %v561_v45 }
 0x44b   :  { %v673_v54 = vpop.permute.xlu0 %672 }
 0x44c   :  { %v678_v59 = vsel %vm429_vm2, %v673_v54, 0 }
 0x44d   :  { %v670_v55 = vpop.permute.xlu1 %669 }
 0x44e   :  { %v3498_v46 = vpop.eup %3497 }
 0x44f   :  { %v574_v48 = vmul.f32 %v3498_v46, %v3490_v31 }
 0x450   :  { %v3500_v47 = vpop.eup %3499 }
 0x451   :  { %v575_v49 = vmul.f32 %v3500_v47, %v3494_v33  ;;  %v723_v60 = vpop.permute.xlu1 %722 }
 0x452   :  { %v3502_v23 = vpop.eup %3501 }
 0x453   :  { %v577_v50 = vpack.c.bf16 %v575_v49, %v574_v48  ;;  %v572_v52 = vmul.f32 %v3502_v23, %v3492_v32 }
 0x454   :  { %v3504_v51 = vpop.eup %3503 }
 0x455   :  { %v573_v21 = vmul.f32 %v3504_v51, %v3496_v35  ;;  %3226 = vmatmul.mubr.msk.bf16.vlgmr.msra.gmra.mrb[12].mxu0 %vm429_vm2, %v577_v50 }
 0x456   :  { %3236 = vmatpush3.bf16.xpose.msra.mxu0 %v731_v24  ;;  %3237 = vmatprep.mubr.msk.bf16.mxu0 %vm3704_vm1, %v3703_v2 }
 0x457   :  { %v576_v56 = vpack.c.bf16 %v573_v21, %v572_v52  ;;  %3247 = vmatprep.subr.bf16.mxu0 %v3703_v2 }
 0x459   :  { %3220 = vmatmul.mubr.msk.bf16.vlgmr.msra.gmra.mrb[8].mxu1 %vm429_vm2, %v576_v56 }
 0x45a   :  { %3230 = vmatpush3.bf16.xpose.msra.mxu1 %v678_v59  ;;  %3231 = vmatprep.mubr.msk.bf16.mxu1 %vm3704_vm1, %v3703_v2 }
 0x45b   :  { %3241 = vmatprep.subr.bf16.mxu1 %v3703_v2 }
 0x45d   :  { %3238 = vmatmul.mubr.msk.bf16.vlgmr.msra.gmra.mrb[16].mxu0 %vm429_vm2, %v723_v60 }
 0x45e   :  { %3249 = vmatprep.mubr.msk.bf16.mxu0 %vm3704_vm1, %v3703_v2 }
 0x461   :  { %3232 = vmatmul.mubr.msk.bf16.vlgmr.msra.gmra.mrb[12].mxu1 %vm429_vm2, %v670_v55 }
 0x462   :  { %3243 = vmatprep.mubr.msk.bf16.mxu1 %vm3704_vm1, %v3703_v2 }
 0x528   :  { %v4006_v61 = vpop.f32.mrb[12].mxu0 }
 0x529   :  { %v3227_v1 = vpop.f32.mrb[13].mxu0 }
 0x52a   :  { %v4008_v3 = vpop.f32.mrb[14].mxu0 }
 0x52b   :  { %v3228_v4 = vpop.f32.mrb[15].mxu0 }
 0x52c   :  { %v4010_v5 = vpop.f32.mrb[8].mxu1 }
 0x52d   :  { %v3221_v6 = vpop.f32.mrb[9].mxu1 }
 0x52e   :  { %v4012_v7 = vpop.f32.mrb[10].mxu1 }
 0x52f   :  { %v3222_v8 = vpop.f32.mrb[11].mxu1 }
 0x530   :  { %v767_v9 = vpop.f32.mrb[16].mxu0 }
 0x531   :  { %v3239_v10 = vpop.f32.mrb[17].mxu0  ;;  %v776_v14 = vmul.f32 0.25, %v767_v9 }
 0x532   :  { %v770_v11 = vpop.f32.mrb[18].mxu0 }
 0x533   :  { %v3240_v12 = vpop.f32.mrb[19].mxu0  ;;  %v777_v25 = vmul.f32 0.25, %v770_v11  ;;  %v780_v28 = vadd.f32 %v776_v14, %v3968_v0  ;;  %v3454_v14 = vld [vmem:[%s4536_s2 + $0x8] sm:$0xff]  }
 0x534   :  { %v714_v13 = vpop.f32.mrb[12].mxu1 }
 0x535   :  { %v774_v15 = vmul.f32 0.25, %v714_v13  ;;  %v3233_v16 = vpop.f32.mrb[13].mxu1  ;;  %v788_v30 = vsel %vm429_vm2, %v780_v28, -inf  ;;  %v781_v31 = vadd.f32 %v777_v25, %v3968_v0  ;;  %v3453_v13 = vld [vmem:[%s4536_s2] sm:$0xff]  }
 0x536   :  { %v717_v17 = vpop.f32.mrb[14].mxu1 }
 0x537   :  { %v775_v18 = vmul.f32 0.25, %v717_v17  ;;  %v3234_v19 = vpop.f32.mrb[15].mxu1  ;;  %v778_v20 = vadd.f32 %v774_v15, %v3966_v53  ;;  %v791_v32 = vsel %vm429_vm2, %v781_v31, -inf }
 0x539   :  { %v782_v26 = vsel %vm429_vm2, %v778_v20, -inf  ;;  %v779_v27 = vadd.f32 %v775_v18, %v3966_v53 }
 0x53a   :  { %783 = vmax.xlane.f32.xlu0 %v782_v26 }
 0x53b   :  { %v785_v29 = vsel %vm429_vm2, %v779_v27, -inf }
 0x53c   :  { %786 = vmax.xlane.f32.xlu1 %v785_v29 }
 0x53e   :  { %789 = vmax.xlane.f32.xlu0 %v788_v30 }
 0x542   :  { %792 = vmax.xlane.f32.xlu0 %v791_v32 }
 0x5c7   :  { %v784_v22 = vpop.xlane.xlu0 %783 }
 0x5c8   :  { %v794_v33 = vsub.f32 %v778_v20, %v784_v22 }
 0x5c9   :  { %v787_v34 = vpop.xlane.xlu1 %786 }
 0x5ca   :  { %v798_v39 = vmul.f32 1.442695, %v794_v33  ;;  %v795_v41 = vsub.f32 %v779_v27, %v787_v34 }
 0x5cb   :  { %v790_v35 = vpop.xlane.xlu0 %789 }
 0x5cc   :  { %v796_v38 = vsub.f32 %v780_v28, %v790_v35  ;;  %v800_v45 = vmul.f32 1.442695, %v795_v41 }
 0x5ce   :  { %v802_v42 = vmul.f32 1.442695, %v796_v38 }
 0x5cf   :  { %v793_v43 = vpop.xlane.xlu0 %792 }
 0x5d0   :  { %3505 = vpow2.f32 %v802_v42  ;;  %v797_v44 = vsub.f32 %v781_v31, %v793_v43 }
 0x5d1   :  { %3507 = vpow2.f32 %v798_v39 }
 0x5d2   :  { %v804_v46 = vmul.f32 1.442695, %v797_v44 }
 0x5d4   :  { %3509 = vpow2.f32 %v804_v46 }
 0x5d5   :  { %3511 = vpow2.f32 %v800_v45 }
 0x5da   :  { %v3506_v47 = vpop.eup %3505 }
 0x5db   :  { %v812_v48 = vsel %vm429_vm2, %v3506_v47, 0.0  ;;  %v3508_v49 = vpop.eup %3507 }
 0x5dc   :  { %813 = vadd.xlane.f32.xlu0 %v812_v48  ;;  %v806_v50 = vsel %vm429_vm2, %v3508_v49, 0.0 }
 0x5de   :  { %v3510_v23 = vpop.eup %3509 }
 0x5df   :  { %v815_v51 = vsel %vm429_vm2, %v3510_v23, 0.0  ;;  %v3512_v24 = vpop.eup %3511 }
 0x5e0   :  { %807 = vadd.xlane.f32.xlu0 %v806_v50  ;;  %816 = vadd.xlane.f32.xlu1 %v815_v51  ;;  %v809_v52 = vsel %vm429_vm2, %v3512_v24, 0.0 }
 0x5e4   :  { %810 = vadd.xlane.f32.xlu1 %v809_v52 }
 0x5f5   :  { %877 = vrot.lane.b32.xlu1 %v3946_v36, %s3706_s29 }
 0x5f6   :  { %829 = vrot.lane.b32.xlu0 %v3948_v37, %s3706_s29 }
 0x669   :  { %v814_v21 = vpop.xlane.xlu0 %813 }
 0x66a   :  { %3513 = vrcp.f32 %v814_v21 }
 0x66d   :  { %v808_v54 = vpop.xlane.xlu0 %807  ;;  %v817_v55 = vpop.xlane.xlu1 %816 }
 0x66e   :  { %3515 = vrcp.f32 %v817_v55 }
 0x66f   :  { %3517 = vrcp.f32 %v808_v54 }
 0x671   :  { %v830_v56 = vpop.permute.xlu0 %829  ;;  %v811_v59 = vpop.xlane.xlu1 %810 }
 0x672   :  { %3519 = vrcp.f32 %v811_v59  ;;  %3242 = vmatpush3.bf16.msra.mxu1 %v830_v56 }
 0x673   :  { %3253 = vmatprep.subr.bf16.mxu1 %v3453_v13 }
 0x674   :  { %v3514_v1 = vpop.eup %3513 }
 0x675   :  { %v878_v60 = vpop.permute.xlu1 %877  ;;  %v824_v8 = vmul.f32 %v3514_v1, %v3506_v47 }
 0x676   :  { %3248 = vmatpush3.bf16.msra.mxu0 %v878_v60 }
 0x678   :  { %v3516_v4 = vpop.eup %3515 }
 0x679   :  { %v3518_v6 = vpop.eup %3517  ;;  %v825_v36 = vmul.f32 %v3516_v4, %v3510_v23 }
 0x67a   :  { %v822_v37 = vmul.f32 %v3518_v6, %v3508_v49 }
 0x67b   :  { %v827_v10 = vpack.c.bf16 %v825_v36, %v824_v8 }
 0x67c   :  { %v3520_v9 = vpop.eup %3519 }
 0x67d   :  { %v823_v11 = vmul.f32 %v3520_v9, %v3512_v24  ;;  %3250 = vmatmul.mubr.msk.bf16.vlgmr.msra.gmra.mrb[20].mxu0 %vm429_vm2, %v827_v10 }
 0x67f   :  { %v826_v12 = vpack.c.bf16 %v823_v11, %v822_v37 }
 0x681   :  { %3244 = vmatmul.mubr.msk.bf16.vlgmr.msra.gmra.mrb[16].mxu1 %vm429_vm2, %v826_v12 }
 0x682   :  { %3254 = vmatpush3.bf16.msra.mxu1 %v3453_v13 }
 0x683   :  { %3255 = vmatprep.subr.bf16.mxu1 %v3454_v14 }
 0x686   :  { %3256 = vmatpush3.bf16.msra.mxu1 %v3454_v14  ;;  %v3455_v14 = vld [vmem:[%s4493_s12] sm:$0xff]  }
 0x687   :  { %3261 = vmatprep.subr.bf16.mxu0 %v3455_v14 }
 0x688   :  { %3262 = vmatpush3.bf16.msra.mxu0 %v3455_v14 }
 0x750   :  { %v917_v15 = vpop.f32.mrb[20].mxu0 }
 0x751   :  { %v3251_v16 = vpop.f32.mrb[21].mxu0 }
 0x752   :  { %v920_v17 = vpop.f32.mrb[22].mxu0 }
 0x753   :  { %v3430_v18 = vpack.i.bf16 %v920_v17, %v917_v15  ;;  %v3252_v19 = vpop.f32.mrb[23].mxu0  ;;  %v3456_v15 = vld [vmem:[%s4493_s12 + $0x8] sm:$0xff]  }
 0x754   :  { %v869_v20 = vpop.f32.mrb[16].mxu1  ;;  %3263 = vmatprep.subr.bf16.mxu0 %v3456_v15 }
 0x755   :  { %v3245_v25 = vpop.f32.mrb[17].mxu1  ;;  %3264 = vmatpush3.bf16.msra.mxu0 %v3456_v15 }
 0x756   :  { %v872_v26 = vpop.f32.mrb[18].mxu1 }
 0x757   :  { %v3425_v27 = vpack.i.bf16 %v872_v26, %v869_v20  ;;  %v3246_v28 = vpop.f32.mrb[19].mxu1 }
 0x759   :  { %3426 = vrot.lane.b32.xlu1 %v3425_v27, %s4516_s8 }
 0x75d   :  { %3431 = vrot.lane.b32.xlu1 %v3430_v18, %s4516_s8 }
 0x7cb   :  { %v3427_v29 = vpop.permute.xlu1 %3426 }
 0x7cc   :  { %v3429_v30 = vunpack.i.h.bf16 %v3427_v29  ;;  %v3428_v31 = vunpack.i.l.bf16 %v3427_v29 }
 0x7ce   :  { %v941_v32 = vsel %vm429_vm2, %v4012_v7, %v3429_v30  ;;  %v940_v22 = vsel %vm429_vm2, %v4010_v5, %v3428_v31  ;;  %v2968_v7 = vld [vmem:[%s4537_s5] ss:$0 sm:$0xff] }
 0x7cf   :  { %v944_v33 = vpack.c.bf16 %v941_v32, %v940_v22  ;;  %v3432_v34 = vpop.permute.xlu1 %3431  ;;  %v2973_v22 = vld [vmem:[%s4538_s7] ss:$0 sm:$0xff] }
 0x7d0   :  { %v3434_v35 = vunpack.i.h.bf16 %v3432_v34  ;;  %v3433_v38 = vunpack.i.l.bf16 %v3432_v34 }
 0x7d1   :  { %3257 = vmatprep.mubr.msk.bf16.mxu1 %vm91_vm0, %v944_v33 }
 0x7d2   :  { %v943_v39 = vsel %vm429_vm2, %v4008_v3, %v3434_v35  ;;  %v942_v41 = vsel %vm429_vm2, %v4006_v61, %v3433_v38 }
 0x7d3   :  { %v945_v42 = vpack.c.bf16 %v943_v39, %v942_v41  ;;  %v2974_v41 = vld [vmem:[%s4539_s28] ss:$0 sm:$0xff] }
 0x7d5   :  { %3258 = vmatmul.mubr.msk.bf16.vlgmr.msra.gmra.mrb[20].mxu1 %vm91_vm0, %v945_v42 }
 0x8a8   :  { %v3259_v5 = vpop.f32.mrb[20].mxu1 }
 0x8a9   :  { %v1009_v43 = vpop.f32.mrb[21].mxu1  ;;  %v1018_v44 = vadd.f32 %v3259_v5, %v2968_v7 }
 0x8aa   :  { %v1010_v45 = vadd.f32 %v2968_v7, %v1009_v43  ;;  %v3260_v46 = vpop.f32.mrb[22].mxu1 }
 0x8ab   :  { %v1012_v47 = vpop.f32.mrb[23].mxu1  ;;  %v1021_v3 = vadd.f32 %v3260_v46, %v2968_v7  ;;  %v1026_v50 = vadd.f32 %v1018_v44, %v3904_v62 }
 0x8ac   :  { %v1013_v48 = vadd.f32 %v2968_v7, %v1012_v47  ;;  %v1024_v49 = vadd.f32 %v1010_v45, %v3896_v57 }
 0x8ad   :  { %v1036_v24 = vsel %vm91_vm0, %v1026_v50, 0.0  ;;  %v1027_v52 = vadd.f32 %v1021_v3, %v3906_v63 }
 0x8ae   :  { %v1030_v23 = vsel %vm91_vm0, %v1024_v49, 0.0  ;;  %v1025_v61 = vadd.f32 %v1013_v48, %v3898_v58 }
 0x8af   :  { %1031 = vadd.xlane.f32.xlu0 %v1030_v23  ;;  %v1039_v21 = vsel %vm91_vm0, %v1027_v52, 0.0 }
 0x8b0   :  { %v1033_v51 = vsel %vm91_vm0, %v1025_v61, 0.0 }
 0x8b1   :  { %1034 = vadd.xlane.f32.xlu1 %v1033_v51  ;;  %v3459_v51 = vld [vmem:[%s4495_s14 + $0x10] sm:$0xff]  }
 0x8b3   :  { %1037 = vadd.xlane.f32.xlu0 %v1036_v24  ;;  %v3460_v24 = vld [vmem:[%s4495_s14 + $0x18] sm:$0xff]  }
 0x8b7   :  { %1040 = vadd.xlane.f32.xlu0 %v1039_v21 }
 0x93c   :  { %v1032_v57 = vpop.xlane.xlu0 %1031 }
 0x93d   :  { %v1042_v54 = vmul.f32 0.03125, %v1032_v57 }
 0x93e   :  { %v1035_v55 = vpop.xlane.xlu1 %1034 }
 0x93f   :  { %v1046_v56 = vsub.f32 %v1024_v49, %v1042_v54  ;;  %v1043_v59 = vmul.f32 0.03125, %v1035_v55 }
 0x940   :  { %v1038_v58 = vpop.xlane.xlu0 %1037 }
 0x941   :  { %v1047_v60 = vsub.f32 %v1025_v61, %v1043_v59  ;;  %v1044_v62 = vmul.f32 0.03125, %v1038_v58  ;;  %v1050_v1 = vmul.f32 %v1046_v56, %v1046_v56  ;;  %v3457_v61 = vld [vmem:[%s4495_s14] sm:$0xff]  }
 0x942   :  { %3269 = vmatprep.subr.bf16.mxu1 %v3457_v61 }
 0x943   :  { %v1048_v4 = vsub.f32 %v1026_v50, %v1044_v62  ;;  %v1054_v6 = vsel %vm91_vm0, %v1050_v1, 0.0  ;;  %v1051_v8 = vmul.f32 %v1047_v60, %v1047_v60  ;;  %v3458_v50 = vld [vmem:[%s4495_s14 + $0x8] sm:$0xff]   ;;  %3270 = vmatpush3.bf16.msra.mxu1 %v3457_v61 }
 0x944   :  { %1055 = vadd.xlane.f32.xlu0 %v1054_v6  ;;  %v1041_v36 = vpop.xlane.xlu0 %1040  ;;  %3271 = vmatprep.subr.bf16.mxu1 %v3458_v50 }
 0x945   :  { %v1045_v63 = vmul.f32 0.03125, %v1041_v36  ;;  %v1057_v9 = vsel %vm91_vm0, %v1051_v8, 0.0  ;;  %v1052_v10 = vmul.f32 %v1048_v4, %v1048_v4 }
 0x946   :  { %1058 = vadd.xlane.f32.xlu1 %v1057_v9 }
 0x947   :  { %v1049_v37 = vsub.f32 %v1027_v52, %v1045_v63  ;;  %v1060_v11 = vsel %vm91_vm0, %v1052_v10, 0.0  ;;  %3272 = vmatpush3.bf16.msra.mxu1 %v3458_v50  ;;  %v2975_v52 = vld [vmem:[%s4494_s13] ss:$0 sm:$0xff] }
 0x948   :  { %1061 = vadd.xlane.f32.xlu0 %v1060_v11  ;;  %3273 = vmatprep.subr.bf16.mxu1 %v3459_v51 }
 0x949   :  { %v1053_v12 = vmul.f32 %v1049_v37, %v1049_v37 }
 0x94b   :  { %v1063_v13 = vsel %vm91_vm0, %v1053_v12, 0.0  ;;  %3274 = vmatpush3.bf16.msra.mxu1 %v3459_v51 }
 0x94c   :  { %1064 = vadd.xlane.f32.xlu1 %v1063_v13  ;;  %3275 = vmatprep.subr.bf16.mxu1 %v3460_v24 }
 0x94f   :  { %3276 = vmatpush3.bf16.msra.mxu1 %v3460_v24 }
 0x9d1   :  { %v1056_v16 = vpop.xlane.xlu0 %1055 }
 0x9d2   :  { %v1066_v17 = vmul.f32 0.03125, %v1056_v16 }
 0x9d3   :  { %v1059_v18 = vpop.xlane.xlu1 %1058 }
 0x9d4   :  { %v1070_v19 = vadd.f32 1e-12, %v1066_v17  ;;  %v1067_v20 = vmul.f32 0.03125, %v1059_v18 }
 0x9d5   :  { %v1062_v25 = vpop.xlane.xlu0 %1061 }
 0x9d6   :  { %3521 = vrsqrt.f32 %v1070_v19  ;;  %v1071_v26 = vadd.f32 1e-12, %v1067_v20  ;;  %v1068_v27 = vmul.f32 0.03125, %v1062_v25 }
 0x9d8   :  { %3523 = vrsqrt.f32 %v1071_v26  ;;  %v1072_v28 = vadd.f32 1e-12, %v1068_v27 }
 0x9d9   :  { %v1065_v29 = vpop.xlane.xlu1 %1064 }
 0x9da   :  { %3525 = vrsqrt.f32 %v1072_v28  ;;  %v1069_v30 = vmul.f32 0.03125, %v1065_v29 }
 0x9dc   :  { %v1073_v31 = vadd.f32 1e-12, %v1069_v30 }
 0x9de   :  { %3527 = vrsqrt.f32 %v1073_v31 }
 0x9e0   :  { %v3522_v32 = vpop.eup %3521 }
 0x9e1   :  { %v1078_v33 = vmul.f32 %v3522_v32, %v1046_v56 }
 0x9e2   :  { %v3524_v34 = vpop.eup %3523 }
 0x9e3   :  { %v1079_v35 = vmul.f32 %v3524_v34, %v1047_v60  ;;  %v1088_v38 = vmul.f32 %v2973_v22, %v1078_v33 }
 0x9e4   :  { %v3526_v39 = vpop.eup %3525 }
 0x9e5   :  { %v1080_v42 = vmul.f32 %v3526_v39, %v1048_v4  ;;  %v1089_v7 = vmul.f32 %v2973_v22, %v1079_v35  ;;  %v4077_v5 = vadd.f32 %v2974_v41, %v1088_v38 }
 0x9e7   :  { %v4079_v43 = vadd.f32 %v2974_v41, %v1089_v7  ;;  %v1090_v45 = vmul.f32 %v2973_v22, %v1080_v42 }
 0x9e8   :  { %v3528_v44 = vpop.eup %3527 }
 0x9e9   :  { %v1081_v46 = vmul.f32 %v3528_v44, %v1049_v37  ;;  %v1102_v47 = vpack.c.bf16 %v4079_v43, %v4077_v5  ;;  %v4084_v49 = vadd.f32 %v2974_v41, %v1090_v45  ;;  %v2980_v45 = vld [vmem:[%s4496_s15] ss:$0 sm:$0xff] }
 0x9eb   :  { %v1091_v48 = vmul.f32 %v2973_v22, %v1081_v46  ;;  %3265 = vmatprep.mubr.msk.bf16.mxu0 %vm91_vm0, %v1102_v47 }
 0x9ed   :  { %v4086_v3 = vadd.f32 %v2974_v41, %v1091_v48 }
 0x9ef   :  { %v1103_v23 = vpack.c.bf16 %v4086_v3, %v4084_v49 }
 0x9f1   :  { %3266 = vmatmul.mubr.msk.bf16.vlgmr.msra.gmra.mrb[24].mxu0 %vm91_vm0, %v1103_v23 }
 0xac4   :  { %v3267_v21 = vpop.f32.mrb[24].mxu0 }
 0xac5   :  { %v1176_v57 = vadd.f32 %v3267_v21, %v2975_v52  ;;  %v1167_v54 = vpop.f32.mrb[25].mxu0 }
 0xac6   :  { %v1168_v55 = vadd.f32 %v2975_v52, %v1167_v54  ;;  %v3268_v56 = vpop.f32.mrb[26].mxu0 }
 0xac7   :  { %v1188_v59 = vmul.f32 0.044715, %v1176_v57  ;;  %v1179_v58 = vadd.f32 %v3268_v56, %v2975_v52  ;;  %v1170_v60 = vpop.f32.mrb[27].mxu0  ;;  %v1184_v31 = vmul.f32 0.5, %v1176_v57 }
 0xac8   :  { %v1186_v62 = vmul.f32 0.044715, %v1168_v55  ;;  %v1171_v1 = vadd.f32 %v2975_v52, %v1170_v60  ;;  %v1182_v33 = vmul.f32 0.5, %v1168_v55 }
 0xac9   :  { %v1192_v4 = vmul.f32 %v1188_v59, %v1176_v57  ;;  %v1189_v6 = vmul.f32 0.044715, %v1179_v58  ;;  %v1185_v32 = vmul.f32 0.5, %v1179_v58 }
 0xaca   :  { %v1190_v8 = vmul.f32 %v1186_v62, %v1168_v55  ;;  %v1187_v36 = vmul.f32 0.044715, %v1171_v1  ;;  %v1183_v34 = vmul.f32 0.5, %v1171_v1 }
 0xacb   :  { %v1196_v63 = vmul.f32 %v1192_v4, %v1176_v57  ;;  %v1193_v9 = vmul.f32 %v1189_v6, %v1179_v58 }
 0xacc   :  { %v1194_v10 = vmul.f32 %v1190_v8, %v1168_v55  ;;  %v1191_v37 = vmul.f32 %v1187_v36, %v1171_v1 }
 0xacd   :  { %v1200_v11 = vadd.f32 %v1196_v63, %v1176_v57  ;;  %v1197_v12 = vmul.f32 %v1193_v9, %v1179_v58 }
 0xace   :  { %v1198_v13 = vadd.f32 %v1194_v10, %v1168_v55  ;;  %v1195_v14 = vmul.f32 %v1191_v37, %v1171_v1 }
 0xacf   :  { %v1204_v15 = vmul.f32 0.7978846, %v1200_v11  ;;  %v1201_v16 = vadd.f32 %v1197_v12, %v1179_v58 }
 0xad0   :  { %v1202_v17 = vmul.f32 0.7978846, %v1198_v13  ;;  %v1199_v18 = vadd.f32 %v1195_v14, %v1171_v1 }
 0xad1   :  { %3529 = vtanh.f32 %v1204_v15  ;;  %v1205_v19 = vmul.f32 0.7978846, %v1201_v16  ;;  %v3461_v16 = vld [vmem:[%s4531_s6 + $0x30] sm:$0xff]  }
 0xad2   :  { %3531 = vtanh.f32 %v1202_v17  ;;  %v1203_v20 = vmul.f32 0.7978846, %v1199_v18  ;;  %v3462_v17 = vld [vmem:[%s4531_s6 + $0x50] sm:$0xff]   ;;  %3281 = vmatprep.subr.bf16.mxu0 %v3461_v16  ;;  %v3463_v18 = vld [vmem:[%s4531_s6 + $0x38] sm:$0xff]  }
 0xad3   :  { %3533 = vtanh.f32 %v1205_v19  ;;  %3297 = vmatprep.subr.bf16.mxu1 %v3462_v17  ;;  %3282 = vmatpush3.bf16.msra.mxu0 %v3461_v16  ;;  %v3464_v19 = vld [vmem:[%s4531_s6 + $0x58] sm:$0xff]  }
 0xad4   :  { %3535 = vtanh.f32 %v1203_v20  ;;  %3283 = vmatprep.subr.bf16.mxu0 %v3463_v18  ;;  %v3465_v20 = vld [vmem:[%s4531_s6 + $0x40] sm:$0xff]  }
 0xad7   :  { %3284 = vmatpush3.bf16.msra.mxu0 %v3463_v18 }
 0xad8   :  { %3289 = vmatprep.subr.bf16.mxu0 %v3465_v20 }
 0xadb   :  { %v3530_v25 = vpop.eup %3529 }
 0xadc   :  { %v3532_v26 = vpop.eup %3531  ;;  %v1212_v27 = vadd.f32 1.0, %v3530_v25 }
 0xadd   :  { %v3534_v28 = vpop.eup %3533  ;;  %v1210_v29 = vadd.f32 1.0, %v3532_v26 }
 0xade   :  { %v3536_v30 = vpop.eup %3535  ;;  %v1213_v22 = vadd.f32 1.0, %v3534_v28  ;;  %v1216_v38 = vmul.f32 %v1212_v27, %v1184_v31 }
 0xadf   :  { %v1211_v35 = vadd.f32 1.0, %v3536_v30  ;;  %v1214_v41 = vmul.f32 %v1210_v29, %v1182_v33 }
 0xae0   :  { %v1217_v39 = vmul.f32 %v1213_v22, %v1185_v32 }
 0xae1   :  { %v1215_v42 = vmul.f32 %v1211_v35, %v1183_v34 }
 0xae2   :  { %v1219_v7 = vpack.c.bf16 %v1217_v39, %v1216_v38  ;;  %v2987_v39 = vld [vmem:[%s4497_s16] ss:$0 sm:$0xff] }
 0xae3   :  { %v1218_v44 = vpack.c.bf16 %v1215_v42, %v1214_v41 }
 0xae5   :  { %3277 = vmatprep.mubr.msk.bf16.mxu1 %vm1259_vm3, %v1218_v44 }
 0xae6   :  { %3278 = vmatmul.mubr.msk.bf16.vlgmr.msra.gmra.mrb[24].mxu1 %vm1259_vm3, %v1219_v7 }
 0xae7   :  { %3298 = vmatpush3.bf16.msra.mxu1 %v3462_v17  ;;  %v3009_v17 = vld [vmem:[%s4534_s4 + $0x4] ss:$0 sm:$0xff] }
 0xae8   :  { %3299 = vmatprep.subr.bf16.mxu1 %v3464_v19 }
 0xaeb   :  { %3300 = vmatpush3.bf16.msra.mxu1 %v3464_v19 }
 0xaec   :  { %3311 = vmatprep.subr.bf16.mxu1 %v3703_v2 }
 0xbb9   :  { %v3279_v46 = vpop.f32.mrb[24].mxu1 }
 0xbba   :  { %v1300_v47 = vpop.f32.mrb[25].mxu1  ;;  %v1309_v48 = vadd.f32 %v3279_v46, %v2980_v45  ;;  %v2988_v46 = vld [vmem:[%s4498_s17] ss:$0 sm:$0xff] }
 0xbbb   :  { %v1301_v23 = vadd.f32 %v2980_v45, %v1300_v47  ;;  %v3280_v61 = vpop.f32.mrb[26].mxu1 }
 0xbbc   :  { %v1303_v50 = vpop.f32.mrb[27].mxu1  ;;  %v1312_v51 = vadd.f32 %v3280_v61, %v2980_v45  ;;  %v1317_v54 = vadd.f32 %v1309_v48, %v4084_v49 }
 0xbbd   :  { %v1304_v24 = vadd.f32 %v2980_v45, %v1303_v50  ;;  %v1315_v52 = vadd.f32 %v1301_v23, %v4077_v5 }
 0xbbe   :  { %v1318_v56 = vadd.f32 %v1312_v51, %v4086_v3  ;;  %v1327_v59 = vsel %vm91_vm0, %v1317_v54, 0.0 }
 0xbbf   :  { %v1321_v21 = vsel %vm91_vm0, %v1315_v52, 0.0  ;;  %v1316_v57 = vadd.f32 %v1304_v24, %v4079_v43 }
 0xbc0   :  { %1322 = vadd.xlane.f32.xlu0 %v1321_v21  ;;  %v1330_v58 = vsel %vm91_vm0, %v1318_v56, 0.0 }
 0xbc1   :  { %v1324_v55 = vsel %vm91_vm0, %v1316_v57, 0.0 }
 0xbc2   :  { %1325 = vadd.xlane.f32.xlu1 %v1324_v55 }
 0xbc4   :  { %1328 = vadd.xlane.f32.xlu0 %v1327_v59 }
 0xbc6   :  { %1331 = vadd.xlane.f32.xlu1 %v1330_v58  ;;  %v3004_v58 = vld [vmem:[%s4534_s4 + $0x3] ss:$0 sm:$0xff] }
 0xc4d   :  { %v1323_v60 = vpop.xlane.xlu0 %1322 }
 0xc4e   :  { %v1333_v5 = vmul.f32 0.03125, %v1323_v60 }
 0xc4f   :  { %v1326_v62 = vpop.xlane.xlu1 %1325 }
 0xc50   :  { %v1337_v1 = vsub.f32 %v1315_v52, %v1333_v5  ;;  %v1334_v4 = vmul.f32 0.03125, %v1326_v62  ;;  %v3014_v5 = vld [vmem:[%s4534_s4 + $0x5] ss:$0 sm:$0xff] }
 0xc51   :  { %v1329_v43 = vpop.xlane.xlu0 %1328 }
 0xc52   :  { %v1338_v6 = vsub.f32 %v1316_v57, %v1334_v4  ;;  %v1335_v49 = vmul.f32 0.03125, %v1329_v43  ;;  %v1341_v8 = vmul.f32 %v1337_v1, %v1337_v1 }
 0xc53   :  { %v1332_v36 = vpop.xlane.xlu1 %1331 }
 0xc54   :  { %v1339_v63 = vsub.f32 %v1317_v54, %v1335_v49  ;;  %v1336_v9 = vmul.f32 0.03125, %v1332_v36  ;;  %v1345_v3 = vsel %vm91_vm0, %v1341_v8, 0.0  ;;  %v1342_v10 = vmul.f32 %v1338_v6, %v1338_v6 }
 0xc55   :  { %1346 = vadd.xlane.f32.xlu0 %v1345_v3 }
 0xc56   :  { %v1340_v37 = vsub.f32 %v1318_v56, %v1336_v9  ;;  %v1348_v11 = vsel %vm91_vm0, %v1342_v10, 0.0  ;;  %v1343_v12 = vmul.f32 %v1339_v63, %v1339_v63  ;;  %v3466_v56 = vld [vmem:[%s4531_s6 + $0x48] sm:$0xff]  }
 0xc57   :  { %1349 = vadd.xlane.f32.xlu1 %v1348_v11 }
 0xc58   :  { %v1351_v13 = vsel %vm91_vm0, %v1343_v12, 0.0  ;;  %v1344_v14 = vmul.f32 %v1340_v37, %v1340_v37 }
 0xc59   :  { %1352 = vadd.xlane.f32.xlu0 %v1351_v13 }
 0xc5a   :  { %v1354_v15 = vsel %vm91_vm0, %v1344_v14, 0.0 }
 0xc5b   :  { %1355 = vadd.xlane.f32.xlu1 %v1354_v15 }
 0xce2   :  { %v1347_v25 = vpop.xlane.xlu0 %1346 }
 0xce3   :  { %v1357_v26 = vmul.f32 0.03125, %v1347_v25 }
 0xce4   :  { %v1350_v27 = vpop.xlane.xlu1 %1349 }
 0xce5   :  { %v1361_v28 = vadd.f32 1e-12, %v1357_v26  ;;  %v1358_v29 = vmul.f32 0.03125, %v1350_v27 }
 0xce6   :  { %v1353_v30 = vpop.xlane.xlu0 %1352 }
 0xce7   :  { %3537 = vrsqrt.f32 %v1361_v28  ;;  %v1362_v31 = vadd.f32 1e-12, %v1358_v29  ;;  %v1359_v32 = vmul.f32 0.03125, %v1353_v30 }
 0xce8   :  { %v1356_v22 = vpop.xlane.xlu1 %1355 }
 0xce9   :  { %3539 = vrsqrt.f32 %v1362_v31  ;;  %v1363_v33 = vadd.f32 1e-12, %v1359_v32  ;;  %v1360_v34 = vmul.f32 0.03125, %v1356_v22 }
 0xceb   :  { %3541 = vrsqrt.f32 %v1363_v33  ;;  %v1364_v35 = vadd.f32 1e-12, %v1360_v34 }
 0xced   :  { %3543 = vrsqrt.f32 %v1364_v35 }
 0xcf1   :  { %v3538_v38 = vpop.eup %3537 }
 0xcf2   :  { %v1369_v41 = vmul.f32 %v3538_v38, %v1337_v1 }
 0xcf3   :  { %v3540_v42 = vpop.eup %3539 }
 0xcf4   :  { %v1370_v7 = vmul.f32 %v3540_v42, %v1338_v6  ;;  %v1379_v44 = vmul.f32 %v2987_v39, %v1369_v41 }
 0xcf5   :  { %v3542_v45 = vpop.eup %3541 }
 0xcf6   :  { %v1371_v47 = vmul.f32 %v3542_v45, %v1339_v63  ;;  %v1380_v48 = vmul.f32 %v2987_v39, %v1370_v7  ;;  %v4145_v51 = vadd.f32 %v2988_v46, %v1379_v44 }
 0xcf7   :  { %v3544_v23 = vpop.eup %3543 }
 0xcf8   :  { %v1381_v61 = vmul.f32 %v2987_v39, %v1371_v47  ;;  %v1372_v50 = vmul.f32 %v3544_v23, %v1340_v37  ;;  %v4147_v24 = vadd.f32 %v2988_v46, %v1380_v48 }
 0xcfa   :  { %v1382_v52 = vmul.f32 %v2987_v39, %v1372_v50  ;;  %v1410_v21 = vpack.c.bf16 %v4147_v24, %v4145_v51  ;;  %v4153_v57 = vadd.f32 %v2988_v46, %v1381_v61 }
 0xcfc   :  { %3285 = vmatprep.mubr.msk.bf16.mxu0 %vm91_vm0, %v1410_v21  ;;  %3301 = vmatprep.mubr.msk.bf16.mxu1 %vm91_vm0, %v1410_v21  ;;  %v4155_v54 = vadd.f32 %v2988_v46, %v1382_v52 }
 0xcfe   :  { %v1411_v55 = vpack.c.bf16 %v4155_v54, %v4153_v57 }
 0xd00   :  { %3286 = vmatmul.mubr.msk.bf16.vlgmr.msra.gmra.mrb[28].mxu0 %vm91_vm0, %v1411_v55  ;;  %3302 = vmatmul.mubr.msk.bf16.vlgmr.msra.gmra.mrb[28].mxu1 %vm91_vm0, %v1411_v55 }
 0xd01   :  { %3290 = vmatpush3.bf16.msra.mxu0 %v3465_v20  ;;  %3293 = vmatprep.mubr.msk.bf16.mxu0 %vm91_vm0, %v1410_v21 }
 0xd02   :  { %3291 = vmatprep.subr.bf16.mxu0 %v3466_v56  ;;  %3313 = vmatprep.mubr.msk.bf16.mxu1 %vm3704_vm1, %v3703_v2 }
 0xd05   :  { %3292 = vmatpush3.bf16.msra.mxu0 %v3466_v56 }
 0xd06   :  { %3305 = vmatprep.subr.bf16.mxu0 %v3703_v2 }
 0xd08   :  { %3294 = vmatmul.mubr.msk.bf16.vlgmr.msra.gmra.mrb[32].mxu0 %vm91_vm0, %v1411_v55 }
 0xd09   :  { %3307 = vmatprep.mubr.msk.bf16.mxu0 %vm3704_vm1, %v3703_v2 }
 0xdd3   :  { %v3287_v59 = vpop.f32.mrb[28].mxu0  ;;  %v3303_v60 = vpop.f32.mrb[28].mxu1 }
 0xdd4   :  { %v1470_v62 = vpop.f32.mrb[29].mxu0  ;;  %v1604_v1 = vpop.f32.mrb[29].mxu1  ;;  %v1479_v6 = vadd.f32 %v3287_v59, %v3004_v58  ;;  %v1613_v49 = vadd.f32 %v3303_v60, %v3014_v5 }
 0xdd5   :  { %v3288_v4 = vpop.f32.mrb[30].mxu0  ;;  %v3304_v43 = vpop.f32.mrb[30].mxu1  ;;  %v1471_v3 = vadd.f32 %v3004_v58, %v1470_v62  ;;  %v1605_v10 = vadd.f32 %v3014_v5, %v1604_v1 }
 0xdd6   :  { %v1482_v8 = vadd.f32 %v3288_v4, %v3004_v58  ;;  %v1616_v36 = vadd.f32 %v3304_v43, %v3014_v5  ;;  %v1473_v63 = vpop.f32.mrb[31].mxu0  ;;  %v1607_v9 = vpop.f32.mrb[31].mxu1 }
 0xdd7   :  { %v1474_v37 = vadd.f32 %v3004_v58, %v1473_v63  ;;  %v1608_v11 = vadd.f32 %v3014_v5, %v1607_v9 }
 0xdd8   :  { %v4177_v12 = vpack.c.bf16 %v1482_v8, %v1479_v6  ;;  %v4179_v13 = vpack.c.bf16 %v1616_v36, %v1613_v49 }
 0xdd9   :  { %v4181_v14 = vpack.c.bf16 %v1474_v37, %v1471_v3  ;;  %v4183_v15 = vpack.c.bf16 %v1608_v11, %v1605_v10 }
 0xddb   :  { %v3295_v16 = vpop.f32.mrb[32].mxu0 }
 0xddc   :  { %v1537_v18 = vpop.f32.mrb[33].mxu0  ;;  %v1546_v20 = vadd.f32 %v3295_v16, %v3009_v17 }
 0xddd   :  { %v3296_v19 = vpop.f32.mrb[34].mxu0  ;;  %v1538_v27 = vadd.f32 %v3009_v17, %v1537_v18 }
 0xdde   :  { %v1549_v25 = vadd.f32 %v3296_v19, %v3009_v17  ;;  %v1540_v26 = vpop.f32.mrb[35].mxu0 }
 0xddf   :  { %v1541_v28 = vadd.f32 %v3009_v17, %v1540_v26 }
 0xde0   :  { %v1622_v29 = vpack.c.bf16 %v1549_v25, %v1546_v20 }
 0xde1   :  { %v4188_v30 = vpack.c.bf16 %v1541_v28, %v1538_v27 }
 0xde2   :  { %v1674_v31 = vsel %vm429_vm2, %v1622_v29, 0 }
 0xde3   :  { %3312 = vmatpush3.bf16.xpose.msra.mxu1 %v1674_v31  ;;  %v1627_v32 = vsel %vm429_vm2, %v4188_v30, 0 }
 0xde4   :  { %3306 = vmatpush3.bf16.xpose.msra.mxu0 %v1627_v32  ;;  %3323 = vmatprep.subr.bf16.mxu1 %v3703_v2 }
 0xde5   :  { %3317 = vmatprep.subr.bf16.mxu0 %v3703_v2 }
 0xdea   :  { %3314 = vmatmul.mubr.msk.bf16.vlgmr.msra.gmra.mrb[32].mxu1 %vm429_vm2, %v4177_v12 }
 0xdeb   :  { %3308 = vmatmul.mubr.msk.bf16.vlgmr.msra.gmra.mrb[36].mxu0 %vm429_vm2, %v4181_v14  ;;  %3324 = vmatpush3.bf16.msra.mxu1 %v4179_v13 }
 0xdec   :  { %3318 = vmatpush3.bf16.msra.mxu0 %v4183_v15  ;;  %3325 = vmatprep.mubr.msk.bf16.mxu1 %vm3704_vm1, %v3703_v2 }
 0xded   :  { %3335 = vmatprep.subr.bf16.mxu1 %v3703_v2  ;;  %3319 = vmatprep.mubr.msk.bf16.mxu0 %vm3704_vm1, %v3703_v2 }
 0xdee   :  { %3329 = vmatprep.subr.bf16.mxu0 %v3703_v2 }
 0xebd   :  { %v1710_v22 = vpop.f32.mrb[32].mxu1 }
 0xebe   :  { %v1663_v33 = vpop.f32.mrb[36].mxu0  ;;  %v3315_v34 = vpop.f32.mrb[33].mxu1  ;;  %v1719_v35 = vmul.f32 0.25, %v1710_v22 }
 0xebf   :  { %v1717_v38 = vmul.f32 0.25, %v1663_v33  ;;  %v3309_v39 = vpop.f32.mrb[37].mxu0  ;;  %v1713_v41 = vpop.f32.mrb[34].mxu1 }
 0xec0   :  { %v1666_v42 = vpop.f32.mrb[38].mxu0  ;;  %v3316_v7 = vpop.f32.mrb[35].mxu1  ;;  %v1720_v44 = vmul.f32 0.25, %v1713_v41  ;;  %v1723_v61 = vadd.f32 %v1719_v35, %v3968_v0 }
 0xec1   :  { %v1718_v45 = vmul.f32 0.25, %v1666_v42  ;;  %v3310_v46 = vpop.f32.mrb[39].mxu0  ;;  %v1721_v47 = vadd.f32 %v1717_v38, %v3966_v53 }
 0xec2   :  { %v1724_v52 = vadd.f32 %v1720_v44, %v3968_v0  ;;  %v1731_v21 = vsel %vm429_vm2, %v1723_v61, -inf }
 0xec3   :  { %v1725_v48 = vsel %vm429_vm2, %v1721_v47, -inf  ;;  %v1722_v23 = vadd.f32 %v1718_v45, %v3966_v53 }
 0xec4   :  { %1726 = vmax.xlane.f32.xlu0 %v1725_v48  ;;  %v1734_v55 = vsel %vm429_vm2, %v1724_v52, -inf }
 0xec5   :  { %v1728_v50 = vsel %vm429_vm2, %v1722_v23, -inf }
 0xec6   :  { %1729 = vmax.xlane.f32.xlu1 %v1728_v50 }
 0xec8   :  { %1732 = vmax.xlane.f32.xlu0 %v1731_v21 }
 0xeca   :  { %1735 = vmax.xlane.f32.xlu1 %v1734_v55 }
 0xedb   :  { %1918 = vrot.lane.b32.xlu1 %v1622_v29, %s3706_s29 }
 0xf51   :  { %v1727_v56 = vpop.xlane.xlu0 %1726 }
 0xf52   :  { %v1737_v59 = vsub.f32 %v1721_v47, %v1727_v56 }
 0xf53   :  { %v1730_v58 = vpop.xlane.xlu1 %1729 }
 0xf54   :  { %v1738_v5 = vsub.f32 %v1722_v23, %v1730_v58  ;;  %v1741_v1 = vmul.f32 1.442695, %v1737_v59 }
 0xf55   :  { %v1733_v60 = vpop.xlane.xlu0 %1732 }
 0xf56   :  { %v1739_v62 = vsub.f32 %v1723_v61, %v1733_v60  ;;  %v1743_v49 = vmul.f32 1.442695, %v1738_v5 }
 0xf57   :  { %v1736_v4 = vpop.xlane.xlu1 %1735 }
 0xf58   :  { %v1745_v43 = vmul.f32 1.442695, %v1739_v62  ;;  %v1740_v6 = vsub.f32 %v1724_v52, %v1736_v4 }
 0xf5a   :  { %3545 = vpow2.f32 %v1745_v43  ;;  %v1747_v8 = vmul.f32 1.442695, %v1740_v6 }
 0xf5b   :  { %3547 = vpow2.f32 %v1741_v1  ;;  %v1919_v17 = vpop.permute.xlu1 %1918 }
 0xf5c   :  { %3549 = vpow2.f32 %v1747_v8 }
 0xf5d   :  { %3551 = vpow2.f32 %v1743_v49 }
 0xf64   :  { %v3546_v36 = vpop.eup %3545 }
 0xf65   :  { %v3548_v63 = vpop.eup %3547  ;;  %v1755_v9 = vsel %vm429_vm2, %v3546_v36, 0.0 }
 0xf66   :  { %v3550_v3 = vpop.eup %3549  ;;  %1756 = vadd.xlane.f32.xlu0 %v1755_v9  ;;  %v1749_v11 = vsel %vm429_vm2, %v3548_v63, 0.0 }
 0xf67   :  { %v1758_v10 = vsel %vm429_vm2, %v3550_v3, 0.0  ;;  %v3552_v37 = vpop.eup %3551 }
 0xf68   :  { %1759 = vadd.xlane.f32.xlu1 %v1758_v10  ;;  %v1752_v16 = vsel %vm429_vm2, %v3552_v37, 0.0 }
 0xf6a   :  { %1750 = vadd.xlane.f32.xlu0 %v1749_v11 }
 0xf6c   :  { %1753 = vadd.xlane.f32.xlu1 %v1752_v16 }
 0xf7d   :  { %1862 = vrot.lane.b32.xlu1 %v4181_v14, %s3706_s29 }
 0xf80   :  { %1865 = vrot.lane.b32.xlu0 %v4188_v30, %s3706_s29  ;;  %v1924_v30 = vsel %vm429_vm2, %v1919_v17, 0 }
 0xf81   :  { %1915 = vrot.lane.b32.xlu1 %v4177_v12, %s3706_s29 }
 0xff3   :  { %v1757_v18 = vpop.xlane.xlu0 %1756 }
 0xff4   :  { %3553 = vrcp.f32 %v1757_v18 }
 0xff5   :  { %v1760_v19 = vpop.xlane.xlu1 %1759 }
 0xff6   :  { %3555 = vrcp.f32 %v1760_v19 }
 0xff7   :  { %v1751_v20 = vpop.xlane.xlu0 %1750 }
 0xff8   :  { %3557 = vrcp.f32 %v1751_v20 }
 0xff9   :  { %v1754_v25 = vpop.xlane.xlu1 %1753 }
 0xffa   :  { %3559 = vrcp.f32 %v1754_v25 }
 0xffb   :  { %v1866_v33 = vpop.permute.xlu0 %1865 }
 0xffc   :  { %v1871_v38 = vsel %vm429_vm2, %v1866_v33, 0 }
 0xffd   :  { %v1863_v34 = vpop.permute.xlu1 %1862 }
 0xffe   :  { %v3554_v26 = vpop.eup %3553 }
 0xfff   :  { %v1767_v28 = vmul.f32 %v3554_v26, %v3546_v36 }
0x1000   :  { %v3556_v27 = vpop.eup %3555 }
0x1001   :  { %v1768_v29 = vmul.f32 %v3556_v27, %v3550_v3  ;;  %v1916_v39 = vpop.permute.xlu1 %1915 }
0x1002   :  { %v3558_v14 = vpop.eup %3557 }
0x1003   :  { %v1770_v31 = vpack.c.bf16 %v1768_v29, %v1767_v28  ;;  %v1765_v22 = vmul.f32 %v3558_v14, %v3548_v63 }
0x1004   :  { %v3560_v32 = vpop.eup %3559 }
0x1005   :  { %v1766_v12 = vmul.f32 %v3560_v32, %v3552_v37  ;;  %3326 = vmatmul.mubr.msk.bf16.vlgmr.msra.gmra.mrb[36].mxu1 %vm429_vm2, %v1770_v31 }
0x1006   :  { %3336 = vmatpush3.bf16.xpose.msra.mxu1 %v1924_v30  ;;  %3337 = vmatprep.mubr.msk.bf16.mxu1 %vm3704_vm1, %v3703_v2 }
0x1007   :  { %v1769_v35 = vpack.c.bf16 %v1766_v12, %v1765_v22  ;;  %3347 = vmatprep.subr.bf16.mxu1 %v3703_v2 }
0x1009   :  { %3320 = vmatmul.mubr.msk.bf16.vlgmr.msra.gmra.mrb[40].mxu0 %vm429_vm2, %v1769_v35 }
0x100a   :  { %3330 = vmatpush3.bf16.xpose.msra.mxu0 %v1871_v38  ;;  %3331 = vmatprep.mubr.msk.bf16.mxu0 %vm3704_vm1, %v3703_v2 }
0x100b   :  { %3341 = vmatprep.subr.bf16.mxu0 %v3703_v2 }
0x100d   :  { %3338 = vmatmul.mubr.msk.bf16.vlgmr.msra.gmra.mrb[40].mxu1 %vm429_vm2, %v1916_v39 }
0x100e   :  { %3349 = vmatprep.mubr.msk.bf16.mxu1 %vm3704_vm1, %v3703_v2 }
0x1011   :  { %3332 = vmatmul.mubr.msk.bf16.vlgmr.msra.gmra.mrb[44].mxu0 %vm429_vm2, %v1863_v34 }
0x1012   :  { %3343 = vmatprep.mubr.msk.bf16.mxu0 %vm3704_vm1, %v3703_v2 }
0x10d8   :  { %v4242_v41 = vpop.f32.mrb[36].mxu1 }
0x10d9   :  { %v3327_v42 = vpop.f32.mrb[37].mxu1 }
0x10da   :  { %v4244_v7 = vpop.f32.mrb[38].mxu1 }
0x10db   :  { %v3328_v44 = vpop.f32.mrb[39].mxu1 }
0x10dc   :  { %v4246_v45 = vpop.f32.mrb[40].mxu0 }
0x10dd   :  { %v3321_v46 = vpop.f32.mrb[41].mxu0 }
0x10de   :  { %v4248_v47 = vpop.f32.mrb[42].mxu0 }
0x10df   :  { %v3322_v48 = vpop.f32.mrb[43].mxu0 }
0x10e0   :  { %v1960_v23 = vpop.f32.mrb[40].mxu1 }
0x10e1   :  { %v3339_v61 = vpop.f32.mrb[41].mxu1  ;;  %v1969_v55 = vmul.f32 0.25, %v1960_v23 }
0x10e2   :  { %v1963_v50 = vpop.f32.mrb[42].mxu1 }
0x10e3   :  { %v3340_v52 = vpop.f32.mrb[43].mxu1  ;;  %v1970_v1 = vmul.f32 0.25, %v1963_v50  ;;  %v1973_v6 = vadd.f32 %v1969_v55, %v3968_v0  ;;  %v3467_v50 = vld [vmem:[%s4536_s2 + $0x10] sm:$0xff]  }
0x10e4   :  { %v1907_v21 = vpop.f32.mrb[44].mxu0  ;;  %v3468_v52 = vld [vmem:[%s4536_s2 + $0x18] sm:$0xff]  }
0x10e5   :  { %v1967_v56 = vmul.f32 0.25, %v1907_v21  ;;  %v3333_v59 = vpop.f32.mrb[45].mxu0  ;;  %v1981_v8 = vsel %vm429_vm2, %v1973_v6, -inf  ;;  %v1974_v36 = vadd.f32 %v1970_v1, %v3968_v0 }
0x10e6   :  { %v1910_v58 = vpop.f32.mrb[46].mxu0 }
0x10e7   :  { %v1968_v60 = vmul.f32 0.25, %v1910_v58  ;;  %v3334_v5 = vpop.f32.mrb[47].mxu0  ;;  %v1971_v62 = vadd.f32 %v1967_v56, %v3966_v53  ;;  %v1984_v63 = vsel %vm429_vm2, %v1974_v36, -inf }
0x10e9   :  { %v1975_v4 = vsel %vm429_vm2, %v1971_v62, -inf  ;;  %v1972_v43 = vadd.f32 %v1968_v60, %v3966_v53 }
0x10ea   :  { %1976 = vmax.xlane.f32.xlu0 %v1975_v4 }
0x10eb   :  { %v1978_v49 = vsel %vm429_vm2, %v1972_v43, -inf }
0x10ec   :  { %1979 = vmax.xlane.f32.xlu1 %v1978_v49 }
0x10ee   :  { %1982 = vmax.xlane.f32.xlu0 %v1981_v8 }
0x10f2   :  { %1985 = vmax.xlane.f32.xlu0 %v1984_v63 }
0x1177   :  { %v1977_v9 = vpop.xlane.xlu0 %1976 }
0x1178   :  { %v1987_v3 = vsub.f32 %v1971_v62, %v1977_v9 }
0x1179   :  { %v1980_v10 = vpop.xlane.xlu1 %1979 }
0x117a   :  { %v1991_v53 = vmul.f32 1.442695, %v1987_v3  ;;  %v1988_v16 = vsub.f32 %v1972_v43, %v1980_v10 }
0x117b   :  { %v1983_v37 = vpop.xlane.xlu0 %1982 }
0x117c   :  { %v1989_v11 = vsub.f32 %v1973_v6, %v1983_v37  ;;  %v1993_v20 = vmul.f32 1.442695, %v1988_v16 }
0x117e   :  { %v1995_v17 = vmul.f32 1.442695, %v1989_v11 }
0x117f   :  { %v1986_v18 = vpop.xlane.xlu0 %1985 }
0x1180   :  { %3561 = vpow2.f32 %v1995_v17  ;;  %v1990_v19 = vsub.f32 %v1974_v36, %v1986_v18 }
0x1181   :  { %3563 = vpow2.f32 %v1991_v53 }
0x1182   :  { %v1997_v25 = vmul.f32 1.442695, %v1990_v19 }
0x1184   :  { %3565 = vpow2.f32 %v1997_v25 }
0x1185   :  { %3567 = vpow2.f32 %v1993_v20 }
0x118a   :  { %v3562_v0 = vpop.eup %3561 }
0x118b   :  { %v2005_v26 = vsel %vm429_vm2, %v3562_v0, 0.0  ;;  %v3564_v27 = vpop.eup %3563 }
0x118c   :  { %2006 = vadd.xlane.f32.xlu0 %v2005_v26  ;;  %v1999_v29 = vsel %vm429_vm2, %v3564_v27, 0.0 }
0x118e   :  { %v3566_v28 = vpop.eup %3565 }
0x118f   :  { %v2008_v14 = vsel %vm429_vm2, %v3566_v28, 0.0  ;;  %v3568_v31 = vpop.eup %3567 }
0x1190   :  { %2000 = vadd.xlane.f32.xlu0 %v1999_v29  ;;  %2009 = vadd.xlane.f32.xlu1 %v2008_v14  ;;  %v2002_v32 = vsel %vm429_vm2, %v3568_v31, 0.0 }
0x1194   :  { %2003 = vadd.xlane.f32.xlu1 %v2002_v32 }
0x11a5   :  { %2070 = vrot.lane.b32.xlu1 %v4179_v13, %s3706_s29 }
0x11a6   :  { %2022 = vrot.lane.b32.xlu0 %v4183_v15, %s3706_s29 }
0x1219   :  { %v2007_v30 = vpop.xlane.xlu0 %2006 }
0x121a   :  { %3569 = vrcp.f32 %v2007_v30 }
0x121d   :  { %v2001_v22 = vpop.xlane.xlu0 %2000  ;;  %v2010_v12 = vpop.xlane.xlu1 %2009 }
0x121e   :  { %3571 = vrcp.f32 %v2010_v12 }
0x121f   :  { %3573 = vrcp.f32 %v2001_v22 }
0x1221   :  { %v2023_v33 = vpop.permute.xlu0 %2022  ;;  %v2004_v34 = vpop.xlane.xlu1 %2003 }
0x1222   :  { %3575 = vrcp.f32 %v2004_v34  ;;  %3342 = vmatpush3.bf16.msra.mxu0 %v2023_v33 }
0x1223   :  { %3353 = vmatprep.subr.bf16.mxu0 %v3467_v50 }
0x1224   :  { %v3570_v38 = vpop.eup %3569 }
0x1225   :  { %v2071_v35 = vpop.permute.xlu1 %2070  ;;  %v2017_v44 = vmul.f32 %v3570_v38, %v3562_v0 }
0x1226   :  { %3348 = vmatpush3.bf16.msra.mxu1 %v2071_v35 }
0x1228   :  { %v3572_v39 = vpop.eup %3571 }
0x1229   :  { %v3574_v42 = vpop.eup %3573  ;;  %v2018_v13 = vmul.f32 %v3572_v39, %v3566_v28 }
0x122a   :  { %v2015_v15 = vmul.f32 %v3574_v42, %v3564_v27 }
0x122b   :  { %v2020_v48 = vpack.c.bf16 %v2018_v13, %v2017_v44 }
0x122c   :  { %v3576_v46 = vpop.eup %3575 }
0x122d   :  { %v2016_v23 = vmul.f32 %v3576_v46, %v3568_v31  ;;  %3350 = vmatmul.mubr.msk.bf16.vlgmr.msra.gmra.mrb[44].mxu1 %vm429_vm2, %v2020_v48 }
0x122f   :  { %v2019_v61 = vpack.c.bf16 %v2016_v23, %v2015_v15 }
0x1231   :  { %3344 = vmatmul.mubr.msk.bf16.vlgmr.msra.gmra.mrb[48].mxu0 %vm429_vm2, %v2019_v61  ;;  %v3469_v61 = vld [vmem:[%s4493_s12 + $0x10] sm:$0xff]  }
0x1232   :  { %3354 = vmatpush3.bf16.msra.mxu0 %v3467_v50  ;;  %3361 = vmatprep.subr.bf16.mxu1 %v3469_v61  ;;  %v3470_v50 = vld [vmem:[%s4493_s12 + $0x18] sm:$0xff]  }
0x1233   :  { %3355 = vmatprep.subr.bf16.mxu0 %v3468_v52  ;;  %3362 = vmatpush3.bf16.msra.mxu1 %v3469_v61 }
0x1234   :  { %3363 = vmatprep.subr.bf16.mxu1 %v3470_v50 }
0x1236   :  { %3356 = vmatpush3.bf16.msra.mxu0 %v3468_v52 }
0x1237   :  { %3364 = vmatpush3.bf16.msra.mxu1 %v3470_v50 }
0x1238   :  { %3381 = vmatprep.subr.bf16.mxu1 %v3703_v2 }
0x1300   :  { %v2110_v21 = vpop.f32.mrb[44].mxu1 }
0x1301   :  { %v3351_v55 = vpop.f32.mrb[45].mxu1 }
0x1302   :  { %v2113_v56 = vpop.f32.mrb[46].mxu1 }
0x1303   :  { %v3440_v59 = vpack.i.bf16 %v2113_v56, %v2110_v21  ;;  %v3352_v58 = vpop.f32.mrb[47].mxu1 }
0x1304   :  { %v2062_v60 = vpop.f32.mrb[48].mxu0 }
0x1305   :  { %v3345_v5 = vpop.f32.mrb[49].mxu0 }
0x1306   :  { %v2065_v62 = vpop.f32.mrb[50].mxu0 }
0x1307   :  { %v3435_v1 = vpack.i.bf16 %v2065_v62, %v2062_v60  ;;  %v3346_v4 = vpop.f32.mrb[51].mxu0 }
0x1309   :  { %3436 = vrot.lane.b32.xlu1 %v3435_v1, %s4540_s1 }
0x130d   :  { %3441 = vrot.lane.b32.xlu1 %v3440_v59, %s4540_s1 }
0x137b   :  { %v3437_v43 = vpop.permute.xlu1 %3436 }
0x137c   :  { %v3439_v6 = vunpack.i.h.bf16 %v3437_v43  ;;  %v3438_v49 = vunpack.i.l.bf16 %v3437_v43 }
0x137e   :  { %v2134_v8 = vsel %vm429_vm2, %v4248_v47, %v3439_v6  ;;  %v2133_v36 = vsel %vm429_vm2, %v4246_v45, %v3438_v49  ;;  %v3032_v47 = vld [vmem:[%s4537_s5 + $0x1] ss:$0 sm:$0xff] }
0x137f   :  { %v2137_v63 = vpack.c.bf16 %v2134_v8, %v2133_v36  ;;  %v3442_v9 = vpop.permute.xlu1 %3441  ;;  %v3039_v49 = vld [vmem:[%s4538_s7 + $0x1] ss:$0 sm:$0xff] }
0x1380   :  { %v3444_v3 = vunpack.i.h.bf16 %v3442_v9  ;;  %v3443_v10 = vunpack.i.l.bf16 %v3442_v9 }
0x1381   :  { %3357 = vmatprep.mubr.msk.bf16.mxu0 %vm91_vm0, %v2137_v63 }
0x1382   :  { %v2136_v37 = vsel %vm429_vm2, %v4244_v7, %v3444_v3  ;;  %v2135_v11 = vsel %vm429_vm2, %v4242_v41, %v3443_v10  ;;  %v3040_v10 = vld [vmem:[%s4539_s28 + $0x1] ss:$0 sm:$0xff] }
0x1383   :  { %v2138_v53 = vpack.c.bf16 %v2136_v37, %v2135_v11 }
0x1385   :  { %3358 = vmatmul.mubr.msk.bf16.vlgmr.msra.gmra.mrb[52].mxu0 %vm91_vm0, %v2138_v53 }
0x1458   :  { %v3359_v45 = vpop.f32.mrb[52].mxu0 }
0x1459   :  { %v2204_v16 = vpop.f32.mrb[53].mxu0  ;;  %v2213_v17 = vadd.f32 %v3359_v45, %v3032_v47 }
0x145a   :  { %v2205_v18 = vadd.f32 %v3032_v47, %v2204_v16  ;;  %v3360_v19 = vpop.f32.mrb[54].mxu0 }
0x145b   :  { %v2207_v20 = vpop.f32.mrb[55].mxu0  ;;  %v2216_v7 = vadd.f32 %v3360_v19, %v3032_v47  ;;  %v2221_v27 = vadd.f32 %v2213_v17, %v4153_v57 }
0x145c   :  { %v2208_v25 = vadd.f32 %v3032_v47, %v2207_v20  ;;  %v2219_v0 = vadd.f32 %v2205_v18, %v4145_v51 }
0x145d   :  { %v2233_v29 = vsel %vm91_vm0, %v2221_v27, 0.0  ;;  %v2222_v14 = vadd.f32 %v2216_v7, %v4155_v54  ;;  %v3471_v7 = vld [vmem:[%s4495_s14 + $0x20] sm:$0xff]  }
0x145e   :  { %v2227_v26 = vsel %vm91_vm0, %v2219_v0, 0.0  ;;  %v2220_v41 = vadd.f32 %v2208_v25, %v4147_v24  ;;  %3369 = vmatprep.subr.bf16.mxu0 %v3471_v7 }
0x145f   :  { %2228 = vadd.xlane.f32.xlu0 %v2227_v26  ;;  %v2236_v31 = vsel %vm91_vm0, %v2222_v14, 0.0  ;;  %v3472_v26 = vld [vmem:[%s4495_s14 + $0x28] sm:$0xff]   ;;  %3370 = vmatpush3.bf16.msra.mxu0 %v3471_v7 }
0x1460   :  { %v2230_v28 = vsel %vm91_vm0, %v2220_v41, 0.0  ;;  %3371 = vmatprep.subr.bf16.mxu0 %v3472_v26 }
0x1461   :  { %2231 = vadd.xlane.f32.xlu1 %v2230_v28  ;;  %v3046_v28 = vld [vmem:[%s4494_s13 + $0x1] ss:$0 sm:$0xff] }
0x1463   :  { %2234 = vadd.xlane.f32.xlu0 %v2233_v29  ;;  %3372 = vmatpush3.bf16.msra.mxu0 %v3472_v26 }
0x1467   :  { %2237 = vadd.xlane.f32.xlu0 %v2236_v31 }
0x14ec   :  { %v2229_v51 = vpop.xlane.xlu0 %2228 }
0x14ed   :  { %v2239_v32 = vmul.f32 0.03125, %v2229_v51 }
0x14ee   :  { %v2232_v30 = vpop.xlane.xlu1 %2231 }
0x14ef   :  { %v2243_v22 = vsub.f32 %v2219_v0, %v2239_v32  ;;  %v2240_v12 = vmul.f32 0.03125, %v2232_v30 }
0x14f0   :  { %v2235_v24 = vpop.xlane.xlu0 %2234 }
0x14f1   :  { %v2244_v33 = vsub.f32 %v2220_v41, %v2240_v12  ;;  %v2241_v57 = vmul.f32 0.03125, %v2235_v24  ;;  %v2247_v34 = vmul.f32 %v2243_v22, %v2243_v22  ;;  %v3473_v41 = vld [vmem:[%s4495_s14 + $0x30] sm:$0xff]  }
0x14f2   :  { %3373 = vmatprep.subr.bf16.mxu0 %v3473_v41 }
0x14f3   :  { %v2245_v35 = vsub.f32 %v2221_v27, %v2241_v57  ;;  %v2251_v38 = vsel %vm91_vm0, %v2247_v34, 0.0  ;;  %v2248_v39 = vmul.f32 %v2244_v33, %v2244_v33  ;;  %v3474_v27 = vld [vmem:[%s4495_s14 + $0x38] sm:$0xff]   ;;  %3374 = vmatpush3.bf16.msra.mxu0 %v3473_v41 }
0x14f4   :  { %2252 = vadd.xlane.f32.xlu0 %v2251_v38  ;;  %v2238_v42 = vpop.xlane.xlu0 %2237  ;;  %3375 = vmatprep.subr.bf16.mxu0 %v3474_v27 }
0x14f5   :  { %v2242_v54 = vmul.f32 0.03125, %v2238_v42  ;;  %v2254_v44 = vsel %vm91_vm0, %v2248_v39, 0.0  ;;  %v2249_v13 = vmul.f32 %v2245_v35, %v2245_v35 }
0x14f6   :  { %2255 = vadd.xlane.f32.xlu1 %v2254_v44 }
0x14f7   :  { %v2246_v46 = vsub.f32 %v2222_v14, %v2242_v54  ;;  %v2257_v48 = vsel %vm91_vm0, %v2249_v13, 0.0  ;;  %3376 = vmatpush3.bf16.msra.mxu0 %v3474_v27 }
0x14f8   :  { %2258 = vadd.xlane.f32.xlu0 %v2257_v48  ;;  %3397 = vmatprep.subr.bf16.mxu0 %v3703_v2 }
0x14f9   :  { %v2250_v15 = vmul.f32 %v2246_v46, %v2246_v46 }
0x14fb   :  { %v2260_v23 = vsel %vm91_vm0, %v2250_v15, 0.0 }
0x14fc   :  { %2261 = vadd.xlane.f32.xlu1 %v2260_v23 }
0x1581   :  { %v2253_v52 = vpop.xlane.xlu0 %2252 }
0x1582   :  { %v2263_v21 = vmul.f32 0.03125, %v2253_v52 }
0x1583   :  { %v2256_v55 = vpop.xlane.xlu1 %2255 }
0x1584   :  { %v2267_v56 = vadd.f32 1e-12, %v2263_v21  ;;  %v2264_v59 = vmul.f32 0.03125, %v2256_v55 }
0x1585   :  { %v2259_v58 = vpop.xlane.xlu0 %2258 }
0x1586   :  { %3577 = vrsqrt.f32 %v2267_v56  ;;  %v2268_v60 = vadd.f32 1e-12, %v2264_v59  ;;  %v2265_v5 = vmul.f32 0.03125, %v2259_v58 }
0x1588   :  { %3579 = vrsqrt.f32 %v2268_v60  ;;  %v2269_v62 = vadd.f32 1e-12, %v2265_v5 }
0x1589   :  { %v2262_v1 = vpop.xlane.xlu1 %2261 }
0x158a   :  { %3581 = vrsqrt.f32 %v2269_v62  ;;  %v2266_v4 = vmul.f32 0.03125, %v2262_v1 }
0x158c   :  { %v2270_v43 = vadd.f32 1e-12, %v2266_v4 }
0x158e   :  { %3583 = vrsqrt.f32 %v2270_v43 }
0x1590   :  { %v3578_v6 = vpop.eup %3577 }
0x1591   :  { %v2275_v8 = vmul.f32 %v3578_v6, %v2243_v22 }
0x1592   :  { %v3580_v36 = vpop.eup %3579 }
0x1593   :  { %v2276_v63 = vmul.f32 %v3580_v36, %v2244_v33  ;;  %v2285_v9 = vmul.f32 %v3039_v49, %v2275_v8 }
0x1594   :  { %v3582_v3 = vpop.eup %3581 }
0x1595   :  { %v2277_v37 = vmul.f32 %v3582_v3, %v2245_v35  ;;  %v2286_v11 = vmul.f32 %v3039_v49, %v2276_v63  ;;  %v4314_v53 = vadd.f32 %v3040_v10, %v2285_v9 }
0x1597   :  { %v4316_v47 = vadd.f32 %v3040_v10, %v2286_v11  ;;  %v2287_v16 = vmul.f32 %v3039_v49, %v2277_v37  ;;  %v3060_v11 = vld [vmem:[%s4496_s15 + $0x1] ss:$0 sm:$0xff] }
0x1598   :  { %v3584_v45 = vpop.eup %3583 }
0x1599   :  { %v2278_v17 = vmul.f32 %v3584_v45, %v2246_v46  ;;  %v2299_v18 = vpack.c.bf16 %v4316_v47, %v4314_v53  ;;  %v4321_v20 = vadd.f32 %v3040_v10, %v2287_v16 }
0x159b   :  { %v2288_v19 = vmul.f32 %v3039_v49, %v2278_v17  ;;  %3365 = vmatprep.mubr.msk.bf16.mxu1 %vm91_vm0, %v2299_v18 }
0x159d   :  { %v4323_v25 = vadd.f32 %v3040_v10, %v2288_v19 }
0x159f   :  { %v2300_v0 = vpack.c.bf16 %v4323_v25, %v4321_v20 }
0x15a1   :  { %3366 = vmatmul.mubr.msk.bf16.vlgmr.msra.gmra.mrb[48].mxu1 %vm91_vm0, %v2300_v0 }
0x15a2   :  { %3385 = vmatprep.mubr.msk.bf16.mxu1 %vm3704_vm1, %v3703_v2 }
0x1674   :  { %v3367_v29 = vpop.f32.mrb[48].mxu1 }
0x1675   :  { %v2375_v14 = vadd.f32 %v3367_v29, %v3046_v28  ;;  %v2366_v31 = vpop.f32.mrb[49].mxu1 }
0x1676   :  { %v2367_v51 = vadd.f32 %v3046_v28, %v2366_v31  ;;  %v3368_v32 = vpop.f32.mrb[50].mxu1 }
0x1677   :  { %v2387_v30 = vmul.f32 0.044715, %v2375_v14  ;;  %v2378_v22 = vadd.f32 %v3368_v32, %v3046_v28  ;;  %v2369_v12 = vpop.f32.mrb[51].mxu1  ;;  %v2383_v1 = vmul.f32 0.5, %v2375_v14 }
0x1678   :  { %v2385_v24 = vmul.f32 0.044715, %v2367_v51  ;;  %v2370_v33 = vadd.f32 %v3046_v28, %v2369_v12  ;;  %v2381_v6 = vmul.f32 0.5, %v2367_v51 }
0x1679   :  { %v2391_v57 = vmul.f32 %v2387_v30, %v2375_v14  ;;  %v2388_v34 = vmul.f32 0.044715, %v2378_v22  ;;  %v2384_v4 = vmul.f32 0.5, %v2378_v22 }
0x167a   :  { %v2389_v35 = vmul.f32 %v2385_v24, %v2367_v51  ;;  %v2386_v38 = vmul.f32 0.044715, %v2370_v33  ;;  %v2382_v49 = vmul.f32 0.5, %v2370_v33 }
0x167b   :  { %v2395_v39 = vmul.f32 %v2391_v57, %v2375_v14  ;;  %v2392_v42 = vmul.f32 %v2388_v34, %v2378_v22 }
0x167c   :  { %v2393_v54 = vmul.f32 %v2389_v35, %v2367_v51  ;;  %v2390_v44 = vmul.f32 %v2386_v38, %v2370_v33 }
0x167d   :  { %v2399_v13 = vadd.f32 %v2395_v39, %v2375_v14  ;;  %v2396_v46 = vmul.f32 %v2392_v42, %v2378_v22 }
0x167e   :  { %v2397_v48 = vadd.f32 %v2393_v54, %v2367_v51  ;;  %v2394_v15 = vmul.f32 %v2390_v44, %v2370_v33 }
0x167f   :  { %v2403_v23 = vmul.f32 0.7978846, %v2399_v13  ;;  %v2400_v61 = vadd.f32 %v2396_v46, %v2378_v22 }
0x1680   :  { %v2401_v50 = vmul.f32 0.7978846, %v2397_v48  ;;  %v2398_v52 = vadd.f32 %v2394_v15, %v2370_v33 }
0x1681   :  { %3585 = vtanh.f32 %v2403_v23  ;;  %v2404_v21 = vmul.f32 0.7978846, %v2400_v61  ;;  %v2685_v23 = vld [vmem:[%s4541_s30] sm:$0xf] }
0x1682   :  { %3587 = vtanh.f32 %v2401_v50  ;;  %v2402_v55 = vmul.f32 0.7978846, %v2398_v52  ;;  %v2680_v61 = vld [vmem:[%s4542_s0] sm:$0xf]  ;;  %v3476_v52 = vld [vmem:[%s4499_s18 + $0x8] sm:$0xff]  }
0x1683   :  { %3589 = vtanh.f32 %v2404_v21  ;;  %v3475_v50 = vld [vmem:[%s4499_s18] sm:$0xff]  }
0x1684   :  { %3591 = vtanh.f32 %v2402_v55  ;;  %3382 = vmatpush3.bf16.msra.mxu1 %v3475_v50 }
0x1685   :  { %3383 = vmatprep.subr.bf16.mxu1 %v3703_v2 }
0x1688   :  { %3384 = vmatpush3.bf16.msra.mxu1 %v3476_v52 }
0x1689   :  { %3389 = vmatprep.subr.bf16.mxu1 %v3703_v2 }
0x168b   :  { %v3586_v56 = vpop.eup %3585 }
0x168c   :  { %v3588_v59 = vpop.eup %3587  ;;  %v2411_v58 = vadd.f32 1.0, %v3586_v56 }
0x168d   :  { %v3590_v60 = vpop.eup %3589  ;;  %v2409_v5 = vadd.f32 1.0, %v3588_v59 }
0x168e   :  { %v3592_v62 = vpop.eup %3591  ;;  %v2412_v43 = vadd.f32 1.0, %v3590_v60  ;;  %v2415_v36 = vmul.f32 %v2411_v58, %v2383_v1 }
0x168f   :  { %v2410_v8 = vadd.f32 1.0, %v3592_v62  ;;  %v2413_v9 = vmul.f32 %v2409_v5, %v2381_v6  ;;  %v2679_v6 = vand.u32 127, %v172_v40  ;;  %v3070_v40 = vld [vmem:[%s4498_s17 + $0x1] ss:$0 sm:$0xff] }
0x1690   :  { %v2416_v63 = vmul.f32 %v2412_v43, %v2384_v4 }
0x1691   :  { %v2414_v3 = vmul.f32 %v2410_v8, %v2382_v49 }
0x1692   :  { %v2418_v10 = vpack.c.bf16 %v2416_v63, %v2415_v36 }
0x1693   :  { %v2417_v37 = vpack.c.bf16 %v2414_v3, %v2413_v9  ;;  %v3069_v9 = vld [vmem:[%s4497_s16 + $0x1] ss:$0 sm:$0xff] }
0x1695   :  { %3377 = vmatprep.mubr.msk.bf16.mxu0 %vm1259_vm3, %v2417_v37 }
0x1696   :  { %3378 = vmatmul.mubr.msk.bf16.vlgmr.msra.gmra.mrb[56].mxu0 %vm1259_vm3, %v2418_v10 }
0x1697   :  { %3401 = vmatprep.mubr.msk.bf16.mxu0 %vm3704_vm1, %v3703_v2 }
0x1769   :  { %v3379_v45 = vpop.f32.mrb[56].mxu0 }
0x176a   :  { %v2509_v16 = vadd.f32 %v3379_v45, %v3060_v11  ;;  %v2500_v17 = vpop.f32.mrb[57].mxu0 }
0x176b   :  { %v2501_v18 = vadd.f32 %v3060_v11, %v2500_v17  ;;  %v3380_v19 = vpop.f32.mrb[58].mxu0 }
0x176c   :  { %v2512_v0 = vadd.f32 %v3380_v19, %v3060_v11  ;;  %v2503_v7 = vpop.f32.mrb[59].mxu0  ;;  %v2517_v26 = vadd.f32 %v2509_v16, %v4321_v20  ;;  %v3708_v20 = vmov 0  }
0x176d   :  { %v2504_v41 = vadd.f32 %v3060_v11, %v2503_v7  ;;  %v2515_v27 = vadd.f32 %v2501_v18, %v4314_v53  ;;  %3446 = vset.pattern.permute.xlu1 %v3708_v20  ;;  %3445 = vset.pattern.permute.xlu0 %v3708_v20 }
0x176e   :  { %v2529_v28 = vsel %vm91_vm0, %v2517_v26, 0.0  ;;  %v2518_v31 = vadd.f32 %v2512_v0, %v4323_v25 }
0x176f   :  { %2530 = vadd.xlane.f32.xlu0 %v2529_v28  ;;  %v2523_v29 = vsel %vm91_vm0, %v2515_v27, 0.0  ;;  %v2516_v14 = vadd.f32 %v2504_v41, %v4316_v47 }
0x1770   :  { %2524 = vadd.xlane.f32.xlu1 %v2523_v29  ;;  %v2532_v32 = vsel %vm91_vm0, %v2518_v31, 0.0 }
0x1771   :  { %v2526_v51 = vsel %vm91_vm0, %v2516_v14, 0.0 }
0x1773   :  { %2527 = vadd.xlane.f32.xlu0 %v2526_v51 }
0x1774   :  { %2533 = vadd.xlane.f32.xlu1 %v2532_v32 }
0x17fc   :  { %v2531_v53 = vpop.xlane.xlu0 %2530 }
0x17fd   :  { %v2537_v30 = vmul.f32 0.03125, %v2531_v53  ;;  %v2525_v22 = vpop.xlane.xlu1 %2524 }
0x17fe   :  { %v2535_v12 = vmul.f32 0.03125, %v2525_v22 }
0x17ff   :  { %v2541_v24 = vsub.f32 %v2517_v26, %v2537_v30 }
0x1800   :  { %v2539_v33 = vsub.f32 %v2515_v27, %v2535_v12  ;;  %v2528_v57 = vpop.xlane.xlu0 %2527 }
0x1801   :  { %v2536_v47 = vmul.f32 0.03125, %v2528_v57  ;;  %v2534_v34 = vpop.xlane.xlu1 %2533  ;;  %v2545_v25 = vmul.f32 %v2541_v24, %v2541_v24  ;;  %v3477_v57 = vld [vmem:[%s4501_s20] sm:$0xff]  }
0x1802   :  { %v2538_v35 = vmul.f32 0.03125, %v2534_v34  ;;  %v2543_v38 = vmul.f32 %v2539_v33, %v2539_v33  ;;  %3398 = vmatpush3.bf16.msra.mxu0 %v3477_v57  ;;  %v3479_v34 = vld [vmem:[%s4501_s20 + $0x8] sm:$0xff]  }
0x1803   :  { %v2540_v39 = vsub.f32 %v2516_v14, %v2536_v47  ;;  %v2553_v42 = vsel %vm91_vm0, %v2545_v25, 0.0  ;;  %3399 = vmatprep.subr.bf16.mxu0 %v3703_v2  ;;  %v3478_v47 = vld [vmem:[%s4503_s22] sm:$0xff]   ;;  %v3480_v25 = vld [vmem:[%s4503_s22 + $0x8] sm:$0xff]   ;;  %s3710_s22 = smov [#allocation2]  }
0x1804   :  { %v2542_v54 = vsub.f32 %v2518_v31, %v2538_v35  ;;  %2554 = vadd.xlane.f32.xlu0 %v2553_v42  ;;  %v2547_v44 = vsel %vm91_vm0, %v2543_v38, 0.0  ;;  %s2891_s30 = sshll.u32 %s3710_s22, 4  ;;  %s4418_s30 = int_to_ptr.vmem [resolvable:$true] %s2891_s30 }
0x1805   :  { %2548 = vadd.xlane.f32.xlu1 %v2547_v44  ;;  %v2544_v13 = vmul.f32 %v2540_v39, %v2540_v39 }
0x1806   :  { %v2546_v46 = vmul.f32 %v2542_v54, %v2542_v54  ;;  %3400 = vmatpush3.bf16.msra.mxu0 %v3479_v34 }
0x1807   :  { %v2550_v48 = vsel %vm91_vm0, %v2544_v13, 0.0 }
0x1808   :  { %2551 = vadd.xlane.f32.xlu0 %v2550_v48  ;;  %v2556_v15 = vsel %vm91_vm0, %v2546_v46, 0.0 }
0x1809   :  { %2557 = vadd.xlane.f32.xlu1 %v2556_v15 }
0x181a   :  { %2687 = vperm.xlu1 %3446, %v2685_v23  }
0x181e   :  { %2682 = vperm.xlu0 %3445, %v2680_v61  }
0x1891   :  { %v2555_v21 = vpop.xlane.xlu0 %2554 }
0x1892   :  { %v2561_v55 = vmul.f32 0.03125, %v2555_v21  ;;  %v2549_v56 = vpop.xlane.xlu1 %2548 }
0x1893   :  { %v2559_v59 = vmul.f32 0.03125, %v2549_v56 }
0x1894   :  { %v2565_v58 = vadd.f32 1e-12, %v2561_v55 }
0x1895   :  { %v2563_v60 = vadd.f32 1e-12, %v2559_v59  ;;  %v2552_v5 = vpop.xlane.xlu0 %2551 }
0x1896   :  { %3593 = vrsqrt.f32 %v2565_v58  ;;  %v2560_v62 = vmul.f32 0.03125, %v2552_v5  ;;  %v2558_v1 = vpop.xlane.xlu1 %2557 }
0x1897   :  { %3595 = vrsqrt.f32 %v2563_v60  ;;  %v2562_v4 = vmul.f32 0.03125, %v2558_v1 }
0x1898   :  { %v2564_v43 = vadd.f32 1e-12, %v2560_v62 }
0x1899   :  { %v2566_v49 = vadd.f32 1e-12, %v2562_v4 }
0x189a   :  { %3597 = vrsqrt.f32 %v2564_v43  ;;  %v2688_v8 = vpop.permute.xlu1 %2687 }
0x189b   :  { %3599 = vrsqrt.f32 %v2566_v49  ;;  %vm2689_vm4 = vcmp.lt.s32.totalorder %v2679_v6, %v2688_v8 }
0x189d   :  { %v2683_v36 = vpop.permute.xlu0 %2682 }
0x189e   :  { %vm2684_vm5 = vcmp.ge.s32.totalorder %v2679_v6, %v2683_v36 }
0x189f   :  { %vm2690_vm7 = vmand %vm2684_vm5, %vm2689_vm4 }
0x18a0   :  { %v3594_v63 = vpop.eup %3593  ;;  %v3075_v3 = vsel %vm2690_vm7, 1.0, %v3703_v2 }
0x18a1   :  { %v3596_v10 = vpop.eup %3595  ;;  %v2573_v37 = vmul.f32 %v3594_v63, %v2541_v24  ;;  %v2694_v11 = vsel %vm2693_vm6, %v3075_v3, 0.0 }
0x18a2   :  { %v2571_v45 = vmul.f32 %v3596_v10, %v2539_v33  ;;  %2695 = vadd.xlane.f32.xlu1 %v2694_v11  ;;  %v2698_v33 = vpack.c.bf16 %v3075_v3, %v3075_v3 }
0x18a3   :  { %v2583_v16 = vmul.f32 %v3069_v9, %v2573_v37 }
0x18a4   :  { %v3598_v17 = vpop.eup %3597  ;;  %v2581_v18 = vmul.f32 %v3069_v9, %v2571_v45 }
0x18a5   :  { %v3600_v19 = vpop.eup %3599  ;;  %v2593_v0 = vadd.f32 %v3070_v40, %v2583_v16  ;;  %v2572_v7 = vmul.f32 %v3598_v17, %v2540_v39  ;;  %v3071_v39 = vld [vmem:[%s4500_s19] ss:$0 sm:$0xff]  ;;  %s3709_s19 = smov [#allocation4]  }
0x18a6   :  { %v2591_v26 = vadd.f32 %v3070_v40, %v2581_v18  ;;  %v2574_v41 = vmul.f32 %v3600_v19, %v2542_v54  ;;  %s2904_s20 = sshll.u32 %s3709_s19, 4  ;;  %s2905_s20 = int_to_ptr.vmem [resolvable:$true] %s2904_s20 }
0x18a7   :  { %2597 = vst.msk [vmem:[#allocation2 + $0x10] sm:$0xff] %vm91_vm0, %v2593_v0  ;;  %v2600_v27 = vpack.c.bf16 %v2593_v0, %v2593_v0  ;;  %v2582_v28 = vmul.f32 %v3069_v9, %v2572_v7  ;;  %s3609_s12 = scalar_lea.vmem %s2905_s20, 32  ;;  %p3614_p1 = scmp.lt.s32.totalorder %s2905_s20, %s2905_s20 }
0x18a8   :  { %2595 = vst.msk [vmem:[#allocation2] sm:$0xff] %vm91_vm0, %v2591_v26  ;;  %v2599_v29 = vpack.c.bf16 %v2591_v26, %v2591_v26  ;;  %v2584_v14 = vmul.f32 %v3069_v9, %v2574_v41  ;;  %p3610_p0 = scmp.ne.s32.totalorder %s2905_s20, %s3609_s12  ;;  %p3615_p2 = scmp.lt.s32.totalorder %s3609_s12, %s3609_s12 }
0x18a9   :  { %v2615_v31 = vunpack.c.l.b16 %v2600_v27  ;;  %v2592_v51 = vadd.f32 %v3070_v40, %v2582_v28 }
0x18aa   :  { %v2614_v32 = vunpack.c.l.b16 %v2599_v29  ;;  %v2594_v20 = vadd.f32 %v3070_v40, %v2584_v14  ;;  %p3616_p3 = por %p3615_p2, %p3614_p1 }
0x18ab   :  { %v2616_v53 = vrot.slane %v2615_v31, 7  ;;  %2596 = vst.msk [vmem:[#allocation2 + $0x8] sm:$0xff] %vm91_vm0, %v2592_v51  ;;  %v2699_v12 = vpack.c.bf16 %v2592_v51, %v2591_v26 }
0x18ac   :  { %2598 = vst.msk [vmem:[#allocation2 + $0x18] sm:$0xff] %vm91_vm0, %v2594_v20  ;;  %v2700_v24 = vpack.c.bf16 %v2594_v20, %v2593_v0  ;;  %p3617_p4 = pnand %p3616_p3, %p3610_p0 }
0x18ad   :  { %v2618_v30 = vsel %vm2617_vm8, %v2616_v53, %v2614_v32 }
0x18ae   :  { %v2619_v22 = vpack.c.b16 %v2618_v30, %v2618_v30 }
0x18b0   :  { %3386 = vmatmul.mubr.msk.bf16.vlgmr.msra.gmra.mrb[52].mxu1 %vm91_vm0, %v2619_v22 }
0x18b1   :  { %3390 = vmatpush3.bf16.msra.mxu1 %v2699_v12  ;;  %3393 = vmatprep.mubr.msk.bf16.mxu1 %vm3704_vm1, %v3703_v2 }
0x18b2   :  { %3391 = vmatprep.subr.bf16.mxu1 %v3703_v2 }
0x18b5   :  { %3392 = vmatpush3.bf16.msra.mxu1 %v2700_v24 }
0x18b6   :  { %3405 = vmatprep.subr.bf16.mxu1 %v3703_v2 }
0x18b8   :  { %3394 = vmatmul.mubr.msk.bf16.vlgmr.msra.gmra.mrb[56].mxu1 %vm91_vm0, %v2698_v33 }
0x18b9   :  { %3409 = vmatprep.mubr.msk.bf16.mxu1 %vm3704_vm1, %v3703_v2  ;;  %3406 = vmatpush3.bf16.msra.mxu1 %v3478_v47 }
0x18ba   :  { %3407 = vmatprep.subr.bf16.mxu1 %v3703_v2 }
0x18bd   :  { %3408 = vmatpush3.bf16.msra.mxu1 %v3480_v25 }
0x192f   :  { %v2696_v35 = vpop.xlane.xlu1 %2695 }
0x1930   :  { %v2697_v38 = vmax.f32 %v2696_v35, 1.0 }
0x1932   :  { %3601 = vrcp.f32 %v2697_v38 }
0x193c   :  { %v3602_v2 = vpop.eup %3601 }
0x1983   :  { %v2669_v42 = vpop.f32.mrb[52].mxu1 }
0x1984   :  { %v2670_v54 = vadd.f32 %v3071_v39, %v2669_v42  ;;  %v3387_v44 = vpop.f32.mrb[53].mxu1 }
0x1985   :  { %v2672_v13 = vpop.f32.mrb[54].mxu1 }
0x1986   :  { %3603 = vtanh.f32 %v2670_v54  ;;  %v3388_v46 = vpop.f32.mrb[55].mxu1 }
0x198b   :  { %v2738_v48 = vpop.f32.mrb[56].mxu1 }
0x198c   :  { %v2745_v15 = vmul.f32 %v3602_v2, %v2738_v48  ;;  %v3395_v23 = vpop.f32.mrb[57].mxu1 }
0x198d   :  { %v2741_v61 = vpop.f32.mrb[58].mxu1 }
0x198e   :  { %v2746_v50 = vpack.c.bf16 %v2745_v15, %v2745_v15  ;;  %v3396_v52 = vpop.f32.mrb[59].mxu1 }
0x1990   :  { %v3604_v21 = vpop.eup %3603  ;;  %v2828_v55 = vrot.slane %v2746_v50, 1  ;;  %3402 = vmatmul.mubr.msk.bf16.vlgmr.msra.gmra.mrb[60].mxu0 %vm91_vm0, %v2746_v50 }
0x1991   :  { %2677 = vst.msk [vmem:[#allocation4] sm:$0x3] %vm2676_vm9, %v3604_v21 }
0x1992   :  { %3410 = vmatmul.mubr.msk.bf16.vlgmr.msra.gmra.mrb[60].mxu1 %vm91_vm0, %v2828_v55 }
0x1993   :  { %3620 = shalt.err (!%p3617_p4)
}
0x1994   :  { %s3621_s4 = scalar_lea.hbm %s4506_s25, 32 }
0x1995   :  { %p3622_p5 = scmp.ne.s32.totalorder %s4506_s25, %s3621_s4  ;;  %p3625_p6 = scmp.lt.u32.totalorder %s3621_s4, %s4506_s25 }
0x1997   :  { %p3627_p7 = pnand %p3625_p6, %p3622_p5 }
0x1999   :  { %3630 = shalt.err (!%p3627_p7)
}
0x199a   :  { %2907 = dma.vmem_to_hbm [thread:$0]  %s2905_s20, 32, %s4506_s25, [#allocation5]  }
0x199b   :  { %s3631_s1 = scalar_lea.vmem %s4418_s30, 512  ;;  %p3636_p9 = scmp.lt.s32.totalorder %s4418_s30, %s4418_s30 }
0x199c   :  { %p3632_p8 = scmp.ne.s32.totalorder %s4418_s30, %s3631_s1  ;;  %p3637_p10 = scmp.lt.s32.totalorder %s3631_s1, %s3631_s1 }
0x199e   :  { %p3638_p11 = por %p3637_p10, %p3636_p9 }
0x19a0   :  { %p3639_p12 = pnand %p3638_p11, %p3632_p8 }
0x19a2   :  { %3642 = shalt.err (!%p3639_p12)
}
0x19a3   :  { %s3643_s2 = scalar_lea.hbm %s4505_s24, 512 }
0x19a4   :  { %p3644_p13 = scmp.ne.s32.totalorder %s4505_s24, %s3643_s2  ;;  %p3647_p0 = scmp.lt.u32.totalorder %s3643_s2, %s4505_s24 }
0x19a6   :  { %p3649_p1 = pnand %p3647_p0, %p3644_p13 }
0x19a8   :  { %3652 = shalt.err (!%p3649_p1)
}
0x19a9   :  { %s3711_s25 = smov 128   ;;  %s3712_s14 = smov 8   ;;  %v3077_v56 = vld [vmem:[%s4502_s21] ss:$0 sm:$0xff]  ;;  %vm2814_vm10 = vcmask 123904  }
0x19aa   :  { %2897 = dma.vmem_to_hbm [thread:$0]  %s4418_s30, 512, %s4505_s24, [#allocation3], %s3711_s25, %s3711_s25, %s3712_s14  }
0x19ab   :  { %v3081_v58 = vld [vmem:[%s4504_s23] ss:$0 sm:$0xff]  ;;  %s3713_s24 = smov [#allocation6]   ;;  %s3714_s21 = smov [#allocation7]  }
0x19ac   :  { %s2914_s30 = sshll.u32 %s3713_s24, 4  ;;  %s2924_s9 = sshll.u32 %s3714_s21, 4  ;;  %s2915_s30 = int_to_ptr.vmem [resolvable:$true] %s2914_s30  ;;  %s2925_s9 = int_to_ptr.vmem [resolvable:$true] %s2924_s9 }
0x19ad   :  { %s3653_s23 = scalar_lea.vmem %s2915_s30, 32  ;;  %p3658_p3 = scmp.lt.s32.totalorder %s2915_s30, %s2915_s30 }
0x19ae   :  { %p3654_p2 = scmp.ne.s32.totalorder %s2915_s30, %s3653_s23  ;;  %p3659_p4 = scmp.lt.s32.totalorder %s3653_s23, %s3653_s23 }
0x19b0   :  { %p3660_p5 = por %p3659_p4, %p3658_p3 }
0x19b2   :  { %p3661_p6 = pnand %p3660_p5, %p3654_p2 }
0x1a63   :  { %v2807_v59 = vpop.f32.mrb[60].mxu0 }
0x1a64   :  { %v2808_v60 = vadd.f32 %v3077_v56, %v2807_v59  ;;  %v3403_v5 = vpop.f32.mrb[61].mxu0 }
0x1a65   :  { %v2810_v62 = vpop.f32.mrb[62].mxu0  ;;  %v2878_v1 = vpop.f32.mrb[60].mxu1 }
0x1a66   :  { %3605 = vtanh.f32 %v2808_v60  ;;  %v2879_v4 = vadd.f32 %v3081_v58, %v2878_v1  ;;  %v3404_v43 = vpop.f32.mrb[63].mxu0  ;;  %v3411_v6 = vpop.f32.mrb[61].mxu1 }
0x1a67   :  { %v2881_v49 = vpop.f32.mrb[62].mxu1 }
0x1a68   :  { %3607 = vtanh.f32 %v2879_v4  ;;  %v3412_v8 = vpop.f32.mrb[63].mxu1 }
0x1a70   :  { %v3606_v36 = vpop.eup %3605 }
0x1a71   :  { %2815 = vst.msk [vmem:[#allocation6] sm:$0x3] %vm2814_vm10, %v3606_v36 }
0x1a72   :  { %v3608_v63 = vpop.eup %3607 }
0x1a73   :  { %3664 = shalt.err (!%p3661_p6)
}
0x1a74   :  { %s3665_s7 = scalar_lea.hbm %s4507_s26, 32 }
0x1a75   :  { %p3666_p7 = scmp.ne.s32.totalorder %s4507_s26, %s3665_s7  ;;  %p3669_p8 = scmp.lt.u32.totalorder %s3665_s7, %s4507_s26 }
0x1a77   :  { %p3671_p9 = pnand %p3669_p8, %p3666_p7 }
0x1a79   :  { %3674 = shalt.err (!%p3671_p9)
}
0x1a7a   :  { %2917 = dma.vmem_to_hbm [thread:$0]  %s2915_s30, 32, %s4507_s26, [#allocation5]   ;;  %2885 = vst.msk [vmem:[#allocation7] sm:$0x3] %vm2814_vm10, %v3608_v63 }
0x1a7b   :  { %s3675_s16 = scalar_lea.vmem %s2925_s9, 32  ;;  %p3680_p11 = scmp.lt.s32.totalorder %s2925_s9, %s2925_s9 }
0x1a7c   :  { %p3676_p10 = scmp.ne.s32.totalorder %s2925_s9, %s3675_s16  ;;  %p3681_p12 = scmp.lt.s32.totalorder %s3675_s16, %s3675_s16 }
0x1a7e   :  { %p3682_p13 = por %p3681_p12, %p3680_p11 }
0x1a80   :  { %p3683_p0 = pnand %p3682_p13, %p3676_p10 }
0x1a82   :  { %3686 = shalt.err (!%p3683_p0)
}
0x1a83   :  { %s3687_s6 = scalar_lea.hbm %s4508_s27, 32 }
0x1a84   :  { %p3688_p1 = scmp.ne.s32.totalorder %s4508_s27, %s3687_s6  ;;  %p3691_p2 = scmp.lt.u32.totalorder %s3687_s6, %s4508_s27 }
0x1a86   :  { %p3693_p3 = pnand %p3691_p2, %p3688_p1 }
0x1a88   :  { %3696 = shalt.err (!%p3693_p3)
}
0x1a89   :  { %2927 = dma.vmem_to_hbm [thread:$0]  %s2925_s9, 32, %s4508_s27, [#allocation8]  }
0x1a8a   :  { %3697 = dma.done.wait [#allocation3], 512  }
0x1a8b   :  { %3698 = vsyncadd [#allocation3], 4294966784 }
0x1a8c   :  { %3699 = dma.done.wait [#allocation5], 64  }
0x1a8d   :  { %3700 = vsyncadd [#allocation5], 4294967232 }
0x1a8e   :  { %3701 = dma.done.wait [#allocation8], 32  }
0x1a8f   :  { %3702 = vsyncadd [#allocation8], 4294967264 }
0x1a90   :  { %2940 = vsyncpa [#allocation3], 1 }
0x1a91   :  { %2941 = vsyncpa [#allocation5], 1 }
0x1a92   :  { %2942 = vsyncpa [#allocation8], 1 }

</bundles_post_ra>
